<compile_context>
chip_gen: v6e
topology: v6e:2x2x1
jax: 0.10.0
libtpu: 0.0.40
codegen_flags: <defaults>
</compile_context>

<pallas_src>
import numpy as np
import jax
import jax.numpy as jnp
from jax.experimental import pallas as pl
from jax.experimental.pallas import tpu as pltpu


# ----------------------------------------------------------------------------
# Host-side helper: bilinear interpolation matrix matching
# F.interpolate(mode="bilinear", align_corners=False)
# ----------------------------------------------------------------------------
def bilinear_matrix(out_size, in_size):
    scale = in_size / out_size
    o = np.arange(out_size)
    src = (o + 0.5) * scale - 0.5
    src = np.clip(src, 0.0, None)          # PyTorch clamps negative source idx to 0
    i0 = np.minimum(np.floor(src).astype(np.int64), in_size - 1)
    frac = src - i0
    i1 = np.minimum(i0 + 1, in_size - 1)
    m = np.zeros((out_size, in_size), np.float32)
    m[o, i0] = 1.0 - frac
    m[o, i1] += frac
    return m


# ----------------------------------------------------------------------------
# Fused kernel: normalize + per-pixel head + softmax + tsharpen(TTA) merge +
# separable bilinear upsample + argmax(+1).  One grid step = one 128-row half
# of the (256, 256) output.
# ----------------------------------------------------------------------------
def _fused_kernel(x_ref, meanc_ref, invstdc_ref, w1b_ref, b1c_ref, w2b_ref,
                  b2c_ref, a_ref, btp_ref, o_ref, logit_ref, tmp_ref):
    h_img = a_ref.shape[1]                   # 16  (input spatial rows/cols)
    nch, wpad = logit_ref.shape              # (num_classes*H, padded W) = (128, 128)
    nc = nch // h_img                        # 8 classes

    # 1) torchvision-style Normalize (per channel, broadcast along lanes)
    xn = (x_ref[...] - meanc_ref[...]) * invstdc_ref[...]                      # (C*H, Wp)

    # 2) synthetic per-pixel head (1x1 conv MLP) via kron-expanded weights:
    #    hidden[k*H+h, w] = relu(sum_c W1[c,k] * xn[c*H+h, w] + b1[k])
    hdn = jnp.dot(w1b_ref[...], xn, preferred_element_type=jnp.float32) + b1c_ref[...]
    hdn = jnp.maximum(hdn, 0.0)                                                # (HID*H, Wp)
    logit_ref[...] = (jnp.dot(w2b_ref[...], hdn, preferred_element_type=jnp.float32)
                      + b2c_ref[...])                                          # (NC*H, Wp)

    # 3) softmax over classes (16-row blocks) + tsharpen merge of the 4 TTA
    #    branches.  The per-pixel head commutes with the flips, so all 4
    #    de-augmented maps are bit-identical and the merge (mean of 4 identical
    #    sqrt terms) reduces exactly to sqrt(prob).  Done in place in logit_ref.
    mx = logit_ref[0:h_img, :]
    for c in range(1, nc):
        mx = jnp.maximum(mx, logit_ref[c * h_img:(c + 1) * h_img, :])
    den = jnp.zeros((h_img, wpad), jnp.float32)
    for c in range(nc):
        e_c = jnp.exp(logit_ref[c * h_img:(c + 1) * h_img, :] - mx)
        logit_ref[c * h_img:(c + 1) * h_img, :] = e_c                          # exp in place
        den = den + e_c
    inv_den = 1.0 / den                                                        # exact (argmax ties)
    for c in range(nc):
        blk = logit_ref[c * h_img:(c + 1) * h_img, :]
        logit_ref[c * h_img:(c + 1) * h_img, :] = jnp.sqrt(blk * inv_den)      # tsharpen merge

    # 4) W-axis bilinear interpolation for all (class, image row) pairs at once.
    #    btp has zero rows for the padded lanes, so padding never leaks.
    tmp_ref[...] = jnp.dot(logit_ref[...], btp_ref[...],
                           preferred_element_type=jnp.float32)                 # (NC*H, OW)

    # 5) H-axis bilinear interpolation per class + running argmax; single
    #    lane-dense int32 output store at the end (strict '>' keeps the first
    #    maximal class like torch.argmax).
    a_blk = a_ref[...]                                                         # (128, H): this half's output rows
    best_val = None
    best_idx = None
    for c in range(nc):
        up_c = jnp.dot(a_blk, tmp_ref[c * h_img:(c + 1) * h_img, :],
                       preferred_element_type=jnp.float32)                     # (128, OW)
        if c == 0:
            best_val = up_c
            best_idx = jnp.zeros(up_c.shape, jnp.int32)
        else:
            better = up_c > best_val
            best_val = jnp.where(better, up_c, best_val)
            best_idx = jnp.where(better, jnp.int32(c), best_idx)
    o_ref[...] = best_idx + 1                                                  # classes are 1-based


def fused_tta_seg(x2, params):
    """x2: (C*H, W_pad) normalized-layout image; returns (OH, OW) int32 mask."""
    nch = params["w2big"].shape[0]           # NC * H
    wpad = params["btp"].shape[0]            # padded W (128)
    oh, h_img = params["a_mat"].shape        # (256, 16)
    ow = params["btp"].shape[1]              # 256
    assert x2.shape == (params["meanc"].shape[0], wpad)
    assert oh % 2 == 0 and (oh // 2) % 8 == 0 and ow % 128 == 0
    half = oh // 2                           # 128 output rows per grid step / TensorCore

    return pl.pallas_call(
        _fused_kernel,
        out_shape=jax.ShapeDtypeStruct((oh, ow), jnp.int32),
        grid_spec=pltpu.PrefetchScalarGridSpec(
            num_scalar_prefetch=0,
            grid=(oh // half,),                                        # (2,)
            in_specs=[
                pl.BlockSpec(x2.shape, lambda r: (0, 0)),              # image  (C*H, Wp)
                pl.BlockSpec(params["meanc"].shape, lambda r: (0, 0)),
                pl.BlockSpec(params["invstdc"].shape, lambda r: (0, 0)),
                pl.BlockSpec(params["w1big"].shape, lambda r: (0, 0)),
                pl.BlockSpec(params["b1col"].shape, lambda r: (0, 0)),
                pl.BlockSpec(params["w2big"].shape, lambda r: (0, 0)),
                pl.BlockSpec(params["b2col"].shape, lambda r: (0, 0)),
                pl.BlockSpec((half, h_img), lambda r: (r, 0)),         # A rows for this half
                pl.BlockSpec(params["btp"].shape, lambda r: (0, 0)),   # (Wp, OW)
            ],
            out_specs=pl.BlockSpec((half, ow), lambda r: (r, 0)),
            scratch_shapes=[
                pltpu.VMEM((nch, wpad), jnp.float32),   # logits / sqrt-probs (NC*H, Wp)
                pltpu.VMEM((nch, ow), jnp.float32),     # W-interpolated (NC*H, OW)
            ],
        ),
        compiler_params=pltpu.CompilerParams(dimension_semantics=("parallel",)),
    )(x2, params["meanc"], params["invstdc"], params["w1big"], params["b1col"],
      params["w2big"], params["b2col"], params["a_mat"], params["btp"])


# ----------------------------------------------------------------------------
# Wrapper: mirrors mymodel.forward (batch of 1, NHWC float32 input in [0,255))
# ----------------------------------------------------------------------------
def _prep_input(x_nhwc, w_pad):
    # NHWC -> (C*H, W_pad): rows = c*H + h, lanes = w (zero-padded to 128).
    # Single tiny layout op on a 4 KB tensor; fused away under jit.
    n, h, w, c = x_nhwc.shape
    xt = jnp.transpose(x_nhwc[0], (2, 0, 1))                    # (C, H, W)
    xt = jnp.pad(xt, ((0, 0), (0, 0), (0, w_pad - w)))          # (C, H, Wp)
    return xt.reshape(c * h, w_pad).astype(jnp.float32)


def mymodel_forward(x_nhwc, params):
    x2 = _prep_input(x_nhwc, params["btp"].shape[0])
    # note: torch.argmax yields int64; JAX default x64 is off, so int32 here.
    return fused_tta_seg(x2, params)                            # (256, 256) int32


def make_params(in_ch=4, hidden=32, num_classes=8, in_hw=16, out_hw=256, w_pad=128):
    key = jax.random.PRNGKey(0)
    k1, k2, k3, k4 = jax.random.split(key, 4)
    # synthetic per-pixel head weights (stand-in for the HRNet backbone)
    w1 = jax.random.normal(k1, (in_ch, hidden), jnp.float32) * 0.3
    b1 = jax.random.normal(k2, (hidden,), jnp.float32) * 0.1
    w2 = jax.random.normal(k3, (hidden, num_classes), jnp.float32) * 0.3
    b2 = jax.random.normal(k4, (num_classes,), jnp.float32) * 0.1

    mean = jnp.asarray([0.485, 0.456, 0.406, 0.5], jnp.float32) * 255.0
    invstd = 1.0 / (jnp.asarray([0.229, 0.224, 0.225, 0.25], jnp.float32) * 255.0)

    eye = jnp.eye(in_hw, dtype=jnp.float32)
    a_np = bilinear_matrix(out_hw, in_hw)                        # (256, 16)
    btp_np = np.zeros((w_pad, out_hw), np.float32)               # zero rows kill W padding
    btp_np[:in_hw, :] = a_np.T

    return dict(
        meanc=jnp.repeat(mean, in_hw).reshape(in_ch * in_hw, 1),
        invstdc=jnp.repeat(invstd, in_hw).reshape(in_ch * in_hw, 1),
        w1big=jnp.kron(w1.T, eye),                               # (hidden*H, C*H)
        b1col=jnp.repeat(b1, in_hw).reshape(hidden * in_hw, 1),
        w2big=jnp.kron(w2.T, eye),                               # (NC*H, hidden*H)
        b2col=jnp.repeat(b2, in_hw).reshape(num_classes * in_hw, 1),
        a_mat=jnp.asarray(a_np),                                 # (256, 16)
        btp=jnp.asarray(btp_np),                                 # (128, 256)
    )


if __name__ == "__main__":
    H = W = 16
    C = 4
    NUM_CLASSES = 8

    params = make_params(in_ch=C, hidden=32, num_classes=NUM_CLASSES,
                         in_hw=H, out_hw=256, w_pad=128)

    # deterministic "image" input: NHWC float32 in [0, 255), batch of 1
    # (mymodel.forward squeezes the batch dim, so it only supports batch=1)
    x = jax.random.uniform(jax.random.PRNGKey(0), (1, H, W, C),
                           dtype=jnp.float32, minval=0.0, maxval=255.0)

    fwd = jax.jit(mymodel_forward)
    pred = jax.block_until_ready(fwd(x, params))

    assert pred.shape == (256, 256)
    assert pred.dtype == jnp.int32
    assert int(pred.min()) >= 1 and int(pred.max()) <= NUM_CLASSES
    print("KERNEL_OK")
</pallas_src>

<mosaic_0001>
module attributes {stable_mosaic.version = 11 : i64} {
  func.func @_fused_kernel(%arg0: i32, %arg1: memref<64x128xf32, #tpu.memory_space<vmem>>, %arg2: memref<64x1xf32, #tpu.memory_space<vmem>>, %arg3: memref<64x1xf32, #tpu.memory_space<vmem>>, %arg4: memref<512x64xf32, #tpu.memory_space<vmem>>, %arg5: memref<512x1xf32, #tpu.memory_space<vmem>>, %arg6: memref<128x512xf32, #tpu.memory_space<vmem>>, %arg7: memref<128x1xf32, #tpu.memory_space<vmem>>, %arg8: memref<128x16xf32, #tpu.memory_space<vmem>>, %arg9: memref<128x256xf32, #tpu.memory_space<vmem>>, %arg10: memref<128x256xi32, #tpu.memory_space<vmem>>, %arg11: memref<128x128xf32, #tpu.memory_space<vmem>>, %arg12: memref<128x256xf32, #tpu.memory_space<vmem>>) attributes {dimension_semantics = [#tpu.dimension_semantics<parallel>], iteration_bounds = array<i64: 2>, scalar_prefetch = 0 : i64, scratch_operands = 2 : i64, tpu.core_type = #tpu.core_type<tc>, window_params = [{pipeline_mode = #tpu.pipeline_mode<synchronous>, transform_indices = @transform_0, window_bounds = array<i64: 64, 128>}, {pipeline_mode = #tpu.pipeline_mode<synchronous>, transform_indices = @transform_1, window_bounds = array<i64: 64, 1>}, {pipeline_mode = #tpu.pipeline_mode<synchronous>, transform_indices = @transform_2, window_bounds = array<i64: 64, 1>}, {pipeline_mode = #tpu.pipeline_mode<synchronous>, transform_indices = @transform_3, window_bounds = array<i64: 512, 64>}, {pipeline_mode = #tpu.pipeline_mode<synchronous>, transform_indices = @transform_4, window_bounds = array<i64: 512, 1>}, {pipeline_mode = #tpu.pipeline_mode<synchronous>, transform_indices = @transform_5, window_bounds = array<i64: 128, 512>}, {pipeline_mode = #tpu.pipeline_mode<synchronous>, transform_indices = @transform_6, window_bounds = array<i64: 128, 1>}, {transform_indices = @transform_7, window_bounds = array<i64: 128, 16>}, {pipeline_mode = #tpu.pipeline_mode<synchronous>, transform_indices = @transform_8, window_bounds = array<i64: 128, 256>}, {transform_indices = @transform_9, window_bounds = array<i64: 128, 256>}]} {
    %c0 = arith.constant 0 : index
    %c0_0 = arith.constant 0 : index
    %0 = vector.load %arg1[%c0, %c0_0] : memref<64x128xf32, #tpu.memory_space<vmem>>, vector<64x128xf32>
    %c0_1 = arith.constant 0 : index
    %c0_2 = arith.constant 0 : index
    %1 = vector.load %arg2[%c0_1, %c0_2] : memref<64x1xf32, #tpu.memory_space<vmem>>, vector<64x1xf32>
    %2 = vector.broadcast %1 : vector<64x1xf32> to vector<64x128xf32>
    %3 = arith.subf %0, %2 : vector<64x128xf32>
    %c0_3 = arith.constant 0 : index
    %c0_4 = arith.constant 0 : index
    %4 = vector.load %arg3[%c0_3, %c0_4] : memref<64x1xf32, #tpu.memory_space<vmem>>, vector<64x1xf32>
    %5 = vector.broadcast %4 : vector<64x1xf32> to vector<64x128xf32>
    %6 = arith.mulf %3, %5 : vector<64x128xf32>
    %c0_5 = arith.constant 0 : index
    %c0_6 = arith.constant 0 : index
    %7 = vector.load %arg4[%c0_5, %c0_6] : memref<512x64xf32, #tpu.memory_space<vmem>>, vector<512x64xf32>
    %cst = arith.constant dense<0.000000e+00> : vector<512x128xf32>
    %8 = tpu.matmul %7, %6, %cst {dimension_numbers = #tpu.dot_dimension_numbers<[1], [0], [0], [1], [0, 0, 1, 1], [], []>} : vector<512x64xf32>, vector<64x128xf32>, vector<512x128xf32> -> vector<512x128xf32>
    %c0_7 = arith.constant 0 : index
    %c0_8 = arith.constant 0 : index
    %9 = vector.load %arg5[%c0_7, %c0_8] : memref<512x1xf32, #tpu.memory_space<vmem>>, vector<512x1xf32>
    %10 = vector.broadcast %9 : vector<512x1xf32> to vector<512x128xf32>
    %11 = arith.addf %8, %10 : vector<512x128xf32>
    %cst_9 = arith.constant 0.000000e+00 : f32
    %12 = vector.broadcast %cst_9 : f32 to vector<512x128xf32>
    %13 = arith.maximumf %11, %12 : vector<512x128xf32>
    %c0_10 = arith.constant 0 : index
    %c0_11 = arith.constant 0 : index
    %14 = vector.load %arg6[%c0_10, %c0_11] : memref<128x512xf32, #tpu.memory_space<vmem>>, vector<128x512xf32>
    %cst_12 = arith.constant dense<0.000000e+00> : vector<128x128xf32>
    %15 = tpu.matmul %14, %13, %cst_12 {dimension_numbers = #tpu.dot_dimension_numbers<[1], [0], [0], [1], [0, 0, 1, 1], [], []>} : vector<128x512xf32>, vector<512x128xf32>, vector<128x128xf32> -> vector<128x128xf32>
    %c0_13 = arith.constant 0 : index
    %c0_14 = arith.constant 0 : index
    %16 = vector.load %arg7[%c0_13, %c0_14] : memref<128x1xf32, #tpu.memory_space<vmem>>, vector<128x1xf32>
    %17 = vector.broadcast %16 : vector<128x1xf32> to vector<128x128xf32>
    %18 = arith.addf %15, %17 : vector<128x128xf32>
    %c0_15 = arith.constant 0 : index
    %c0_16 = arith.constant 0 : index
    %19 = vector.load %arg11[%c0_15, %c0_16] : memref<128x128xf32, #tpu.memory_space<vmem>>, vector<128x128xf32>
    tpu.vector_store %arg11[%c0_15, %c0_16], %18 {strides = array<i32>} : memref<128x128xf32, #tpu.memory_space<vmem>>, vector<128x128xf32>,
    %c0_17 = arith.constant 0 : index
    %c0_18 = arith.constant 0 : index
    %20 = vector.load %arg11[%c0_17, %c0_18] : memref<128x128xf32, #tpu.memory_space<vmem>>, vector<16x128xf32>
    %c16 = arith.constant 16 : index
    %c0_19 = arith.constant 0 : index
    %21 = vector.load %arg11[%c16, %c0_19] : memref<128x128xf32, #tpu.memory_space<vmem>>, vector<16x128xf32>
    %22 = arith.maximumf %20, %21 : vector<16x128xf32>
    %c32 = arith.constant 32 : index
    %c0_20 = arith.constant 0 : index
    %23 = vector.load %arg11[%c32, %c0_20] : memref<128x128xf32, #tpu.memory_space<vmem>>, vector<16x128xf32>
    %24 = arith.maximumf %22, %23 : vector<16x128xf32>
    %c48 = arith.constant 48 : index
    %c0_21 = arith.constant 0 : index
    %25 = vector.load %arg11[%c48, %c0_21] : memref<128x128xf32, #tpu.memory_space<vmem>>, vector<16x128xf32>
    %26 = arith.maximumf %24, %25 : vector<16x128xf32>
    %c64 = arith.constant 64 : index
    %c0_22 = arith.constant 0 : index
    %27 = vector.load %arg11[%c64, %c0_22] : memref<128x128xf32, #tpu.memory_space<vmem>>, vector<16x128xf32>
    %28 = arith.maximumf %26, %27 : vector<16x128xf32>
    %c80 = arith.constant 80 : index
    %c0_23 = arith.constant 0 : index
    %29 = vector.load %arg11[%c80, %c0_23] : memref<128x128xf32, #tpu.memory_space<vmem>>, vector<16x128xf32>
    %30 = arith.maximumf %28, %29 : vector<16x128xf32>
    %c96 = arith.constant 96 : index
    %c0_24 = arith.constant 0 : index
    %31 = vector.load %arg11[%c96, %c0_24] : memref<128x128xf32, #tpu.memory_space<vmem>>, vector<16x128xf32>
    %32 = arith.maximumf %30, %31 : vector<16x128xf32>
    %c112 = arith.constant 112 : index
    %c0_25 = arith.constant 0 : index
    %33 = vector.load %arg11[%c112, %c0_25] : memref<128x128xf32, #tpu.memory_space<vmem>>, vector<16x128xf32>
    %34 = arith.maximumf %32, %33 : vector<16x128xf32>
    %cst_26 = arith.constant 0.000000e+00 : f32
    %35 = vector.broadcast %cst_26 : f32 to vector<16x128xf32>
    %c0_27 = arith.constant 0 : index
    %c0_28 = arith.constant 0 : index
    %36 = vector.load %arg11[%c0_27, %c0_28] : memref<128x128xf32, #tpu.memory_space<vmem>>, vector<16x128xf32>
    %37 = arith.subf %36, %34 : vector<16x128xf32>
    %38 = math.exp %37 : vector<16x128xf32>
    %c0_29 = arith.constant 0 : index
    %c0_30 = arith.constant 0 : index
    %39 = vector.load %arg11[%c0_29, %c0_30] : memref<128x128xf32, #tpu.memory_space<vmem>>, vector<16x128xf32>
    tpu.vector_store %arg11[%c0_29, %c0_30], %38 {strides = array<i32>} : memref<128x128xf32, #tpu.memory_space<vmem>>, vector<16x128xf32>,
    %40 = arith.addf %35, %38 : vector<16x128xf32>
    %c16_31 = arith.constant 16 : index
    %c0_32 = arith.constant 0 : index
    %41 = vector.load %arg11[%c16_31, %c0_32] : memref<128x128xf32, #tpu.memory_space<vmem>>, vector<16x128xf32>
    %42 = arith.subf %41, %34 : vector<16x128xf32>
    %43 = math.exp %42 : vector<16x128xf32>
    %c16_33 = arith.constant 16 : index
    %c0_34 = arith.constant 0 : index
    %44 = vector.load %arg11[%c16_33, %c0_34] : memref<128x128xf32, #tpu.memory_space<vmem>>, vector<16x128xf32>
    tpu.vector_store %arg11[%c16_33, %c0_34], %43 {strides = array<i32>} : memref<128x128xf32, #tpu.memory_space<vmem>>, vector<16x128xf32>,
    %45 = arith.addf %40, %43 : vector<16x128xf32>
    %c32_35 = arith.constant 32 : index
    %c0_36 = arith.constant 0 : index
    %46 = vector.load %arg11[%c32_35, %c0_36] : memref<128x128xf32, #tpu.memory_space<vmem>>, vector<16x128xf32>
    %47 = arith.subf %46, %34 : vector<16x128xf32>
    %48 = math.exp %47 : vector<16x128xf32>
    %c32_37 = arith.constant 32 : index
    %c0_38 = arith.constant 0 : index
    %49 = vector.load %arg11[%c32_37, %c0_38] : memref<128x128xf32, #tpu.memory_space<vmem>>, vector<16x128xf32>
    tpu.vector_store %arg11[%c32_37, %c0_38], %48 {strides = array<i32>} : memref<128x128xf32, #tpu.memory_space<vmem>>, vector<16x128xf32>,
    %50 = arith.addf %45, %48 : vector<16x128xf32>
    %c48_39 = arith.constant 48 : index
    %c0_40 = arith.constant 0 : index
    %51 = vector.load %arg11[%c48_39, %c0_40] : memref<128x128xf32, #tpu.memory_space<vmem>>, vector<16x128xf32>
    %52 = arith.subf %51, %34 : vector<16x128xf32>
    %53 = math.exp %52 : vector<16x128xf32>
    %c48_41 = arith.constant 48 : index
    %c0_42 = arith.constant 0 : index
    %54 = vector.load %arg11[%c48_41, %c0_42] : memref<128x128xf32, #tpu.memory_space<vmem>>, vector<16x128xf32>
    tpu.vector_store %arg11[%c48_41, %c0_42], %53 {strides = array<i32>} : memref<128x128xf32, #tpu.memory_space<vmem>>, vector<16x128xf32>,
    %55 = arith.addf %50, %53 : vector<16x128xf32>
    %c64_43 = arith.constant 64 : index
    %c0_44 = arith.constant 0 : index
    %56 = vector.load %arg11[%c64_43, %c0_44] : memref<128x128xf32, #tpu.memory_space<vmem>>, vector<16x128xf32>
    %57 = arith.subf %56, %34 : vector<16x128xf32>
    %58 = math.exp %57 : vector<16x128xf32>
    %c64_45 = arith.constant 64 : index
    %c0_46 = arith.constant 0 : index
    %59 = vector.load %arg11[%c64_45, %c0_46] : memref<128x128xf32, #tpu.memory_space<vmem>>, vector<16x128xf32>
    tpu.vector_store %arg11[%c64_45, %c0_46], %58 {strides = array<i32>} : memref<128x128xf32, #tpu.memory_space<vmem>>, vector<16x128xf32>,
    %60 = arith.addf %55, %58 : vector<16x128xf32>
    %c80_47 = arith.constant 80 : index
    %c0_48 = arith.constant 0 : index
    %61 = vector.load %arg11[%c80_47, %c0_48] : memref<128x128xf32, #tpu.memory_space<vmem>>, vector<16x128xf32>
    %62 = arith.subf %61, %34 : vector<16x128xf32>
    %63 = math.exp %62 : vector<16x128xf32>
    %c80_49 = arith.constant 80 : index
    %c0_50 = arith.constant 0 : index
    %64 = vector.load %arg11[%c80_49, %c0_50] : memref<128x128xf32, #tpu.memory_space<vmem>>, vector<16x128xf32>
    tpu.vector_store %arg11[%c80_49, %c0_50], %63 {strides = array<i32>} : memref<128x128xf32, #tpu.memory_space<vmem>>, vector<16x128xf32>,
    %65 = arith.addf %60, %63 : vector<16x128xf32>
    %c96_51 = arith.constant 96 : index
    %c0_52 = arith.constant 0 : index
    %66 = vector.load %arg11[%c96_51, %c0_52] : memref<128x128xf32, #tpu.memory_space<vmem>>, vector<16x128xf32>
    %67 = arith.subf %66, %34 : vector<16x128xf32>
    %68 = math.exp %67 : vector<16x128xf32>
    %c96_53 = arith.constant 96 : index
    %c0_54 = arith.constant 0 : index
    %69 = vector.load %arg11[%c96_53, %c0_54] : memref<128x128xf32, #tpu.memory_space<vmem>>, vector<16x128xf32>
    tpu.vector_store %arg11[%c96_53, %c0_54], %68 {strides = array<i32>} : memref<128x128xf32, #tpu.memory_space<vmem>>, vector<16x128xf32>,
    %70 = arith.addf %65, %68 : vector<16x128xf32>
    %c112_55 = arith.constant 112 : index
    %c0_56 = arith.constant 0 : index
    %71 = vector.load %arg11[%c112_55, %c0_56] : memref<128x128xf32, #tpu.memory_space<vmem>>, vector<16x128xf32>
    %72 = arith.subf %71, %34 : vector<16x128xf32>
    %73 = math.exp %72 : vector<16x128xf32>
    %c112_57 = arith.constant 112 : index
    %c0_58 = arith.constant 0 : index
    %74 = vector.load %arg11[%c112_57, %c0_58] : memref<128x128xf32, #tpu.memory_space<vmem>>, vector<16x128xf32>
    tpu.vector_store %arg11[%c112_57, %c0_58], %73 {strides = array<i32>} : memref<128x128xf32, #tpu.memory_space<vmem>>, vector<16x128xf32>,
    %75 = arith.addf %70, %73 : vector<16x128xf32>
    %cst_59 = arith.constant 1.000000e+00 : f32
    %76 = vector.broadcast %cst_59 : f32 to vector<16x128xf32>
    %77 = arith.divf %76, %75 : vector<16x128xf32>
    %c0_60 = arith.constant 0 : index
    %c0_61 = arith.constant 0 : index
    %78 = vector.load %arg11[%c0_60, %c0_61] : memref<128x128xf32, #tpu.memory_space<vmem>>, vector<16x128xf32>
    %79 = arith.mulf %78, %77 : vector<16x128xf32>
    %80 = math.sqrt %79 : vector<16x128xf32>
    %c0_62 = arith.constant 0 : index
    %c0_63 = arith.constant 0 : index
    %81 = vector.load %arg11[%c0_62, %c0_63] : memref<128x128xf32, #tpu.memory_space<vmem>>, vector<16x128xf32>
    tpu.vector_store %arg11[%c0_62, %c0_63], %80 {strides = array<i32>} : memref<128x128xf32, #tpu.memory_space<vmem>>, vector<16x128xf32>,
    %c16_64 = arith.constant 16 : index
    %c0_65 = arith.constant 0 : index
    %82 = vector.load %arg11[%c16_64, %c0_65] : memref<128x128xf32, #tpu.memory_space<vmem>>, vector<16x128xf32>
    %83 = arith.mulf %82, %77 : vector<16x128xf32>
    %84 = math.sqrt %83 : vector<16x128xf32>
    %c16_66 = arith.constant 16 : index
    %c0_67 = arith.constant 0 : index
    %85 = vector.load %arg11[%c16_66, %c0_67] : memref<128x128xf32, #tpu.memory_space<vmem>>, vector<16x128xf32>
    tpu.vector_store %arg11[%c16_66, %c0_67], %84 {strides = array<i32>} : memref<128x128xf32, #tpu.memory_space<vmem>>, vector<16x128xf32>,
    %c32_68 = arith.constant 32 : index
    %c0_69 = arith.constant 0 : index
    %86 = vector.load %arg11[%c32_68, %c0_69] : memref<128x128xf32, #tpu.memory_space<vmem>>, vector<16x128xf32>
    %87 = arith.mulf %86, %77 : vector<16x128xf32>
    %88 = math.sqrt %87 : vector<16x128xf32>
    %c32_70 = arith.constant 32 : index
    %c0_71 = arith.constant 0 : index
    %89 = vector.load %arg11[%c32_70, %c0_71] : memref<128x128xf32, #tpu.memory_space<vmem>>, vector<16x128xf32>
    tpu.vector_store %arg11[%c32_70, %c0_71], %88 {strides = array<i32>} : memref<128x128xf32, #tpu.memory_space<vmem>>, vector<16x128xf32>,
    %c48_72 = arith.constant 48 : index
    %c0_73 = arith.constant 0 : index
    %90 = vector.load %arg11[%c48_72, %c0_73] : memref<128x128xf32, #tpu.memory_space<vmem>>, vector<16x128xf32>
    %91 = arith.mulf %90, %77 : vector<16x128xf32>
    %92 = math.sqrt %91 : vector<16x128xf32>
    %c48_74 = arith.constant 48 : index
    %c0_75 = arith.constant 0 : index
    %93 = vector.load %arg11[%c48_74, %c0_75] : memref<128x128xf32, #tpu.memory_space<vmem>>, vector<16x128xf32>
    tpu.vector_store %arg11[%c48_74, %c0_75], %92 {strides = array<i32>} : memref<128x128xf32, #tpu.memory_space<vmem>>, vector<16x128xf32>,
    %c64_76 = arith.constant 64 : index
    %c0_77 = arith.constant 0 : index
    %94 = vector.load %arg11[%c64_76, %c0_77] : memref<128x128xf32, #tpu.memory_space<vmem>>, vector<16x128xf32>
    %95 = arith.mulf %94, %77 : vector<16x128xf32>
    %96 = math.sqrt %95 : vector<16x128xf32>
    %c64_78 = arith.constant 64 : index
    %c0_79 = arith.constant 0 : index
    %97 = vector.load %arg11[%c64_78, %c0_79] : memref<128x128xf32, #tpu.memory_space<vmem>>, vector<16x128xf32>
    tpu.vector_store %arg11[%c64_78, %c0_79], %96 {strides = array<i32>} : memref<128x128xf32, #tpu.memory_space<vmem>>, vector<16x128xf32>,
    %c80_80 = arith.constant 80 : index
    %c0_81 = arith.constant 0 : index
    %98 = vector.load %arg11[%c80_80, %c0_81] : memref<128x128xf32, #tpu.memory_space<vmem>>, vector<16x128xf32>
    %99 = arith.mulf %98, %77 : vector<16x128xf32>
    %100 = math.sqrt %99 : vector<16x128xf32>
    %c80_82 = arith.constant 80 : index
    %c0_83 = arith.constant 0 : index
    %101 = vector.load %arg11[%c80_82, %c0_83] : memref<128x128xf32, #tpu.memory_space<vmem>>, vector<16x128xf32>
    tpu.vector_store %arg11[%c80_82, %c0_83], %100 {strides = array<i32>} : memref<128x128xf32, #tpu.memory_space<vmem>>, vector<16x128xf32>,
    %c96_84 = arith.constant 96 : index
    %c0_85 = arith.constant 0 : index
    %102 = vector.load %arg11[%c96_84, %c0_85] : memref<128x128xf32, #tpu.memory_space<vmem>>, vector<16x128xf32>
    %103 = arith.mulf %102, %77 : vector<16x128xf32>
    %104 = math.sqrt %103 : vector<16x128xf32>
    %c96_86 = arith.constant 96 : index
    %c0_87 = arith.constant 0 : index
    %105 = vector.load %arg11[%c96_86, %c0_87] : memref<128x128xf32, #tpu.memory_space<vmem>>, vector<16x128xf32>
    tpu.vector_store %arg11[%c96_86, %c0_87], %104 {strides = array<i32>} : memref<128x128xf32, #tpu.memory_space<vmem>>, vector<16x128xf32>,
    %c112_88 = arith.constant 112 : index
    %c0_89 = arith.constant 0 : index
    %106 = vector.load %arg11[%c112_88, %c0_89] : memref<128x128xf32, #tpu.memory_space<vmem>>, vector<16x128xf32>
    %107 = arith.mulf %106, %77 : vector<16x128xf32>
    %108 = math.sqrt %107 : vector<16x128xf32>
    %c112_90 = arith.constant 112 : index
    %c0_91 = arith.constant 0 : index
    %109 = vector.load %arg11[%c112_90, %c0_91] : memref<128x128xf32, #tpu.memory_space<vmem>>, vector<16x128xf32>
    tpu.vector_store %arg11[%c112_90, %c0_91], %108 {strides = array<i32>} : memref<128x128xf32, #tpu.memory_space<vmem>>, vector<16x128xf32>,
    %c0_92 = arith.constant 0 : index
    %c0_93 = arith.constant 0 : index
    %110 = vector.load %arg11[%c0_92, %c0_93] : memref<128x128xf32, #tpu.memory_space<vmem>>, vector<128x128xf32>
    %c0_94 = arith.constant 0 : index
    %c0_95 = arith.constant 0 : index
    %111 = vector.load %arg9[%c0_94, %c0_95] : memref<128x256xf32, #tpu.memory_space<vmem>>, vector<128x256xf32>
    %cst_96 = arith.constant dense<0.000000e+00> : vector<128x256xf32>
    %112 = tpu.matmul %110, %111, %cst_96 {dimension_numbers = #tpu.dot_dimension_numbers<[1], [0], [0], [1], [0, 0, 1, 1], [], []>} : vector<128x128xf32>, vector<128x256xf32>, vector<128x256xf32> -> vector<128x256xf32>
    %c0_97 = arith.constant 0 : index
    %c0_98 = arith.constant 0 : index
    %113 = vector.load %arg12[%c0_97, %c0_98] : memref<128x256xf32, #tpu.memory_space<vmem>>, vector<128x256xf32>
    tpu.vector_store %arg12[%c0_97, %c0_98], %112 {strides = array<i32>} : memref<128x256xf32, #tpu.memory_space<vmem>>, vector<128x256xf32>,
    %c0_99 = arith.constant 0 : index
    %c0_100 = arith.constant 0 : index
    %114 = vector.load %arg8[%c0_99, %c0_100] : memref<128x16xf32, #tpu.memory_space<vmem>>, vector<128x16xf32>
    %c0_101 = arith.constant 0 : index
    %c0_102 = arith.constant 0 : index
    %115 = vector.load %arg12[%c0_101, %c0_102] : memref<128x256xf32, #tpu.memory_space<vmem>>, vector<16x256xf32>
    %cst_103 = arith.constant dense<0.000000e+00> : vector<128x256xf32>
    %116 = tpu.matmul %114, %115, %cst_103 {dimension_numbers = #tpu.dot_dimension_numbers<[1], [0], [0], [1], [0, 0, 1, 1], [], []>} : vector<128x16xf32>, vector<16x256xf32>, vector<128x256xf32> -> vector<128x256xf32>
    %c0_i32 = arith.constant 0 : i32
    %117 = vector.broadcast %c0_i32 : i32 to vector<128x256xi32>
    %c16_104 = arith.constant 16 : index
    %c0_105 = arith.constant 0 : index
    %118 = vector.load %arg12[%c16_104, %c0_105] : memref<128x256xf32, #tpu.memory_space<vmem>>, vector<16x256xf32>
    %cst_106 = arith.constant dense<0.000000e+00> : vector<128x256xf32>
    %119 = tpu.matmul %114, %118, %cst_106 {dimension_numbers = #tpu.dot_dimension_numbers<[1], [0], [0], [1], [0, 0, 1, 1], [], []>} : vector<128x16xf32>, vector<16x256xf32>, vector<128x256xf32> -> vector<128x256xf32>
    %120 = arith.cmpf ogt, %119, %116 : vector<128x256xf32>
    %121 = arith.select %120, %119, %116 : vector<128x256xi1>, vector<128x256xf32>
    %c1_i32 = arith.constant 1 : i32
    %122 = vector.broadcast %c1_i32 : i32 to vector<128x256xi32>
    %123 = arith.select %120, %122, %117 : vector<128x256xi1>, vector<128x256xi32>
    %c32_107 = arith.constant 32 : index
    %c0_108 = arith.constant 0 : index
    %124 = vector.load %arg12[%c32_107, %c0_108] : memref<128x256xf32, #tpu.memory_space<vmem>>, vector<16x256xf32>
    %cst_109 = arith.constant dense<0.000000e+00> : vector<128x256xf32>
    %125 = tpu.matmul %114, %124, %cst_109 {dimension_numbers = #tpu.dot_dimension_numbers<[1], [0], [0], [1], [0, 0, 1, 1], [], []>} : vector<128x16xf32>, vector<16x256xf32>, vector<128x256xf32> -> vector<128x256xf32>
    %126 = arith.cmpf ogt, %125, %121 : vector<128x256xf32>
    %127 = arith.select %126, %125, %121 : vector<128x256xi1>, vector<128x256xf32>
    %c2_i32 = arith.constant 2 : i32
    %128 = vector.broadcast %c2_i32 : i32 to vector<128x256xi32>
    %129 = arith.select %126, %128, %123 : vector<128x256xi1>, vector<128x256xi32>
    %c48_110 = arith.constant 48 : index
    %c0_111 = arith.constant 0 : index
    %130 = vector.load %arg12[%c48_110, %c0_111] : memref<128x256xf32, #tpu.memory_space<vmem>>, vector<16x256xf32>
    %cst_112 = arith.constant dense<0.000000e+00> : vector<128x256xf32>
    %131 = tpu.matmul %114, %130, %cst_112 {dimension_numbers = #tpu.dot_dimension_numbers<[1], [0], [0], [1], [0, 0, 1, 1], [], []>} : vector<128x16xf32>, vector<16x256xf32>, vector<128x256xf32> -> vector<128x256xf32>
    %132 = arith.cmpf ogt, %131, %127 : vector<128x256xf32>
    %133 = arith.select %132, %131, %127 : vector<128x256xi1>, vector<128x256xf32>
    %c3_i32 = arith.constant 3 : i32
    %134 = vector.broadcast %c3_i32 : i32 to vector<128x256xi32>
    %135 = arith.select %132, %134, %129 : vector<128x256xi1>, vector<128x256xi32>
    %c64_113 = arith.constant 64 : index
    %c0_114 = arith.constant 0 : index
    %136 = vector.load %arg12[%c64_113, %c0_114] : memref<128x256xf32, #tpu.memory_space<vmem>>, vector<16x256xf32>
    %cst_115 = arith.constant dense<0.000000e+00> : vector<128x256xf32>
    %137 = tpu.matmul %114, %136, %cst_115 {dimension_numbers = #tpu.dot_dimension_numbers<[1], [0], [0], [1], [0, 0, 1, 1], [], []>} : vector<128x16xf32>, vector<16x256xf32>, vector<128x256xf32> -> vector<128x256xf32>
    %138 = arith.cmpf ogt, %137, %133 : vector<128x256xf32>
    %139 = arith.select %138, %137, %133 : vector<128x256xi1>, vector<128x256xf32>
    %c4_i32 = arith.constant 4 : i32
    %140 = vector.broadcast %c4_i32 : i32 to vector<128x256xi32>
    %141 = arith.select %138, %140, %135 : vector<128x256xi1>, vector<128x256xi32>
    %c80_116 = arith.constant 80 : index
    %c0_117 = arith.constant 0 : index
    %142 = vector.load %arg12[%c80_116, %c0_117] : memref<128x256xf32, #tpu.memory_space<vmem>>, vector<16x256xf32>
    %cst_118 = arith.constant dense<0.000000e+00> : vector<128x256xf32>
    %143 = tpu.matmul %114, %142, %cst_118 {dimension_numbers = #tpu.dot_dimension_numbers<[1], [0], [0], [1], [0, 0, 1, 1], [], []>} : vector<128x16xf32>, vector<16x256xf32>, vector<128x256xf32> -> vector<128x256xf32>
    %144 = arith.cmpf ogt, %143, %139 : vector<128x256xf32>
    %145 = arith.select %144, %143, %139 : vector<128x256xi1>, vector<128x256xf32>
    %c5_i32 = arith.constant 5 : i32
    %146 = vector.broadcast %c5_i32 : i32 to vector<128x256xi32>
    %147 = arith.select %144, %146, %141 : vector<128x256xi1>, vector<128x256xi32>
    %c96_119 = arith.constant 96 : index
    %c0_120 = arith.constant 0 : index
    %148 = vector.load %arg12[%c96_119, %c0_120] : memref<128x256xf32, #tpu.memory_space<vmem>>, vector<16x256xf32>
    %cst_121 = arith.constant dense<0.000000e+00> : vector<128x256xf32>
    %149 = tpu.matmul %114, %148, %cst_121 {dimension_numbers = #tpu.dot_dimension_numbers<[1], [0], [0], [1], [0, 0, 1, 1], [], []>} : vector<128x16xf32>, vector<16x256xf32>, vector<128x256xf32> -> vector<128x256xf32>
    %150 = arith.cmpf ogt, %149, %145 : vector<128x256xf32>
    %151 = arith.select %150, %149, %145 : vector<128x256xi1>, vector<128x256xf32>
    %c6_i32 = arith.constant 6 : i32
    %152 = vector.broadcast %c6_i32 : i32 to vector<128x256xi32>
    %153 = arith.select %150, %152, %147 : vector<128x256xi1>, vector<128x256xi32>
    %c112_122 = arith.constant 112 : index
    %c0_123 = arith.constant 0 : index
    %154 = vector.load %arg12[%c112_122, %c0_123] : memref<128x256xf32, #tpu.memory_space<vmem>>, vector<16x256xf32>
    %cst_124 = arith.constant dense<0.000000e+00> : vector<128x256xf32>
    %155 = tpu.matmul %114, %154, %cst_124 {dimension_numbers = #tpu.dot_dimension_numbers<[1], [0], [0], [1], [0, 0, 1, 1], [], []>} : vector<128x16xf32>, vector<16x256xf32>, vector<128x256xf32> -> vector<128x256xf32>
    %156 = arith.cmpf ogt, %155, %151 : vector<128x256xf32>
    %c7_i32 = arith.constant 7 : i32
    %157 = vector.broadcast %c7_i32 : i32 to vector<128x256xi32>
    %158 = arith.select %156, %157, %153 : vector<128x256xi1>, vector<128x256xi32>
    %c1_i32_125 = arith.constant 1 : i32
    %159 = vector.broadcast %c1_i32_125 : i32 to vector<128x256xi32>
    %160 = arith.addi %158, %159 : vector<128x256xi32>
    %c0_126 = arith.constant 0 : index
    %c0_127 = arith.constant 0 : index
    %161 = vector.load %arg10[%c0_126, %c0_127] : memref<128x256xi32, #tpu.memory_space<vmem>>, vector<128x256xi32>
    tpu.vector_store %arg10[%c0_126, %c0_127], %160 {strides = array<i32>} : memref<128x256xi32, #tpu.memory_space<vmem>>, vector<128x256xi32>,
    return
  }
  func.func @transform_0(%arg0: i32) -> (i32, i32) {
    %c0_i32 = arith.constant 0 : i32
    %c0_i32_0 = arith.constant 0 : i32
    %c0_i32_1 = arith.constant 0 : i32
    return %c0_i32, %c0_i32_0 : i32, i32
  }
  func.func @transform_1(%arg0: i32) -> (i32, i32) {
    %c0_i32 = arith.constant 0 : i32
    %c0_i32_0 = arith.constant 0 : i32
    %c0_i32_1 = arith.constant 0 : i32
    return %c0_i32, %c0_i32_0 : i32, i32
  }
  func.func @transform_2(%arg0: i32) -> (i32, i32) {
    %c0_i32 = arith.constant 0 : i32
    %c0_i32_0 = arith.constant 0 : i32
    %c0_i32_1 = arith.constant 0 : i32
    return %c0_i32, %c0_i32_0 : i32, i32
  }
  func.func @transform_3(%arg0: i32) -> (i32, i32) {
    %c0_i32 = arith.constant 0 : i32
    %c0_i32_0 = arith.constant 0 : i32
    %c0_i32_1 = arith.constant 0 : i32
    return %c0_i32, %c0_i32_0 : i32, i32
  }
  func.func @transform_4(%arg0: i32) -> (i32, i32) {
    %c0_i32 = arith.constant 0 : i32
    %c0_i32_0 = arith.constant 0 : i32
    %c0_i32_1 = arith.constant 0 : i32
    return %c0_i32, %c0_i32_0 : i32, i32
  }
  func.func @transform_5(%arg0: i32) -> (i32, i32) {
    %c0_i32 = arith.constant 0 : i32
    %c0_i32_0 = arith.constant 0 : i32
    %c0_i32_1 = arith.constant 0 : i32
    return %c0_i32, %c0_i32_0 : i32, i32
  }
  func.func @transform_6(%arg0: i32) -> (i32, i32) {
    %c0_i32 = arith.constant 0 : i32
    %c0_i32_0 = arith.constant 0 : i32
    %c0_i32_1 = arith.constant 0 : i32
    return %c0_i32, %c0_i32_0 : i32, i32
  }
  func.func @transform_7(%arg0: i32) -> (i32, i32) {
    %c0_i32 = arith.constant 0 : i32
    %c0_i32_0 = arith.constant 0 : i32
    return %arg0, %c0_i32 : i32, i32
  }
  func.func @transform_8(%arg0: i32) -> (i32, i32) {
    %c0_i32 = arith.constant 0 : i32
    %c0_i32_0 = arith.constant 0 : i32
    %c0_i32_1 = arith.constant 0 : i32
    return %c0_i32, %c0_i32_0 : i32, i32
  }
  func.func @transform_9(%arg0: i32) -> (i32, i32) {
    %c0_i32 = arith.constant 0 : i32
    %c0_i32_0 = arith.constant 0 : i32
    return %arg0, %c0_i32 : i32, i32
  }
}

</mosaic_0001>

<bundles_post_ra>
// kernel: mymodel_forward.1
= control target key start
LH: loop header
LB: loop body
LE: loop exit
PB: predicated region body
PF: predicated region fallthrough
CT: control target
= control target key end

     0   :  { %14 = vsyncpa [#allocation5], 0  ;;  %s9087_s0 = inlined_call_operand.vmem [shape: f32[64,128], index: 0, kind: input, shape index: {}]   ;;  %s9088_s1 = inlined_call_operand.vmem [shape: f32[64,1], index: 1, kind: input, shape index: {}]   ;;  %s9089_s2 = inlined_call_operand.vmem [shape: f32[64,1], index: 2, kind: input, shape index: {}]   ;;  %s9090_s3 = inlined_call_operand.vmem [shape: f32[512,64], index: 3, kind: input, shape index: {}]   ;;  %s9091_s4 = inlined_call_operand.vmem [shape: f32[512,1], index: 4, kind: input, shape index: {}]   ;;  %s9092_s5 = inlined_call_operand.vmem [shape: f32[128,512], index: 5, kind: input, shape index: {}]   ;;  %s9093_s6 = inlined_call_operand.vmem [shape: f32[128,1], index: 6, kind: input, shape index: {}]   ;;  %s9094_s7 = inlined_call_operand.vmem [shape: f32[256,16], index: 7, kind: input, shape index: {}]   ;;  %s9095_s8 = inlined_call_operand.vmem [shape: f32[128,256], index: 8, kind: input, shape index: {}]   ;;  %s9096_s9 = inlined_call_operand.hbm [shape: s32[256,256], index: 9, kind: output, shape index: {}]  }
   0x1   :  { %16 = vsyncpa [#allocation5 + $0x1], 0  ;;  %s5502_s30 = smov 0   ;;  %s5504_s10 = smov 0  }
   0x2   :  { %s5506_s11 = smov 0   ;;  %s5508_s12 = smov 0  }
   0x3 LB: > { %s5523_s13 = sadd.s32 4294967295, %s5445_s12   ;;  %s4705_s14 = sadd.s32 4294967294, %s5445_s12   ;;  %s5445_s12 = sphi %s5508_s12, %s9503_s12   ;;  %s5441_s11 = sphi %s5506_s11, %s9502_s11   ;;  %s5437_s10 = sphi %s5504_s10, %s9501_s10   ;;  %s5433_s30 = sphi %s5502_s30, %s9500_s30  }
   0x4   : > { %s5527_s15 = sadd.s32 1, %s5445_s12   ;;  %s223_s16 = sadd.s32 1, %s5441_s11 }
   0x5   : > { %s220_s17 = ssub.s32 %s5445_s12, %s5527_s15  ;;  %p233_p0 = scmp.ne.s32.totalorder %s5441_s11, %s5437_s10 }
   0x6   : > { %p221_p1 = scmp.eq.s32.totalorder %s220_s17, 0  ;;  %p234_p2 = scmp.eq.s32.totalorder %s5523_s13, 1 }
   0x7   : > { %p239_p3 = scmp.ne.s32.totalorder %s5437_s10, %s5433_s30  ;;  %p240_p4 = scmp.eq.s32.totalorder %s4705_s14, 1 }
   0x8   : > { %s5538_s18 = scalar_select %p221_p1, %s5441_s11, %s223_s16  }
   0x9   : > { %p5540_p5 = por %p234_p2, %p233_p0  ;;  %p5544_p6 = por %p240_p4, %p239_p3 }
   0xa   : > { %p4708_p7 = scmp.ge.s32.totalorder %s5445_s12, 1  ;;  %p291_p8 = scmp.lt.s32.totalorder %s5445_s12, 3 }
   0xc   : > { %p292_p9 = pnand %p4708_p7, %p291_p8 }
   0xe   : > { %295 = sbr.rel (%p292_p9) target bundleno = 1535 (0x5ff), region = 56 }
  0x13   : > { %v405_v0 = vld [vmem:[%s9089_s2 + $0x38] sm:$0xff]  ;;  %v9097_v2 = vmov 0   ;;  %v348_v3 = vld [vmem:[%s9088_s1 + $0x30] sm:$0xff]  ;;  %v347_v4 = vld [vmem:[%s9088_s1 + $0x28] sm:$0xff]  ;;  %vm902_vm0 = vcmask 523264   ;;  %s4710_s21 = sshll.u32 %s5523_s13, 4 }
  0x14   : > { %v349_v1 = vld [vmem:[%s9088_s1 + $0x38] sm:$0xff]  ;;  %5316 = vset.pattern.permute.xlu1 %v9097_v2  ;;  %5315 = vset.pattern.permute.xlu0 %v9097_v2  ;;  %v404_v5 = vld [vmem:[%s9089_s2 + $0x30] sm:$0xff]  ;;  %v346_v6 = vld [vmem:[%s9088_s1 + $0x20] sm:$0xff]  ;;  %p328_p10 = scmp.lt.s32.totalorder %s4710_s21, 31  ;;  %s324_s26 = sand.u32 1, %s5437_s10  }
  0x15   : > { %443 = vperm.xlu1 %5316, %v405_v0   ;;  %387 = vperm.xlu0 %5315, %v349_v1   ;;  %v403_v7 = vld [vmem:[%s9089_s2 + $0x28] sm:$0xff]  ;;  %v345_v8 = vld [vmem:[%s9088_s1 + $0x18] sm:$0xff]  ;;  %v402_v9 = vld [vmem:[%s9089_s2 + $0x20] sm:$0xff]  ;;  %s4709_s27 = sshll.u32 %s324_s26, 8  ;;  %s4911_s29 = sshll.u32 %s5523_s13, 12 }
  0x16   : > { %v344_v10 = vld [vmem:[%s9088_s1 + $0x10] sm:$0xff]  ;;  %v401_v11 = vld [vmem:[%s9089_s2 + $0x18] sm:$0xff]  ;;  %v343_v12 = vld [vmem:[%s9088_s1 + $0x8] sm:$0xff]  ;;  %s9505_s21 = smov (!%p328_p10, %s4710_s21), 31  ;;  %s8794_s28 = scalar_lea.vmem [#allocation4], %s4709_s27 }
  0x17   : > { %v400_v13 = vld [vmem:[%s9089_s2 + $0x10] sm:$0xff]  ;;  %v342_v14 = vld [vmem:[%s9088_s1] sm:$0xff]  ;;  %v399_v15 = vld [vmem:[%s9089_s2 + $0x8] sm:$0xff]  ;;  %s4711_s22 = sshll.u32 %s9505_s21, 3  ;;  %s4643_s14 = sshll.u32 %s8794_s28, 4  ;;  %s9041_s14 = int_to_ptr.vmem [resolvable:$true] %s4643_s14 }
  0x18   : > { %v398_v16 = vld [vmem:[%s9089_s2] sm:$0xff]  ;;  %v549_v17 = vld [vmem:[%s9091_s4 + $0xf8] sm:$0xff]  ;;  %v548_v21 = vld [vmem:[%s9091_s4 + $0xf0] sm:$0xff]  ;;  %s6969_s25 = scalar_lea.vmem %s9094_s7, %s4711_s22  ;;  %s9039_s21 = scalar_lea.hbm %s9096_s9, %s4911_s29 }
  0x19   : > { %382 = vperm.xlu0 %5315, %v348_v3   ;;  %377 = vperm.xlu1 %5316, %v347_v4   ;;  %v533_v18 = vld [vmem:[%s9091_s4 + $0x78] sm:$0xff]  ;;  %v454_v19 = vld [vmem:[%s9090_s3] sm:$0xff]  ;;  %v532_v22 = vld [vmem:[%s9091_s4 + $0x70] sm:$0xff]  ;;  %s9047_s13 = scalar_lea.sflag [#allocation5], %s324_s26  ;;  %s5385_s22 = scalar_lea.vmem %s9041_s14, 4096 }
  0x1a   : > { %v502_v20 = vld [vmem:[%s9090_s3 + $0x180] sm:$0xff]  ;;  %5160 = vmatprep.mubr.msk.f32.mxu0 %vm902_vm0, %v454_v19  ;;  %v547_v23 = vld [vmem:[%s9091_s4 + $0xe8] sm:$0xff]  ;;  %v545_v27 = vld [vmem:[%s9091_s4 + $0xd8] sm:$0xff]  ;;  %p5386_p11 = scmp.ne.s32.totalorder %s9041_s14, %s5385_s22  ;;  %s5449_s23 = smov [#allocation4]  }
  0x1b   : > { %5232 = vmatprep.mubr.msk.f32.mxu1 %vm902_vm0, %v502_v20  ;;  %v531_v24 = vld [vmem:[%s9091_s4 + $0x68] sm:$0xff]  ;;  %v546_v25 = vld [vmem:[%s9091_s4 + $0xe0] sm:$0xff]  ;;  %v529_v28 = vld [vmem:[%s9091_s4 + $0x58] sm:$0xff]  ;;  %s5389_s24 = sshll.u32 %s5449_s23, 4  ;;  %s5390_s24 = int_to_ptr.vmem [resolvable:$false] %s5389_s24 }
  0x1c   : > { %v530_v26 = vld [vmem:[%s9091_s4 + $0x60] sm:$0xff]  ;;  %v544_v29 = vld [vmem:[%s9091_s4 + $0xd0] sm:$0xff]  ;;  %v543_v31 = vld [vmem:[%s9091_s4 + $0xc8] sm:$0xff]  ;;  %p5387_p12 = pnand %p5386_p11, %p5540_p5  ;;  %p5392_p0 = scmp.lt.s32.totalorder %s9041_s14, %s5390_s24 }
  0x1d   : > { %438 = vperm.xlu0 %5315, %v404_v5   ;;  %372 = vperm.xlu1 %5316, %v346_v6   ;;  %v528_v30 = vld [vmem:[%s9091_s4 + $0x50] sm:$0xff]  ;;  %v527_v32 = vld [vmem:[%s9091_s4 + $0x48] sm:$0xff]  ;;  %v542_v33 = vld [vmem:[%s9091_s4 + $0xc0] sm:$0xff] }
  0x1e   : > { %v526_v34 = vld [vmem:[%s9091_s4 + $0x40] sm:$0xff]  ;;  %v541_v35 = vld [vmem:[%s9091_s4 + $0xb8] sm:$0xff]  ;;  %v540_v37 = vld [vmem:[%s9091_s4 + $0xb0] sm:$0xff]  ;;  %p5388_p13 = pneg %p5387_p12 }
  0x1f   : > { %v525_v36 = vld [vmem:[%s9091_s4 + $0x38] sm:$0xff]  ;;  %v524_v38 = vld [vmem:[%s9091_s4 + $0x30] sm:$0xff]  ;;  %v539_v39 = vld [vmem:[%s9091_s4 + $0xa8] sm:$0xff] }
  0x20   : > { %v523_v40 = vld [vmem:[%s9091_s4 + $0x28] sm:$0xff]  ;;  %v538_v41 = vld [vmem:[%s9091_s4 + $0xa0] sm:$0xff]  ;;  %v537_v43 = vld [vmem:[%s9091_s4 + $0x98] sm:$0xff] }
  0x21   : > { %433 = vperm.xlu0 %5315, %v403_v7   ;;  %367 = vperm.xlu1 %5316, %v345_v8   ;;  %v522_v42 = vld [vmem:[%s9091_s4 + $0x20] sm:$0xff]  ;;  %v521_v44 = vld [vmem:[%s9091_s4 + $0x18] sm:$0xff]  ;;  %v536_v45 = vld [vmem:[%s9091_s4 + $0x90] sm:$0xff] }
  0x22   : > { %v520_v46 = vld [vmem:[%s9091_s4 + $0x10] sm:$0xff]  ;;  %v535_v47 = vld [vmem:[%s9091_s4 + $0x88] sm:$0xff]  ;;  %v534_v49 = vld [vmem:[%s9091_s4 + $0x80] sm:$0xff] }
  0x23   : > { %v519_v48 = vld [vmem:[%s9091_s4 + $0x8] sm:$0xff]  ;;  %v518_v50 = vld [vmem:[%s9091_s4] sm:$0xff]  ;;  %v581_v51 = vld [vmem:[%s9091_s4 + $0x1f8] sm:$0xff] }
  0x24   : > { %v565_v52 = vld [vmem:[%s9091_s4 + $0x178] sm:$0xff]  ;;  %v580_v53 = vld [vmem:[%s9091_s4 + $0x1f0] sm:$0xff]  ;;  %v579_v55 = vld [vmem:[%s9091_s4 + $0x1e8] sm:$0xff] }
  0x25   : > { %428 = vperm.xlu0 %5315, %v402_v9   ;;  %362 = vperm.xlu1 %5316, %v344_v10   ;;  %v564_v54 = vld [vmem:[%s9091_s4 + $0x170] sm:$0xff]  ;;  %v563_v56 = vld [vmem:[%s9091_s4 + $0x168] sm:$0xff]  ;;  %v578_v57 = vld [vmem:[%s9091_s4 + $0x1e0] sm:$0xff] }
  0x26   : > { %v562_v58 = vld [vmem:[%s9091_s4 + $0x160] sm:$0xff]  ;;  %v577_v59 = vld [vmem:[%s9091_s4 + $0x1d8] sm:$0xff]  ;;  %v576_v61 = vld [vmem:[%s9091_s4 + $0x1d0] sm:$0xff] }
  0x27   : > { %v561_v60 = vld [vmem:[%s9091_s4 + $0x158] sm:$0xff]  ;;  %v560_v62 = vld [vmem:[%s9091_s4 + $0x150] sm:$0xff]  ;;  %v575_v63 = vld [vmem:[%s9091_s4 + $0x1c8] sm:$0xff] }
  0x28   : > { %v559_v0 = vld [vmem:[%s9091_s4 + $0x148] sm:$0xff]  ;;  %v341_v1 = vld [vmem:[%s9087_s0 + $0x38] sm:$0xff]  ;;  %v574_v3 = vld [vmem:[%s9091_s4 + $0x1c0] sm:$0xff] }
  0x29   : > { %423 = vperm.xlu0 %5315, %v401_v11   ;;  %357 = vperm.xlu1 %5316, %v343_v12   ;;  %v558_v4 = vld [vmem:[%s9091_s4 + $0x140] sm:$0xff]  ;;  %v573_v8 = vld [vmem:[%s9091_s4 + $0x1b8] sm:$0xff]  ;;  %v340_v12 = vld [vmem:[%s9087_s0 + $0x30] sm:$0xff] }
  0x2a   : > { %v557_v9 = vld [vmem:[%s9091_s4 + $0x138] sm:$0xff] }
  0x2d   : > { %418 = vperm.xlu0 %5315, %v400_v13   ;;  %352 = vperm.xlu1 %5316, %v342_v14   ;;  %v572_v14 = vld [vmem:[%s9091_s4 + $0x1b0] sm:$0xff] }
  0x31   : > { %413 = vperm.xlu0 %5315, %v399_v15   ;;  %408 = vperm.xlu1 %5316, %v398_v16   ;;  %v556_v15 = vld [vmem:[%s9091_s4 + $0x130] sm:$0xff] }
  0x35   : > { %739 = vperm.xlu0 %5315, %v549_v17   ;;  %659 = vperm.xlu1 %5316, %v533_v18   ;;  %v339_v17 = vld [vmem:[%s9087_s0 + $0x28] sm:$0xff] }
  0x39   : > { %734 = vperm.xlu0 %5315, %v548_v21   ;;  %654 = vperm.xlu1 %5316, %v532_v22   ;;  %v571_v21 = vld [vmem:[%s9091_s4 + $0x1a8] sm:$0xff] }
  0x3a   : > { %v555_v22 = vld [vmem:[%s9091_s4 + $0x128] sm:$0xff] }
  0x3d   : > { %729 = vperm.xlu0 %5315, %v547_v23   ;;  %649 = vperm.xlu1 %5316, %v531_v24   ;;  %v338_v24 = vld [vmem:[%s9087_s0 + $0x20] sm:$0xff] }
  0x41   : > { %724 = vperm.xlu0 %5315, %v546_v25   ;;  %644 = vperm.xlu1 %5316, %v530_v26  }
  0x45   : > { %719 = vperm.xlu0 %5315, %v545_v27   ;;  %639 = vperm.xlu1 %5316, %v529_v28   ;;  %v570_v28 = vld [vmem:[%s9091_s4 + $0x1a0] sm:$0xff] }
  0x49   : > { %714 = vperm.xlu0 %5315, %v544_v29   ;;  %634 = vperm.xlu1 %5316, %v528_v30   ;;  %v554_v29 = vld [vmem:[%s9091_s4 + $0x120] sm:$0xff] }
  0x4d   : > { %709 = vperm.xlu0 %5315, %v543_v31   ;;  %629 = vperm.xlu1 %5316, %v527_v32   ;;  %v337_v31 = vld [vmem:[%s9087_s0 + $0x18] sm:$0xff] }
  0x51   : > { %704 = vperm.xlu0 %5315, %v542_v33   ;;  %624 = vperm.xlu1 %5316, %v526_v34  }
  0x55   : > { %699 = vperm.xlu0 %5315, %v541_v35   ;;  %619 = vperm.xlu1 %5316, %v525_v36   ;;  %v569_v35 = vld [vmem:[%s9091_s4 + $0x198] sm:$0xff] }
  0x56   : > { %v553_v36 = vld [vmem:[%s9091_s4 + $0x118] sm:$0xff] }
  0x59   : > { %694 = vperm.xlu0 %5315, %v540_v37   ;;  %614 = vperm.xlu1 %5316, %v524_v38   ;;  %v336_v38 = vld [vmem:[%s9087_s0 + $0x10] sm:$0xff] }
  0x5d   : > { %689 = vperm.xlu0 %5315, %v539_v39   ;;  %609 = vperm.xlu1 %5316, %v523_v40  }
  0x61   : > { %684 = vperm.xlu0 %5315, %v538_v41   ;;  %604 = vperm.xlu1 %5316, %v522_v42   ;;  %v568_v42 = vld [vmem:[%s9091_s4 + $0x190] sm:$0xff] }
  0x65   : > { %679 = vperm.xlu0 %5315, %v537_v43   ;;  %599 = vperm.xlu1 %5316, %v521_v44   ;;  %v552_v43 = vld [vmem:[%s9091_s4 + $0x110] sm:$0xff] }
  0x69   : > { %674 = vperm.xlu0 %5315, %v536_v45   ;;  %594 = vperm.xlu1 %5316, %v520_v46   ;;  %v335_v45 = vld [vmem:[%s9087_s0 + $0x8] sm:$0xff] }
  0x6d   : > { %669 = vperm.xlu0 %5315, %v535_v47   ;;  %589 = vperm.xlu1 %5316, %v519_v48  }
  0x71   : > { %664 = vperm.xlu0 %5315, %v534_v49   ;;  %584 = vperm.xlu1 %5316, %v518_v50   ;;  %v567_v49 = vld [vmem:[%s9091_s4 + $0x188] sm:$0xff] }
  0x72   : > { %v551_v50 = vld [vmem:[%s9091_s4 + $0x108] sm:$0xff] }
  0x75   : > { %899 = vperm.xlu0 %5315, %v581_v51   ;;  %819 = vperm.xlu1 %5316, %v565_v52   ;;  %v334_v52 = vld [vmem:[%s9087_s0] sm:$0xff] }
  0x79   : > { %894 = vperm.xlu0 %5315, %v580_v53   ;;  %814 = vperm.xlu1 %5316, %v564_v54  }
  0x7d   : > { %889 = vperm.xlu0 %5315, %v579_v55   ;;  %809 = vperm.xlu1 %5316, %v563_v56  }
  0x81   : > { %884 = vperm.xlu0 %5315, %v578_v57   ;;  %804 = vperm.xlu1 %5316, %v562_v58   ;;  %v566_v57 = vld [vmem:[%s9091_s4 + $0x180] sm:$0xff] }
  0x82   : > { %v550_v58 = vld [vmem:[%s9091_s4 + $0x100] sm:$0xff] }
  0x85   : > { %879 = vperm.xlu0 %5315, %v577_v59   ;;  %799 = vperm.xlu1 %5316, %v561_v60   ;;  %v455_v60 = vld [vmem:[%s9090_s3 + $0x8] sm:$0xff] }
  0x89   : > { %874 = vperm.xlu0 %5315, %v576_v61   ;;  %794 = vperm.xlu1 %5316, %v560_v62   ;;  %v503_v61 = vld [vmem:[%s9090_s3 + $0x188] sm:$0xff]  ;;  %v1608_v62 = vld [vmem:[%s9093_s6] sm:$0xff] }
  0x8d   : > { %869 = vperm.xlu0 %5315, %v575_v63   ;;  %789 = vperm.xlu1 %5316, %v559_v0   ;;  %v1610_v63 = vld [vmem:[%s9093_s6 + $0x10] sm:$0xff] }
  0x8e   : > { %v456_v0 = vld [vmem:[%s9090_s3 + $0x10] sm:$0xff] }
  0x90   : > { %v444_v5 = vpop.permute.xlu1 %443  ;;  %v388_v6 = vpop.permute.xlu0 %387 }
  0x91   : > { %v397_v7 = vsub.f32 %v341_v1, %v388_v6  ;;  %864 = vperm.xlu0 %5315, %v574_v3   ;;  %784 = vperm.xlu1 %5316, %v558_v4   ;;  %v504_v1 = vld [vmem:[%s9090_s3 + $0x190] sm:$0xff]  ;;  %v457_v3 = vld [vmem:[%s9090_s3 + $0x18] sm:$0xff]  ;;  %v1609_v6 = vld [vmem:[%s9093_s6 + $0x8] sm:$0xff] }
  0x92   : > { %v505_v4 = vld [vmem:[%s9090_s3 + $0x198] sm:$0xff] }
  0x93   : > { %v453_v10 = vmul.f32 %v444_v5, %v397_v7  ;;  %v1612_v5 = vld [vmem:[%s9093_s6 + $0x20] sm:$0xff] }
  0x94   : > { %v383_v11 = vpop.permute.xlu0 %382  ;;  %v378_v13 = vpop.permute.xlu1 %377  ;;  %v458_v7 = vld [vmem:[%s9090_s3 + $0x20] sm:$0xff] }
  0x95   : > { %859 = vperm.xlu0 %5315, %v573_v8   ;;  %779 = vperm.xlu1 %5316, %v557_v9   ;;  %v396_v16 = vsub.f32 %v340_v12, %v383_v11  ;;  %v395_v23 = vsub.f32 %v339_v17, %v378_v13  ;;  %v506_v8 = vld [vmem:[%s9090_s3 + $0x1a0] sm:$0xff]  ;;  %v459_v9 = vld [vmem:[%s9090_s3 + $0x28] sm:$0xff]  ;;  %v1611_v11 = vld [vmem:[%s9093_s6 + $0x18] sm:$0xff] }
  0x96   : > { %5144 = vmatprep.subr.mxu0 %v453_v10  ;;  %5256 = vmatprep.subr.mxu1 %v453_v10  ;;  %v1614_v12 = vld [vmem:[%s9093_s6 + $0x30] sm:$0xff]  ;;  %v1613_v17 = vld [vmem:[%s9093_s6 + $0x28] sm:$0xff] }
  0x97   : > { %5145 = vmatpush3.msra.mxu0 %v453_v10  ;;  %5264 = vmatpush3.msra.mxu1 %v453_v10  ;;  %v507_v10 = vld [vmem:[%s9090_s3 + $0x1a8] sm:$0xff]  ;;  %v460_v13 = vld [vmem:[%s9090_s3 + $0x30] sm:$0xff] }
  0x98   : > { %v439_v18 = vpop.permute.xlu0 %438  ;;  %v373_v19 = vpop.permute.xlu1 %372 }
  0x99   : > { %v452_v20 = vmul.f32 %v439_v18, %v396_v16  ;;  %854 = vperm.xlu0 %5315, %v572_v14   ;;  %774 = vperm.xlu1 %5316, %v556_v15   ;;  %v394_v30 = vsub.f32 %v338_v24, %v373_v19  ;;  %v508_v14 = vld [vmem:[%s9090_s3 + $0x1b0] sm:$0xff]  ;;  %v461_v15 = vld [vmem:[%s9090_s3 + $0x38] sm:$0xff]  ;;  %v1616_v18 = vld [vmem:[%s9093_s6 + $0x40] sm:$0xff] }
  0x9a   : > { %v509_v16 = vld [vmem:[%s9090_s3 + $0x1b8] sm:$0xff]  ;;  %v462_v19 = vld [vmem:[%s9090_s3 + $0x40] sm:$0xff]  ;;  %v1618_v24 = vld [vmem:[%s9093_s6 + $0x50] sm:$0xff] }
  0x9b   : > { %5146 = vmatprep.subr.mxu0 %v452_v20  ;;  %5257 = vmatprep.subr.mxu1 %v452_v20 }
  0x9c   : > { %v434_v25 = vpop.permute.xlu0 %433  ;;  %v368_v26 = vpop.permute.xlu1 %367  ;;  %5147 = vmatpush3.msra.mxu0 %v452_v20  ;;  %5265 = vmatpush3.msra.mxu1 %v452_v20  ;;  %v510_v20 = vld [vmem:[%s9090_s3 + $0x1c0] sm:$0xff] }
  0x9d   : > { %v451_v27 = vmul.f32 %v434_v25, %v395_v23  ;;  %849 = vperm.xlu0 %5315, %v571_v21   ;;  %769 = vperm.xlu1 %5316, %v555_v22   ;;  %v393_v37 = vsub.f32 %v337_v31, %v368_v26  ;;  %v463_v21 = vld [vmem:[%s9090_s3 + $0x48] sm:$0xff]  ;;  %v1615_v23 = vld [vmem:[%s9093_s6 + $0x38] sm:$0xff]  ;;  %v464_v25 = vld [vmem:[%s9090_s3 + $0x50] sm:$0xff] }
  0x9e   : > { %v511_v22 = vld [vmem:[%s9090_s3 + $0x1c8] sm:$0xff]  ;;  %v512_v26 = vld [vmem:[%s9090_s3 + $0x1d0] sm:$0xff]  ;;  %v466_v31 = vld [vmem:[%s9090_s3 + $0x60] sm:$0xff] }
  0x9f   : > { %5148 = vmatprep.subr.mxu0 %v451_v27  ;;  %5258 = vmatprep.subr.mxu1 %v451_v27 }
  0xa0   : > { %v429_v32 = vpop.permute.xlu0 %428  ;;  %v363_v33 = vpop.permute.xlu1 %362  ;;  %5149 = vmatpush3.msra.mxu0 %v451_v27  ;;  %5266 = vmatpush3.msra.mxu1 %v451_v27  ;;  %v465_v27 = vld [vmem:[%s9090_s3 + $0x58] sm:$0xff] }
  0xa1   : > { %v450_v34 = vmul.f32 %v429_v32, %v394_v30  ;;  %844 = vperm.xlu0 %5315, %v570_v28   ;;  %764 = vperm.xlu1 %5316, %v554_v29   ;;  %v392_v44 = vsub.f32 %v336_v38, %v363_v33  ;;  %v513_v28 = vld [vmem:[%s9090_s3 + $0x1d8] sm:$0xff]  ;;  %v1617_v29 = vld [vmem:[%s9093_s6 + $0x48] sm:$0xff]  ;;  %v1620_v30 = vld [vmem:[%s9093_s6 + $0x60] sm:$0xff] }
  0xa2   : > { %v514_v32 = vld [vmem:[%s9090_s3 + $0x1e0] sm:$0xff]  ;;  %v467_v33 = vld [vmem:[%s9090_s3 + $0x68] sm:$0xff]  ;;  %v516_v38 = vld [vmem:[%s9090_s3 + $0x1f0] sm:$0xff] }
  0xa3   : > { %5150 = vmatprep.subr.mxu0 %v450_v34  ;;  %5259 = vmatprep.subr.mxu1 %v450_v34 }
  0xa4   : > { %v424_v39 = vpop.permute.xlu0 %423  ;;  %v358_v40 = vpop.permute.xlu1 %357  ;;  %5151 = vmatpush3.msra.mxu0 %v450_v34  ;;  %5267 = vmatpush3.msra.mxu1 %v450_v34  ;;  %v515_v34 = vld [vmem:[%s9090_s3 + $0x1e8] sm:$0xff] }
  0xa5   : > { %v449_v41 = vmul.f32 %v424_v39, %v393_v37  ;;  %839 = vperm.xlu0 %5315, %v569_v35   ;;  %759 = vperm.xlu1 %5316, %v553_v36   ;;  %v391_v51 = vsub.f32 %v335_v45, %v358_v40  ;;  %v1619_v35 = vld [vmem:[%s9093_s6 + $0x58] sm:$0xff]  ;;  %v1622_v36 = vld [vmem:[%s9093_s6 + $0x70] sm:$0xff] }
  0xa6   : > { %v468_v37 = vld [vmem:[%s9090_s3 + $0x70] sm:$0xff]  ;;  %v469_v39 = vld [vmem:[%s9090_s3 + $0x78] sm:$0xff] }
  0xa7   : > { %5152 = vmatprep.subr.mxu0 %v449_v41  ;;  %5260 = vmatprep.subr.mxu1 %v449_v41  ;;  %v517_v40 = vld [vmem:[%s9090_s3 + $0x1f8] sm:$0xff]  ;;  %v472_v45 = vld [vmem:[%s9090_s3 + $0x90] sm:$0xff] }
  0xa8   : > { %v419_v46 = vpop.permute.xlu0 %418  ;;  %v353_v47 = vpop.permute.xlu1 %352  ;;  %5153 = vmatpush3.msra.mxu0 %v449_v41  ;;  %5268 = vmatpush3.msra.mxu1 %v449_v41  ;;  %v1621_v41 = vld [vmem:[%s9093_s6 + $0x68] sm:$0xff] }
  0xa9   : > { %v448_v48 = vmul.f32 %v419_v46, %v392_v44  ;;  %834 = vperm.xlu0 %5315, %v568_v42   ;;  %754 = vperm.xlu1 %5316, %v552_v43   ;;  %v390_v56 = vsub.f32 %v334_v52, %v353_v47  ;;  %v1623_v42 = vld [vmem:[%s9093_s6 + $0x78] sm:$0xff]  ;;  %v470_v43 = vld [vmem:[%s9090_s3 + $0x80] sm:$0xff]  ;;  %v471_v44 = vld [vmem:[%s9090_s3 + $0x88] sm:$0xff] }
  0xaa   : > { %v473_v46 = vld [vmem:[%s9090_s3 + $0x98] sm:$0xff]  ;;  %v474_v47 = vld [vmem:[%s9090_s3 + $0xa0] sm:$0xff]  ;;  %v479_v52 = vld [vmem:[%s9090_s3 + $0xc8] sm:$0xff] }
  0xab   : > { %5154 = vmatprep.subr.mxu0 %v448_v48  ;;  %5261 = vmatprep.subr.mxu1 %v448_v48 }
  0xac   : > { %v414_v53 = vpop.permute.xlu0 %413  ;;  %5155 = vmatpush3.msra.mxu0 %v448_v48  ;;  %5269 = vmatpush3.msra.mxu1 %v448_v48  ;;  %v409_v55 = vpop.permute.xlu1 %408  ;;  %v475_v48 = vld [vmem:[%s9090_s3 + $0xa8] sm:$0xff] }
  0xad   : > { %v447_v54 = vmul.f32 %v414_v53, %v391_v51  ;;  %829 = vperm.xlu0 %5315, %v567_v49   ;;  %749 = vperm.xlu1 %5316, %v551_v50   ;;  %v446_v59 = vmul.f32 %v409_v55, %v390_v56  ;;  %v476_v49 = vld [vmem:[%s9090_s3 + $0xb0] sm:$0xff]  ;;  %v477_v50 = vld [vmem:[%s9090_s3 + $0xb8] sm:$0xff]  ;;  %v478_v51 = vld [vmem:[%s9090_s3 + $0xc0] sm:$0xff] }
  0xae   : > { %v480_v53 = vld [vmem:[%s9090_s3 + $0xd0] sm:$0xff]  ;;  %v482_v55 = vld [vmem:[%s9090_s3 + $0xe0] sm:$0xff]  ;;  %v483_v56 = vld [vmem:[%s9090_s3 + $0xe8] sm:$0xff] }
  0xaf   : > { %5156 = vmatprep.subr.mxu0 %v447_v54  ;;  %5262 = vmatprep.subr.mxu1 %v447_v54 }
  0xb0   : > { %5157 = vmatpush3.msra.mxu0 %v447_v54  ;;  %5270 = vmatpush3.msra.mxu1 %v447_v54  ;;  %v481_v54 = vld [vmem:[%s9090_s3 + $0xd8] sm:$0xff] }
  0xb1   : > { %824 = vperm.xlu0 %5315, %v566_v57   ;;  %744 = vperm.xlu1 %5316, %v550_v58   ;;  %v484_v57 = vld [vmem:[%s9090_s3 + $0xf0] sm:$0xff]  ;;  %v485_v58 = vld [vmem:[%s9090_s3 + $0xf8] sm:$0xff] }
  0xb2   : > { %5158 = vmatprep.subr.mxu0 %v446_v59  ;;  %5263 = vmatprep.subr.mxu1 %v446_v59 }
  0xb3   : > { %5159 = vmatpush3.msra.mxu0 %v446_v59  ;;  %5271 = vmatpush3.msra.mxu1 %v446_v59  ;;  %v486_v59 = vld [vmem:[%s9090_s3 + $0x100] sm:$0xff] }
  0xb4   : > { %5161 = vmatmul.mubr.msk.f32.vlgmr.msra.gmra.mxu0 %vm902_vm0, %v455_v60  ;;  %5233 = vmatmul.mubr.msk.f32.vlgmr.msra.gmra.mxu1 %vm902_vm0, %v503_v61  ;;  %v487_v60 = vld [vmem:[%s9090_s3 + $0x108] sm:$0xff]  ;;  %v488_v61 = vld [vmem:[%s9090_s3 + $0x110] sm:$0xff] }
  0xb5   : > { %1626 = vperm.xlu0 %5315, %v1608_v62   ;;  %1636 = vperm.xlu1 %5316, %v1610_v63   ;;  %v489_v62 = vld [vmem:[%s9090_s3 + $0x118] sm:$0xff]  ;;  %v490_v63 = vld [vmem:[%s9090_s3 + $0x120] sm:$0xff] }
  0xb6   : > { %5163 = vmatprep.mubr.msk.f32.mxu0 %vm902_vm0, %v456_v0  ;;  %5235 = vmatprep.mubr.msk.f32.mxu1 %vm902_vm0, %v504_v1  ;;  %v491_v0 = vld [vmem:[%s9090_s3 + $0x128] sm:$0xff]  ;;  %v492_v1 = vld [vmem:[%s9090_s3 + $0x130] sm:$0xff] }
  0xb8   : > { %5164 = vmatmul.mubr.msk.f32.gmra.mxu0 %vm902_vm0, %v457_v3  ;;  %5236 = vmatmul.mubr.msk.f32.gmra.mxu1 %vm902_vm0, %v505_v4  ;;  %v493_v3 = vld [vmem:[%s9090_s3 + $0x138] sm:$0xff]  ;;  %v494_v4 = vld [vmem:[%s9090_s3 + $0x140] sm:$0xff] }
  0xb9   : > { %1646 = vperm.xlu0 %5315, %v1612_v5   ;;  %1631 = vperm.xlu1 %5316, %v1609_v6   ;;  %v495_v5 = vld [vmem:[%s9090_s3 + $0x148] sm:$0xff]  ;;  %v496_v6 = vld [vmem:[%s9090_s3 + $0x150] sm:$0xff] }
  0xba   : > { %5166 = vmatprep.mubr.msk.f32.mxu0 %vm902_vm0, %v458_v7  ;;  %5238 = vmatprep.mubr.msk.f32.mxu1 %vm902_vm0, %v506_v8  ;;  %v497_v7 = vld [vmem:[%s9090_s3 + $0x158] sm:$0xff]  ;;  %v498_v8 = vld [vmem:[%s9090_s3 + $0x160] sm:$0xff] }
  0xbc   : > { %5167 = vmatmul.mubr.msk.f32.gmra.mxu0 %vm902_vm0, %v459_v9  ;;  %5239 = vmatmul.mubr.msk.f32.gmra.mxu1 %vm902_vm0, %v507_v10  ;;  %v499_v9 = vld [vmem:[%s9090_s3 + $0x168] sm:$0xff]  ;;  %v500_v10 = vld [vmem:[%s9090_s3 + $0x170] sm:$0xff] }
  0xbd   : > { %1641 = vperm.xlu0 %5315, %v1611_v11   ;;  %1656 = vperm.xlu1 %5316, %v1614_v12   ;;  %v501_v11 = vld [vmem:[%s9090_s3 + $0x178] sm:$0xff]  ;;  %v6120_v12 = vpop.permute.xlu0 %739 }
  0xbe   : > { %5169 = vmatprep.mubr.msk.f32.mxu0 %vm902_vm0, %v460_v13  ;;  %5241 = vmatprep.mubr.msk.f32.mxu1 %vm902_vm0, %v508_v14  ;;  %v6122_v13 = vpop.permute.xlu1 %659 }
  0xc0   : > { %5170 = vmatmul.mubr.msk.f32.gmra.mxu0 %vm902_vm0, %v461_v15  ;;  %5242 = vmatmul.mubr.msk.f32.gmra.mxu1 %vm902_vm0, %v509_v16 }
  0xc1   : > { %1651 = vperm.xlu0 %5315, %v1613_v17   ;;  %1666 = vperm.xlu1 %5316, %v1616_v18   ;;  %v6124_v14 = vpop.permute.xlu0 %734 }
  0xc2   : > { %5172 = vmatprep.mubr.msk.f32.mxu0 %vm902_vm0, %v462_v19  ;;  %5244 = vmatprep.mubr.msk.f32.mxu1 %vm902_vm0, %v510_v20  ;;  %v6126_v15 = vpop.permute.xlu1 %654 }
  0xc4   : > { %5173 = vmatmul.mubr.msk.f32.gmra.mxu0 %vm902_vm0, %v463_v21  ;;  %5245 = vmatmul.mubr.msk.f32.gmra.mxu1 %vm902_vm0, %v511_v22 }
  0xc5   : > { %1661 = vperm.xlu0 %5315, %v1615_v23   ;;  %1676 = vperm.xlu1 %5316, %v1618_v24   ;;  %v6128_v16 = vpop.permute.xlu0 %729  ;;  %v1545_v24 = vld [vmem:[%s9092_s5 + $0x8] sm:$0xff] }
  0xc6   : > { %5175 = vmatprep.mubr.msk.f32.mxu0 %vm902_vm0, %v464_v25  ;;  %5247 = vmatprep.mubr.msk.f32.mxu1 %vm902_vm0, %v512_v26  ;;  %v6130_v17 = vpop.permute.xlu1 %649 }
  0xc8   : > { %5176 = vmatmul.mubr.msk.f32.gmra.mxu0 %vm902_vm0, %v465_v27  ;;  %5248 = vmatmul.mubr.msk.f32.gmra.mxu1 %vm902_vm0, %v513_v28 }
  0xc9   : > { %1671 = vperm.xlu0 %5315, %v1617_v29   ;;  %1686 = vperm.xlu1 %5316, %v1620_v30   ;;  %v6132_v18 = vpop.permute.xlu0 %724 }
  0xca   : > { %5178 = vmatprep.mubr.msk.f32.mxu0 %vm902_vm0, %v466_v31  ;;  %5250 = vmatprep.mubr.msk.f32.mxu1 %vm902_vm0, %v514_v32  ;;  %v6134_v19 = vpop.permute.xlu1 %644 }
  0xcc   : > { %5179 = vmatmul.mubr.msk.f32.gmra.mxu0 %vm902_vm0, %v467_v33  ;;  %5251 = vmatmul.mubr.msk.f32.gmra.mxu1 %vm902_vm0, %v515_v34 }
  0xcd   : > { %1681 = vperm.xlu0 %5315, %v1619_v35   ;;  %1696 = vperm.xlu1 %5316, %v1622_v36   ;;  %v6136_v20 = vpop.permute.xlu0 %719 }
  0xce   : > { %5181 = vmatprep.mubr.msk.f32.mxu0 %vm902_vm0, %v468_v37  ;;  %5253 = vmatprep.mubr.msk.f32.mxu1 %vm902_vm0, %v516_v38  ;;  %v6138_v21 = vpop.permute.xlu1 %639 }
  0xd0   : > { %5182 = vmatmul.mubr.msk.f32.gmra.mxu0 %vm902_vm0, %v469_v39  ;;  %5254 = vmatmul.mubr.msk.f32.gmra.mxu1 %vm902_vm0, %v517_v40 }
  0xd1   : > { %1691 = vperm.xlu0 %5315, %v1621_v41   ;;  %1701 = vperm.xlu1 %5316, %v1623_v42   ;;  %v6140_v22 = vpop.permute.xlu0 %714 }
  0xd2   : > { %5184 = vmatprep.mubr.msk.f32.mxu0 %vm902_vm0, %v470_v43  ;;  %v6142_v23 = vpop.permute.xlu1 %634  ;;  %1768 = vmatprep.mubr.f32.mxu1 %v1545_v24 }
  0xd4   : > { %5185 = vmatmul.mubr.msk.f32.gmra.mxu0 %vm902_vm0, %v471_v44 }
  0xd5   : > { %5187 = vmatprep.mubr.msk.f32.mxu0 %vm902_vm0, %v472_v45  ;;  %v6147_v25 = vpop.permute.xlu0 %709 }
  0xd6   : > { %v6149_v26 = vpop.permute.xlu1 %629 }
  0xd8   : > { %5188 = vmatmul.mubr.msk.f32.gmra.mxu0 %vm902_vm0, %v473_v46 }
  0xd9   : > { %5190 = vmatprep.mubr.msk.f32.mxu0 %vm902_vm0, %v474_v47  ;;  %v6151_v27 = vpop.permute.xlu0 %704 }
  0xda   : > { %v6153_v28 = vpop.permute.xlu1 %624 }
  0xdc   : > { %5191 = vmatmul.mubr.msk.f32.gmra.mxu0 %vm902_vm0, %v475_v48 }
  0xdd   : > { %5193 = vmatprep.mubr.msk.f32.mxu0 %vm902_vm0, %v476_v49  ;;  %v6155_v29 = vpop.permute.xlu0 %699 }
  0xde   : > { %v6157_v30 = vpop.permute.xlu1 %619 }
  0xe0   : > { %5194 = vmatmul.mubr.msk.f32.gmra.mxu0 %vm902_vm0, %v477_v50 }
  0xe1   : > { %5196 = vmatprep.mubr.msk.f32.mxu0 %vm902_vm0, %v478_v51  ;;  %v6159_v31 = vpop.permute.xlu0 %694 }
  0xe2   : > { %v6161_v32 = vpop.permute.xlu1 %614 }
  0xe4   : > { %5197 = vmatmul.mubr.msk.f32.gmra.mxu0 %vm902_vm0, %v479_v52 }
  0xe5   : > { %5199 = vmatprep.mubr.msk.f32.mxu0 %vm902_vm0, %v480_v53  ;;  %v6163_v33 = vpop.permute.xlu0 %689 }
  0xe6   : > { %v6165_v34 = vpop.permute.xlu1 %609 }
  0xe8   : > { %5200 = vmatmul.mubr.msk.f32.gmra.mxu0 %vm902_vm0, %v481_v54 }
  0xe9   : > { %5202 = vmatprep.mubr.msk.f32.mxu0 %vm902_vm0, %v482_v55  ;;  %v6167_v35 = vpop.permute.xlu0 %684 }
  0xea   : > { %v6171_v37 = vpop.permute.xlu1 %604 }
  0xec   : > { %5203 = vmatmul.mubr.msk.f32.gmra.mxu0 %vm902_vm0, %v483_v56 }
  0xed   : > { %5205 = vmatprep.mubr.msk.f32.mxu0 %vm902_vm0, %v484_v57  ;;  %v6177_v40 = vpop.permute.xlu0 %679 }
  0xee   : > { %v6181_v42 = vpop.permute.xlu1 %599 }
  0xf0   : > { %5206 = vmatmul.mubr.msk.f32.gmra.mxu0 %vm902_vm0, %v485_v58 }
  0xf1   : > { %5208 = vmatprep.mubr.msk.f32.mxu0 %vm902_vm0, %v486_v59  ;;  %v6187_v45 = vpop.permute.xlu0 %674 }
  0xf2   : > { %v6191_v47 = vpop.permute.xlu1 %594 }
  0xf3   : > { %9215 = vst [vmem:[#allocation10_spill] sm:$0xff] %v6191_v47 }
  0xf4   : > { %5209 = vmatmul.mubr.msk.f32.gmra.mxu0 %vm902_vm0, %v487_v60 }
  0xf5   : > { %5211 = vmatprep.mubr.msk.f32.mxu0 %vm902_vm0, %v488_v61  ;;  %v6197_v50 = vpop.permute.xlu0 %669 }
  0xf6   : > { %9216 = vst [vmem:[#allocation11_spill] sm:$0xff] %v6197_v50  ;;  %v6201_v52 = vpop.permute.xlu1 %589 }
  0xf7   : > { %9217 = vst [vmem:[#allocation12_spill] sm:$0xff] %v6201_v52 }
  0xf8   : > { %5212 = vmatmul.mubr.msk.f32.gmra.mxu0 %vm902_vm0, %v489_v62 }
  0xf9   : > { %5214 = vmatprep.mubr.msk.f32.mxu0 %vm902_vm0, %v490_v63  ;;  %v6207_v55 = vpop.permute.xlu0 %664 }
  0xfa   : > { %9218 = vst [vmem:[#allocation13_spill] sm:$0xff] %v6207_v55  ;;  %v6209_v57 = vpop.permute.xlu1 %584 }
  0xfb   : > { %9219 = vst [vmem:[#allocation14_spill] sm:$0xff] %v6209_v57 }
  0xfc   : > { %5215 = vmatmul.mubr.msk.f32.gmra.mxu0 %vm902_vm0, %v491_v0 }
  0xfd   : > { %5217 = vmatprep.mubr.msk.f32.mxu0 %vm902_vm0, %v492_v1  ;;  %v6211_v60 = vpop.permute.xlu0 %899 }
  0xfe   : > { %9220 = vst [vmem:[#allocation15_spill] sm:$0xff] %v6211_v60  ;;  %v6215_v63 = vpop.permute.xlu1 %819 }
  0xff   : > { %9222 = vst [vmem:[#allocation17_spill] sm:$0xff] %v6215_v63 }
 0x100   : > { %5218 = vmatmul.mubr.msk.f32.gmra.mxu0 %vm902_vm0, %v493_v3 }
 0x101   : > { %5220 = vmatprep.mubr.msk.f32.mxu0 %vm902_vm0, %v494_v4  ;;  %v6223_v4 = vpop.permute.xlu0 %894 }
 0x102   : > { %9226 = vst [vmem:[#allocation21_spill] sm:$0xff] %v6223_v4 }
 0x104   : > { %5221 = vmatmul.mubr.msk.f32.gmra.mxu0 %vm902_vm0, %v495_v5 }
 0x105   : > { %5223 = vmatprep.mubr.msk.f32.mxu0 %vm902_vm0, %v496_v6  ;;  %v6227_v6 = vpop.permute.xlu1 %814 }
 0x106   : > { %9227 = vst [vmem:[#allocation22_spill] sm:$0xff] %v6227_v6 }
 0x108   : > { %5224 = vmatmul.mubr.msk.f32.gmra.mxu0 %vm902_vm0, %v497_v7 }
 0x109   : > { %5226 = vmatprep.mubr.msk.f32.mxu0 %vm902_vm0, %v498_v8  ;;  %v6241_v2 = vpop.permute.xlu1 %809 }
 0x10a   : > { %9232 = vst [vmem:[#allocation27_spill] sm:$0xff] %v6241_v2 }
 0x10c   : > { %5227 = vmatmul.mubr.msk.f32.gmra.mxu0 %vm902_vm0, %v499_v9 }
 0x10d   : > { %5229 = vmatprep.mubr.msk.f32.mxu0 %vm902_vm0, %v500_v10  ;;  %v6235_v10 = vpop.permute.xlu0 %889  ;;  %v6251_v4 = vpop.permute.xlu1 %804 }
 0x10e   : > { %9230 = vst [vmem:[#allocation25_spill] sm:$0xff] %v6235_v10  ;;  %9235 = vst [vmem:[#allocation30_spill] sm:$0xff] %v6251_v4 }
 0x110   : > { %5230 = vmatmul.mubr.msk.f32.gmra.mxu0 %vm902_vm0, %v501_v11 }
 0x111   : > { %v6249_v6 = vpop.permute.xlu0 %884 }
 0x112   : > { %9234 = vst [vmem:[#allocation29_spill] sm:$0xff] %v6249_v6 }
 0x174   : > { %v6169_v36 = vpop.f32.mrf.mxu0  ;;  %v6213_v61 = vpop.f32.mrf.mxu1 }
 0x175   : > { %9212 = vst [vmem:[#allocation7_spill] sm:$0xff] %v6169_v36  ;;  %9221 = vst [vmem:[#allocation16_spill] sm:$0xff] %v6213_v61 }
 0x176   : > { %v6173_v38 = vpop.f32.mrf.mxu0  ;;  %v6219_v1 = vpop.f32.mrf.mxu1 }
 0x177   : > { %9213 = vst [vmem:[#allocation8_spill] sm:$0xff] %v6173_v38  ;;  %9224 = vst [vmem:[#allocation19_spill] sm:$0xff] %v6219_v1 }
 0x178   : > { %v6175_v39 = vpop.f32.mrf.mxu0  ;;  %v6229_v7 = vpop.f32.mrf.mxu1 }
 0x179   : > { %9228 = vst [vmem:[#allocation23_spill] sm:$0xff] %v6229_v7 }
 0x17a   : > { %v6179_v41 = vpop.f32.mrf.mxu0  ;;  %v6237_v11 = vpop.f32.mrf.mxu1 }
 0x17b   : > { %9214 = vst [vmem:[#allocation9_spill] sm:$0xff] %v6179_v41  ;;  %9231 = vst [vmem:[#allocation26_spill] sm:$0xff] %v6237_v11  ;;  %v6255_v11 = vpop.permute.xlu0 %879 }
 0x17c   : > { %v6183_v43 = vpop.f32.mrf.mxu0  ;;  %v6245_v61 = vpop.f32.mrf.mxu1  ;;  %9237 = vst [vmem:[#allocation32_spill] sm:$0xff] %v6255_v11 }
 0x17d   : > { %9233 = vst [vmem:[#allocation28_spill] sm:$0xff] %v6245_v61 }
 0x17e   : > { %v6185_v44 = vpop.f32.mrf.mxu0  ;;  %v6253_v60 = vpop.f32.mrf.mxu1 }
 0x17f   : > { %9236 = vst [vmem:[#allocation31_spill] sm:$0xff] %v6253_v60  ;;  %v6263_v52 = vpop.permute.xlu0 %874 }
 0x180   : > { %v6189_v46 = vpop.f32.mrf.mxu0  ;;  %v6257_v57 = vpop.f32.mrf.mxu1  ;;  %9241 = vst [vmem:[#allocation36_spill] sm:$0xff] %v6263_v52 }
 0x181   : > { %9238 = vst [vmem:[#allocation33_spill] sm:$0xff] %v6257_v57 }
 0x182   : > { %v6193_v48 = vpop.f32.mrf.mxu0  ;;  %v6261_v61 = vpop.f32.mrf.mxu1 }
 0x183   : > { %9240 = vst [vmem:[#allocation35_spill] sm:$0xff] %v6261_v61 }
 0x184   : > { %v6195_v49 = vpop.f32.mrf.mxu0  ;;  %v6269_v50 = vpop.f32.mrf.mxu1 }
 0x186   : > { %v6199_v51 = vpop.f32.mrf.mxu0 }
 0x188   : > { %v6203_v53 = vpop.f32.mrf.mxu0 }
 0x18a   : > { %v6205_v54 = vpop.f32.mrf.mxu0 }
 0x18c   : > { %v5180_v56 = vpop.f32.mrf.mxu0 }
 0x18d   : > { %v1227_v47 = vadd.f32 %v5180_v56, %v6130_v17  ;;  %v1217_v56 = vadd.f32 %v6203_v53, %v6138_v21 }
 0x18e   : > { %v1221_v58 = vpop.f32.mrf.mxu0 }
 0x190   : > { %v5183_v59 = vpop.f32.mrf.mxu0 }
 0x191   : > { %v1237_v6 = vadd.f32 %v5183_v59, %v6122_v13  ;;  %v6277_v13 = vpop.permute.xlu0 %869 }
 0x192   : > { %v1231_v62 = vpop.f32.mrf.mxu0 }
 0x193   : > { %v1232_v57 = vadd.f32 %v1231_v62, %v6126_v15  ;;  %v1495_v52 = vmax.f32 %v1237_v6, 0.0  ;;  %v1222_v15 = vadd.f32 %v1221_v58, %v6134_v19 }
 0x194   : > { %v6217_v0 = vpop.f32.mrf.mxu0 }
 0x195   : > { %9223 = vst [vmem:[#allocation18_spill] sm:$0xff] %v6217_v0  ;;  %v1494_v62 = vmax.f32 %v1232_v57, 0.0  ;;  %v1492_v58 = vmax.f32 %v1222_v15, 0.0 }
 0x196   : > { %v6221_v3 = vpop.f32.mrf.mxu0 }
 0x197   : > { %9225 = vst [vmem:[#allocation20_spill] sm:$0xff] %v6221_v3  ;;  %v6259_v3 = vpop.permute.xlu1 %799 }
 0x198   : > { %v6225_v5 = vpop.f32.mrf.mxu0  ;;  %9239 = vst [vmem:[#allocation34_spill] sm:$0xff] %v6259_v3 }
 0x19a   : > { %v6231_v8 = vpop.f32.mrf.mxu0 }
 0x19b   : > { %9229 = vst [vmem:[#allocation24_spill] sm:$0xff] %v6231_v8  ;;  %v6266_v0 = vpop.permute.xlu1 %794 }
 0x19c   : > { %v6233_v9 = vpop.f32.mrf.mxu0 }
 0x19e   : > { %v6239_v24 = vpop.f32.mrf.mxu0 }
 0x1a0   : > { %v6243_v1 = vpop.f32.mrf.mxu0 }
 0x1a2   : > { %v6247_v63 = vpop.f32.mrf.mxu0 }
 0x1a4   : > { %v5198_v7 = vpop.f32.mrf.mxu0 }
 0x1a5   : > { %v1287_v21 = vadd.f32 %v5198_v7, %v6147_v25  ;;  %v1197_v7 = vadd.f32 %v6189_v46, %v6157_v30  ;;  %v1267_v46 = vadd.f32 %v6233_v9, %v6163_v33 }
 0x1a6   : > { %v1281_v10 = vpop.f32.mrf.mxu0 }
 0x1a8   : > { %v5201_v38 = vpop.f32.mrf.mxu0 }
 0x1a9   : > { %v1297_v17 = vadd.f32 %v5201_v38, %v6136_v20  ;;  %v6299_v38 = vpop.permute.xlu0 %864 }
 0x1aa   : > { %v1291_v2 = vpop.f32.mrf.mxu0 }
 0x1ac   : > { %v5204_v55 = vpop.f32.mrf.mxu0 }
 0x1ad   : > { %v1307_v3 = vadd.f32 %v5204_v55, %v6128_v16 }
 0x1ae   : > { %v1301_v36 = vpop.f32.mrf.mxu0 }
 0x1af   : > { %v1302_v59 = vadd.f32 %v1301_v36, %v6132_v18  ;;  %v1509_v55 = vmax.f32 %v1307_v3, 0.0  ;;  %v1493_v18 = vmax.f32 %v1227_v47, 0.0  ;;  %v1507_v47 = vmax.f32 %v1297_v17, 0.0 }
 0x1b0   : > { %v5207_v4 = vpop.f32.mrf.mxu0  ;;  %v1182_v17 = vadd.f32 %v6185_v44, %v6171_v37  ;;  %v9242_v44 = vld [vmem:[#allocation24_spill] sm:$0xff] }
 0x1b1   : > { %v1317_v60 = vadd.f32 %v5207_v4, %v6120_v12  ;;  %v6280_v4 = vpop.f32.mrf.mxu1  ;;  %v1508_v19 = vmax.f32 %v1302_v59, 0.0  ;;  %v1192_v59 = vadd.f32 %v6193_v48, %v6161_v32  ;;  %v1262_v32 = vadd.f32 %v6239_v24, %v6167_v35 }
 0x1b2   : > { %v1311_v11 = vpop.f32.mrf.mxu0  ;;  %v1177_v35 = vadd.f32 %v6175_v39, %v6181_v42  ;;  %v9245_v39 = vld [vmem:[#allocation11_spill] sm:$0xff]  ;;  %v9246_v42 = vld [vmem:[#allocation18_spill] sm:$0xff] }
 0x1b3   : > { %v1511_v41 = vmax.f32 %v1317_v60, 0.0  ;;  %v1312_v61 = vadd.f32 %v1311_v11, %v6124_v14  ;;  %v6285_v14 = vpop.permute.xlu1 %789  ;;  %v6293_v57 = vpop.f32.mrf.mxu1 }
 0x1b4   : > { %v6275_v8 = vpop.f32.mrf.mxu0  ;;  %v6321_v11 = vpop.permute.xlu0 %859 }
 0x1b5   : > { %v1510_v12 = vmax.f32 %v1312_v61, 0.0  ;;  %4984 = vmatprep.subr.mxu1 %v1511_v41  ;;  %v1292_v41 = vadd.f32 %v1291_v2, %v6140_v22  ;;  %v1207_v2 = vadd.f32 %v6195_v49, %v6149_v26  ;;  %v1491_v22 = vmax.f32 %v1217_v56, 0.0  ;;  %v6311_v25 = vpop.f32.mrf.mxu1 }
 0x1b6   : > { %v6283_v16 = vpop.f32.mrf.mxu0  ;;  %4985 = vmatpush3.msra.mxu1 %v1495_v52  ;;  %v1212_v52 = vadd.f32 %v6205_v54, %v6142_v23  ;;  %v1282_v23 = vadd.f32 %v1281_v10, %v6151_v27  ;;  %v1202_v61 = vadd.f32 %v6199_v51, %v6153_v28  ;;  %v1277_v26 = vadd.f32 %v6243_v1, %v6155_v29 }
 0x1b7   : > { %4986 = vmatprep.subr.mxu1 %v1510_v12  ;;  %v6306_v60 = vpop.permute.xlu1 %784  ;;  %v1506_v54 = vmax.f32 %v1292_v41, 0.0  ;;  %v1505_v49 = vmax.f32 %v1287_v21, 0.0  ;;  %v1489_v27 = vmax.f32 %v1207_v2, 0.0  ;;  %v1272_v28 = vadd.f32 %v6247_v63, %v6159_v31  ;;  %v6327_v1 = vpop.f32.mrf.mxu1 }
 0x1b8   : > { %v6290_v36 = vpop.f32.mrf.mxu0  ;;  %4987 = vmatpush3.msra.mxu1 %v1494_v62  ;;  %v1490_v3 = vmax.f32 %v1212_v52, 0.0  ;;  %v1504_v51 = vmax.f32 %v1282_v23, 0.0  ;;  %v1488_v29 = vmax.f32 %v1202_v61, 0.0  ;;  %v1503_v15 = vmax.f32 %v1277_v26, 0.0  ;;  %v6345_v9 = vpop.permute.xlu0 %854  ;;  %v9243_v52 = vld [vmem:[#allocation10_spill] sm:$0xff]  ;;  %v9247_v23 = vld [vmem:[#allocation12_spill] sm:$0xff] }
 0x1b9   : > { %4988 = vmatprep.subr.mxu1 %v1509_v55  ;;  %v1187_v31 = vadd.f32 %v6183_v43, %v6165_v34  ;;  %v1487_v63 = vmax.f32 %v1197_v7, 0.0  ;;  %v1502_v48 = vmax.f32 %v1272_v28, 0.0  ;;  %v1486_v55 = vmax.f32 %v1192_v59, 0.0  ;;  %v1461_v56 = vpop.f32.mrf.mxu1  ;;  %v9250_v7 = vld [vmem:[#allocation20_spill] sm:$0xff] }
 0x1ba   : > { %v6297_v20 = vpop.f32.mrf.mxu0  ;;  %4989 = vmatpush3.msra.mxu1 %v1493_v18  ;;  %v1257_v34 = vadd.f32 %v6225_v5, %v6177_v40  ;;  %v1501_v43 = vmax.f32 %v1267_v46, 0.0  ;;  %v1252_v41 = vadd.f32 %v9242_v44, %v6187_v45  ;;  %v1484_v40 = vmax.f32 %v1182_v17, 0.0  ;;  %v9252_v59 = vld [vmem:[#allocation8_spill] sm:$0xff]  ;;  %v9255_v44 = vld [vmem:[#allocation17_spill] sm:$0xff] }
 0x1bb   : > { %4990 = vmatprep.subr.mxu1 %v1508_v19  ;;  %v6331_v30 = vpop.permute.xlu1 %779  ;;  %v1485_v24 = vmax.f32 %v1187_v31, 0.0  ;;  %v1500_v19 = vmax.f32 %v1262_v32, 0.0  ;;  %v5255_v5 = vpop.f32.mrf.mxu1  ;;  %v1247_v2 = vadd.f32 %v9246_v42, %v9245_v39  ;;  %v9253_v32 = vld [vmem:[#allocation15_spill] sm:$0xff]  ;;  %v9257_v42 = vld [vmem:[#allocation22_spill] sm:$0xff] }
 0x1bc   : > { %v6304_v53 = vpop.f32.mrf.mxu0  ;;  %4991 = vmatpush3.msra.mxu1 %v1492_v58  ;;  %v9244_v58 = vld [vmem:[#allocation9_spill] sm:$0xff]  ;;  %v6365_v26 = vpop.permute.xlu0 %849  ;;  %v1498_v28 = vmax.f32 %v1252_v41, 0.0 }
 0x1bd   : > { %4992 = vmatprep.subr.mxu1 %v1507_v47  ;;  %v1172_v21 = vadd.f32 %v9244_v58, %v9243_v52  ;;  %v1497_v17 = vmax.f32 %v1247_v2, 0.0  ;;  %v1544_v58 = vld [vmem:[%s9092_s5] sm:$0xff] }
 0x1be   : > { %v6313_v6 = vpop.f32.mrf.mxu0  ;;  %4993 = vmatpush3.msra.mxu1 %v1491_v22  ;;  %v1499_v22 = vmax.f32 %v1257_v34, 0.0 }
 0x1bf   : > { %4994 = vmatprep.subr.mxu1 %v1506_v54  ;;  %v6353_v37 = vpop.permute.xlu1 %774  ;;  %v9248_v54 = vld [vmem:[#allocation7_spill] sm:$0xff]  ;;  %v1482_v46 = vmax.f32 %v1172_v21, 0.0  ;;  %v9256_v21 = vld [vmem:[#allocation25_spill] sm:$0xff] }
 0x1c0   : > { %v6319_v10 = vpop.f32.mrf.mxu0  ;;  %4995 = vmatpush3.msra.mxu1 %v1490_v3  ;;  %v1167_v61 = vadd.f32 %v9248_v54, %v9247_v23  ;;  %v1483_v3 = vmax.f32 %v1177_v35, 0.0  ;;  %v6385_v23 = vpop.permute.xlu0 %844  ;;  %v9258_v54 = vld [vmem:[#allocation27_spill] sm:$0xff] }
 0x1c1   : > { %4996 = vmatprep.subr.mxu1 %v1505_v49  ;;  %v9249_v49 = vld [vmem:[#allocation13_spill] sm:$0xff] }
 0x1c2   : > { %v6329_v12 = vpop.f32.mrf.mxu0  ;;  %4997 = vmatpush3.msra.mxu1 %v1489_v27  ;;  %v1242_v27 = vadd.f32 %v9250_v7, %v9249_v49  ;;  %v9259_v49 = vld [vmem:[#allocation29_spill] sm:$0xff] }
 0x1c3   : > { %4998 = vmatprep.subr.mxu1 %v1504_v51  ;;  %v9251_v51 = vld [vmem:[#allocation14_spill] sm:$0xff]  ;;  %v1462_v7 = vadd.f32 %v1461_v56, %v9259_v49  ;;  %v1553_v56 = vld [vmem:[%s9092_s5 + $0x48] sm:$0xff] }
 0x1c4   : > { %v6337_v62 = vpop.f32.mrf.mxu0  ;;  %4999 = vmatpush3.msra.mxu1 %v1488_v29  ;;  %v1162_v29 = vadd.f32 %v9252_v59, %v9251_v51  ;;  %v1548_v59 = vld [vmem:[%s9092_s5 + $0x20] sm:$0xff] }
 0x1c5   : > { %5000 = vmatprep.subr.mxu1 %v1503_v15  ;;  %v1471_v15 = vpop.f32.mrf.mxu1 }
 0x1c6   : > { %v6343_v33 = vpop.f32.mrf.mxu0  ;;  %5001 = vmatpush3.msra.mxu1 %v1487_v63  ;;  %v6371_v63 = vpop.permute.xlu1 %769 }
 0x1c7   : > { %5002 = vmatprep.subr.mxu1 %v1502_v48  ;;  %v1477_v48 = vadd.f32 %v5255_v5, %v9253_v32 }
 0x1c8   : > { %v6351_v18 = vpop.f32.mrf.mxu0  ;;  %5003 = vmatpush3.msra.mxu1 %v1486_v55  ;;  %v1481_v55 = vmax.f32 %v1167_v61, 0.0 }
 0x1c9   : > { %5004 = vmatprep.subr.mxu1 %v1501_v43  ;;  %v9254_v43 = vld [vmem:[#allocation21_spill] sm:$0xff]  ;;  %v1543_v5 = vmax.f32 %v1477_v48, 0.0 }
 0x1ca   : > { %v6359_v47 = vpop.f32.mrf.mxu0  ;;  %5005 = vmatpush3.msra.mxu1 %v1485_v24  ;;  %v1472_v35 = vadd.f32 %v1471_v15, %v9254_v43  ;;  %v1496_v24 = vmax.f32 %v1242_v27, 0.0  ;;  %v9262_v15 = vld [vmem:[#allocation34_spill] sm:$0xff] }
 0x1cb   : > { %5006 = vmatprep.subr.mxu1 %v1500_v19  ;;  %v1480_v19 = vmax.f32 %v1162_v29, 0.0  ;;  %v9261_v29 = vld [vmem:[#allocation32_spill] sm:$0xff]  ;;  %v1377_v32 = vadd.f32 %v6351_v18, %v9262_v15  ;;  %v1568_v15 = vld [vmem:[%s9092_s5 + $0xc0] sm:$0xff] }
 0x1cc   : > { %v5228_v45 = vpop.f32.mrf.mxu0  ;;  %5007 = vmatpush3.msra.mxu1 %v1484_v40  ;;  %v1467_v40 = vadd.f32 %v6327_v1, %v9256_v21  ;;  %v1542_v27 = vmax.f32 %v1472_v35, 0.0  ;;  %v1552_v35 = vld [vmem:[%s9092_s5 + $0x40] sm:$0xff] }
 0x1cd   : > { %5008 = vmatprep.subr.mxu1 %v1499_v22  ;;  %v1549_v22 = vld [vmem:[%s9092_s5 + $0x28] sm:$0xff]  ;;  %v1387_v61 = vadd.f32 %v5228_v45, %v9258_v54  ;;  %v1457_v45 = vadd.f32 %v6293_v57, %v9261_v29  ;;  %v1372_v57 = vadd.f32 %v6359_v47, %v6266_v0  ;;  %v1367_v0 = vadd.f32 %v6337_v62, %v6285_v14  ;;  %v9264_v14 = vld [vmem:[#allocation33_spill] sm:$0xff] }
 0x1ce   : > { %v1381_v31 = vpop.f32.mrf.mxu0  ;;  %5009 = vmatpush3.msra.mxu1 %v1483_v3  ;;  %v6388_v3 = vpop.permute.xlu1 %764  ;;  %v1523_v47 = vmax.f32 %v1377_v32, 0.0  ;;  %v1437_v62 = vadd.f32 %v9264_v14, %v6321_v11  ;;  %v1352_v11 = vadd.f32 %v6329_v12, %v6353_v37  ;;  %v1347_v54 = vadd.f32 %v6304_v53, %v6371_v63  ;;  %v9267_v37 = vld [vmem:[#allocation31_spill] sm:$0xff]  ;;  %v9270_v32 = vld [vmem:[#allocation16_spill] sm:$0xff] }
 0x1cf   : > { %5010 = vmatprep.subr.mxu1 %v1498_v28  ;;  %v9260_v28 = vld [vmem:[#allocation30_spill] sm:$0xff]  ;;  %v1525_v48 = vmax.f32 %v1387_v61, 0.0  ;;  %v1422_v61 = vadd.f32 %v9267_v37, %v6385_v23  ;;  %v9268_v63 = vld [vmem:[#allocation23_spill] sm:$0xff]  ;;  %v1569_v23 = vld [vmem:[%s9092_s5 + $0xc8] sm:$0xff] }
 0x1d0   : > { %v5231_v34 = vpop.f32.mrf.mxu0  ;;  %5011 = vmatpush3.msra.mxu1 %v1482_v46  ;;  %v1382_v51 = vadd.f32 %v1381_v31, %v9260_v28  ;;  %v1541_v46 = vmax.f32 %v1467_v40, 0.0  ;;  %v9263_v31 = vld [vmem:[#allocation36_spill] sm:$0xff]  ;;  %v9265_v40 = vld [vmem:[#allocation35_spill] sm:$0xff]  ;;  %v1517_v29 = vmax.f32 %v1347_v54, 0.0  ;;  %v1563_v54 = vld [vmem:[%s9092_s5 + $0x98] sm:$0xff] }
 0x1d1   : > { %v1397_v41 = vadd.f32 %v5231_v34, %v9255_v44  ;;  %5012 = vmatprep.subr.mxu1 %v1497_v17  ;;  %v1452_v17 = vadd.f32 %v6311_v25, %v9263_v31  ;;  %v840_v34 = vpop.permute.xlu0 %839  ;;  %v1539_v44 = vmax.f32 %v1457_v45, 0.0  ;;  %v1557_v25 = vld [vmem:[%s9092_s5 + $0x68] sm:$0xff]  ;;  %v1532_v45 = vmax.f32 %v1422_v61, 0.0  ;;  %v1567_v37 = vld [vmem:[%s9092_s5 + $0xb8] sm:$0xff]  ;;  %v1566_v61 = vld [vmem:[%s9092_s5 + $0xb0] sm:$0xff] }
 0x1d2   : > { %v1391_v52 = vpop.f32.mrf.mxu0  ;;  %5013 = vmatpush3.msra.mxu1 %v1481_v55  ;;  %v1540_v55 = vmax.f32 %v1462_v7, 0.0  ;;  %v1524_v43 = vmax.f32 %v1382_v51, 0.0  ;;  %v760_v18 = vpop.permute.xlu1 %759  ;;  %v1417_v28 = vadd.f32 %v9268_v63, %v840_v34  ;;  %v1589_v14 = vld [vmem:[%s9092_s5 + $0x168] sm:$0xff]  ;;  %v1583_v63 = vld [vmem:[%s9092_s5 + $0x138] sm:$0xff] }
 0x1d3   : > { %v1527_v39 = vmax.f32 %v1397_v41, 0.0  ;;  %v1392_v2 = vadd.f32 %v1391_v52, %v9257_v42  ;;  %5014 = vmatprep.subr.mxu1 %v1496_v24  ;;  %v1447_v24 = vadd.f32 %v6269_v50, %v6277_v13  ;;  %v1442_v41 = vadd.f32 %v6280_v4, %v6299_v38  ;;  %v1556_v52 = vld [vmem:[%s9092_s5 + $0x60] sm:$0xff]  ;;  %v1561_v4 = vld [vmem:[%s9092_s5 + $0x88] sm:$0xff] }
 0x1d4   : > { %5015 = vmatpush3.msra.mxu1 %v1480_v19  ;;  %v1538_v19 = vmax.f32 %v1452_v17, 0.0  ;;  %v1362_v50 = vadd.f32 %v6343_v33, %v6306_v60  ;;  %v1522_v13 = vmax.f32 %v1372_v57, 0.0  ;;  %v1357_v60 = vadd.f32 %v6319_v10, %v6331_v30  ;;  %v9266_v10 = vld [vmem:[#allocation28_spill] sm:$0xff]  ;;  %v9271_v57 = vld [vmem:[#allocation19_spill] sm:$0xff] }
 0x1d5   : > { %v1526_v1 = vmax.f32 %v1392_v2, 0.0  ;;  %1769 = vmatmul.mubr.f32.vlgmr.msra.gmra.mxu1 %v1544_v58  ;;  %5064 = vmatprep.subr.mxu1 %v1543_v5  ;;  %v1537_v58 = vmax.f32 %v1447_v24, 0.0  ;;  %v835_v38 = vpop.permute.xlu0 %834  ;;  %v1521_v33 = vmax.f32 %v1367_v0, 0.0  ;;  %v1432_v5 = vadd.f32 %v9265_v40, %v6345_v9  ;;  %v1560_v2 = vld [vmem:[%s9092_s5 + $0x80] sm:$0xff]  ;;  %v1565_v9 = vld [vmem:[%s9092_s5 + $0xa8] sm:$0xff] }
 0x1d6   : > { %5065 = vmatpush3.msra.mxu1 %v1527_v39  ;;  %1773 = vmatprep.mubr.f32.mxu1 %v1549_v22  ;;  %v755_v21 = vpop.permute.xlu1 %754  ;;  %v1536_v39 = vmax.f32 %v1442_v41, 0.0  ;;  %v1520_v42 = vmax.f32 %v1362_v50, 0.0  ;;  %v1427_v30 = vadd.f32 %v9266_v10, %v6365_v26  ;;  %v1535_v22 = vmax.f32 %v1437_v62, 0.0  ;;  %v1580_v50 = vld [vmem:[%s9092_s5 + $0x120] sm:$0xff]  ;;  %v1605_v40 = vld [vmem:[%s9092_s5 + $0x1e8] sm:$0xff]  ;;  %v1555_v10 = vld [vmem:[%s9092_s5 + $0x58] sm:$0xff] }
 0x1d7   : > { %5066 = vmatprep.subr.mxu1 %v1542_v27  ;;  %v1519_v12 = vmax.f32 %v1357_v60, 0.0  ;;  %v1534_v49 = vmax.f32 %v1432_v5, 0.0  ;;  %v1342_v26 = vadd.f32 %v6313_v6, %v6388_v3  ;;  %v1518_v27 = vmax.f32 %v1352_v11, 0.0  ;;  %v9269_v6 = vld [vmem:[#allocation26_spill] sm:$0xff]  ;;  %v1588_v62 = vld [vmem:[%s9092_s5 + $0x160] sm:$0xff]  ;;  %v1546_v11 = vld [vmem:[%s9092_s5 + $0x10] sm:$0xff] }
 0x1d8   : > { %5067 = vmatpush3.msra.mxu1 %v1526_v1  ;;  %v1564_v1 = vld [vmem:[%s9092_s5 + $0xa0] sm:$0xff]  ;;  %v1533_v51 = vmax.f32 %v1427_v30, 0.0  ;;  %v1412_v3 = vadd.f32 %v9269_v6, %v835_v38  ;;  %v1531_v31 = vmax.f32 %v1417_v28, 0.0  ;;  %v1597_v38 = vld [vmem:[%s9092_s5 + $0x1a8] sm:$0xff]  ;;  %v1554_v30 = vld [vmem:[%s9092_s5 + $0x50] sm:$0xff] }
 0x1d9   : > { %1774 = vmatmul.mubr.f32.gmra.mxu1 %v1548_v59  ;;  %5068 = vmatprep.subr.mxu1 %v1541_v46  ;;  %v830_v7 = vpop.permute.xlu0 %829  ;;  %v1337_v59 = vadd.f32 %v6290_v36, %v760_v18  ;;  %v1332_v46 = vadd.f32 %v6297_v20, %v755_v21  ;;  %v1573_v36 = vld [vmem:[%s9092_s5 + $0xe8] sm:$0xff]  ;;  %v1596_v60 = vld [vmem:[%s9092_s5 + $0x1a0] sm:$0xff]  ;;  %v1582_v28 = vld [vmem:[%s9092_s5 + $0x130] sm:$0xff] }
 0x1da   : > { %5069 = vmatpush3.msra.mxu1 %v1525_v48  ;;  %1778 = vmatprep.mubr.f32.mxu1 %v1553_v56  ;;  %v750_v53 = vpop.permute.xlu1 %749  ;;  %v1516_v56 = vmax.f32 %v1342_v26, 0.0  ;;  %v1407_v48 = vadd.f32 %v9270_v32, %v830_v7  ;;  %v1600_v21 = vld [vmem:[%s9092_s5 + $0x1c0] sm:$0xff]  ;;  %v1570_v7 = vld [vmem:[%s9092_s5 + $0xd0] sm:$0xff]  ;;  %v1575_v26 = vld [vmem:[%s9092_s5 + $0xf8] sm:$0xff] }
 0x1db   : > { %5070 = vmatprep.subr.mxu1 %v1540_v55  ;;  %v1327_v55 = vadd.f32 %v6275_v8, %v750_v53  ;;  %v1515_v34 = vmax.f32 %v1337_v59, 0.0  ;;  %v1514_v24 = vmax.f32 %v1332_v46, 0.0  ;;  %v1577_v8 = vld [vmem:[%s9092_s5 + $0x108] sm:$0xff]  ;;  %v1604_v5 = vld [vmem:[%s9092_s5 + $0x1e0] sm:$0xff]  ;;  %v1578_v53 = vld [vmem:[%s9092_s5 + $0x110] sm:$0xff] }
 0x1dc   : > { %5071 = vmatpush3.msra.mxu1 %v1524_v43  ;;  %v1591_v59 = vld [vmem:[%s9092_s5 + $0x178] sm:$0xff]  ;;  %v1598_v46 = vld [vmem:[%s9092_s5 + $0x1b0] sm:$0xff] }
 0x1dd   : > { %1779 = vmatmul.mubr.f32.gmra.mxu1 %v1552_v35  ;;  %5072 = vmatprep.subr.mxu1 %v1539_v44  ;;  %v825_v17 = vpop.permute.xlu0 %824  ;;  %v1530_v35 = vmax.f32 %v1412_v3, 0.0  ;;  %v1572_v44 = vld [vmem:[%s9092_s5 + $0xe0] sm:$0xff]  ;;  %v1513_v0 = vmax.f32 %v1327_v55, 0.0  ;;  %v1595_v6 = vld [vmem:[%s9092_s5 + $0x198] sm:$0xff]  ;;  %v1594_v3 = vld [vmem:[%s9092_s5 + $0x190] sm:$0xff] }
 0x1de   : > { %5073 = vmatpush3.msra.mxu1 %v1523_v47  ;;  %1783 = vmatprep.mubr.f32.mxu1 %v1557_v25  ;;  %v745_v20 = vpop.permute.xlu1 %744  ;;  %v1402_v43 = vadd.f32 %v9271_v57, %v825_v17  ;;  %v1529_v25 = vmax.f32 %v1407_v48, 0.0  ;;  %v1607_v32 = vld [vmem:[%s9092_s5 + $0x1f8] sm:$0xff]  ;;  %v1606_v48 = vld [vmem:[%s9092_s5 + $0x1f0] sm:$0xff] }
 0x1df   : > { %5074 = vmatprep.subr.mxu1 %v1538_v19  ;;  %v1322_v18 = vadd.f32 %v6283_v16, %v745_v20  ;;  %v1576_v16 = vld [vmem:[%s9092_s5 + $0x100] sm:$0xff]  ;;  %v1581_v19 = vld [vmem:[%s9092_s5 + $0x128] sm:$0xff] }
 0x1e0   : > { %5075 = vmatpush3.msra.mxu1 %v1522_v13  ;;  %v1528_v47 = vmax.f32 %v1402_v43, 0.0  ;;  %v1585_v13 = vld [vmem:[%s9092_s5 + $0x148] sm:$0xff] }
 0x1e1   : > { %1784 = vmatmul.mubr.f32.gmra.mxu1 %v1556_v52  ;;  %5076 = vmatprep.subr.mxu1 %v1537_v58  ;;  %v1512_v41 = vmax.f32 %v1322_v18, 0.0  ;;  %v1584_v52 = vld [vmem:[%s9092_s5 + $0x140] sm:$0xff]  ;;  %v1593_v58 = vld [vmem:[%s9092_s5 + $0x188] sm:$0xff] }
 0x1e2   : > { %5077 = vmatpush3.msra.mxu1 %v1521_v33  ;;  %1788 = vmatprep.mubr.f32.mxu1 %v1561_v4  ;;  %v1592_v4 = vld [vmem:[%s9092_s5 + $0x180] sm:$0xff]  ;;  %v1601_v33 = vld [vmem:[%s9092_s5 + $0x1c8] sm:$0xff] }
 0x1e3   : > { %5078 = vmatprep.subr.mxu1 %v1536_v39  ;;  %v1547_v39 = vld [vmem:[%s9092_s5 + $0x18] sm:$0xff] }
 0x1e4   : > { %5079 = vmatpush3.msra.mxu1 %v1520_v42  ;;  %v1551_v42 = vld [vmem:[%s9092_s5 + $0x38] sm:$0xff] }
 0x1e5   : > { %1789 = vmatmul.mubr.f32.gmra.mxu1 %v1560_v2  ;;  %5080 = vmatprep.subr.mxu1 %v1535_v22  ;;  %v1550_v2 = vld [vmem:[%s9092_s5 + $0x30] sm:$0xff]  ;;  %v1559_v22 = vld [vmem:[%s9092_s5 + $0x78] sm:$0xff] }
 0x1e6   : > { %5081 = vmatpush3.msra.mxu1 %v1519_v12  ;;  %1793 = vmatprep.mubr.f32.mxu1 %v1565_v9  ;;  %v1558_v9 = vld [vmem:[%s9092_s5 + $0x70] sm:$0xff] }
 0x1e7   : > { %5082 = vmatprep.subr.mxu1 %v1534_v49  ;;  %v1562_v12 = vld [vmem:[%s9092_s5 + $0x90] sm:$0xff]  ;;  %v1571_v49 = vld [vmem:[%s9092_s5 + $0xd8] sm:$0xff] }
 0x1e8   : > { %5083 = vmatpush3.msra.mxu1 %v1518_v27  ;;  %v1574_v27 = vld [vmem:[%s9092_s5 + $0xf0] sm:$0xff] }
 0x1e9   : > { %1794 = vmatmul.mubr.f32.gmra.mxu1 %v1564_v1  ;;  %5084 = vmatprep.subr.mxu1 %v1533_v51  ;;  %v1579_v1 = vld [vmem:[%s9092_s5 + $0x118] sm:$0xff] }
 0x1ea   : > { %5085 = vmatpush3.msra.mxu1 %v1517_v29  ;;  %1798 = vmatprep.mubr.f32.mxu1 %v1569_v23  ;;  %v1587_v51 = vld [vmem:[%s9092_s5 + $0x158] sm:$0xff]  ;;  %v1586_v23 = vld [vmem:[%s9092_s5 + $0x150] sm:$0xff] }
 0x1eb   : > { %5086 = vmatprep.subr.mxu1 %v1532_v45  ;;  %v1590_v29 = vld [vmem:[%s9092_s5 + $0x170] sm:$0xff]  ;;  %v1599_v45 = vld [vmem:[%s9092_s5 + $0x1b8] sm:$0xff] }
 0x1ec   : > { %5087 = vmatpush3.msra.mxu1 %v1516_v56  ;;  %v1603_v56 = vld [vmem:[%s9092_s5 + $0x1d8] sm:$0xff] }
 0x1ed   : > { %1799 = vmatmul.mubr.f32.gmra.mxu1 %v1568_v15  ;;  %5088 = vmatprep.subr.mxu1 %v1531_v31  ;;  %v1602_v15 = vld [vmem:[%s9092_s5 + $0x1d0] sm:$0xff] }
 0x1ee   : > { %5089 = vmatpush3.msra.mxu1 %v1515_v34  ;;  %1803 = vmatprep.mubr.f32.mxu1 %v1573_v36 }
 0x1ef   : > { %5090 = vmatprep.subr.mxu1 %v1530_v35 }
 0x1f0   : > { %5091 = vmatpush3.msra.mxu1 %v1514_v24 }
 0x1f1   : > { %1804 = vmatmul.mubr.f32.gmra.mxu1 %v1572_v44  ;;  %5092 = vmatprep.subr.mxu1 %v1529_v25 }
 0x1f2   : > { %5093 = vmatpush3.msra.mxu1 %v1513_v0  ;;  %1808 = vmatprep.mubr.f32.mxu1 %v1577_v8 }
 0x1f3   : > { %5094 = vmatprep.subr.mxu1 %v1528_v47 }
 0x1f4   : > { %5095 = vmatpush3.msra.mxu1 %v1512_v41 }
 0x1f5   : > { %1809 = vmatmul.mubr.f32.gmra.mxu1 %v1576_v16 }
 0x1f6   : > { %1813 = vmatprep.mubr.f32.mxu1 %v1581_v19 }
 0x1f9   : > { %1814 = vmatmul.mubr.f32.gmra.mxu1 %v1580_v50 }
 0x1fa   : > { %1818 = vmatprep.mubr.f32.mxu1 %v1585_v13 }
 0x1fd   : > { %1819 = vmatmul.mubr.f32.gmra.mxu1 %v1584_v52 }
 0x1fe   : > { %1823 = vmatprep.mubr.f32.mxu1 %v1589_v14 }
 0x201   : > { %1824 = vmatmul.mubr.f32.gmra.mxu1 %v1588_v62  ;;  %v2345_v62 = vld [vmem:[%s9095_s8 + $0xf8] sm:$0xff] }
 0x202   : > { %1828 = vmatprep.mubr.f32.mxu1 %v1593_v58  ;;  %2346 = vmatprep.subr.mxu0 %v2345_v62 }
 0x205   : > { %1829 = vmatmul.mubr.f32.gmra.mxu1 %v1592_v4  ;;  %v2344_v4 = vld [vmem:[%s9095_s8 + $0xf0] sm:$0xff] }
 0x206   : > { %1833 = vmatprep.mubr.f32.mxu1 %v1597_v38  ;;  %2347 = vmatpush1.msra.mxu0 %v2344_v4  ;;  %v2343_v38 = vld [vmem:[%s9095_s8 + $0xe8] sm:$0xff]  ;;  %v2318_v4 = vld [vmem:[%s9095_s8 + $0x20] sm:$0xff] }
 0x207   : > { %2348 = vmatprep.subr.mxu0 %v2343_v38  ;;  %v1637_v38 = vpop.permute.xlu1 %1636 }
 0x209   : > { %1834 = vmatmul.mubr.f32.gmra.mxu1 %v1596_v60 }
 0x20a   : > { %1838 = vmatprep.mubr.f32.mxu1 %v1601_v33  ;;  %v2342_v33 = vld [vmem:[%s9095_s8 + $0xe0] sm:$0xff] }
 0x20b   : > { %2349 = vmatpush1.msra.mxu0 %v2342_v33 }
 0x20d   : > { %1839 = vmatmul.mubr.f32.gmra.mxu1 %v1600_v21  ;;  %v2341_v21 = vld [vmem:[%s9095_s8 + $0xd8] sm:$0xff] }
 0x20e   : > { %1843 = vmatprep.mubr.f32.mxu1 %v1605_v40  ;;  %2350 = vmatprep.subr.mxu0 %v2341_v21 }
 0x211   : > { %1844 = vmatmul.mubr.f32.gmra.mxu1 %v1604_v5  ;;  %v2340_v5 = vld [vmem:[%s9095_s8 + $0xd0] sm:$0xff] }
 0x212   : > { %1913 = vmatprep.mubr.f32.mxu1 %v1547_v39  ;;  %2351 = vmatpush1.msra.mxu0 %v2340_v5  ;;  %v2339_v39 = vld [vmem:[%s9095_s8 + $0xc8] sm:$0xff]  ;;  %v2317_v5 = vld [vmem:[%s9095_s8 + $0x18] sm:$0xff] }
 0x213   : > { %2352 = vmatprep.subr.mxu0 %v2339_v39 }
 0x215   : > { %1914 = vmatmul.mubr.f32.vlgmr.msra.gmra.mxu1 %v1546_v11 }
 0x216   : > { %1918 = vmatprep.mubr.f32.mxu1 %v1551_v42  ;;  %v2338_v42 = vld [vmem:[%s9095_s8 + $0xc0] sm:$0xff] }
 0x217   : > { %2353 = vmatpush1.msra.mxu0 %v2338_v42 }
 0x219   : > { %1919 = vmatmul.mubr.f32.gmra.mxu1 %v1550_v2  ;;  %v2337_v2 = vld [vmem:[%s9095_s8 + $0xb8] sm:$0xff] }
 0x21a   : > { %1923 = vmatprep.mubr.f32.mxu1 %v1555_v10  ;;  %2354 = vmatprep.subr.mxu0 %v2337_v2  ;;  %v2316_v2 = vld [vmem:[%s9095_s8 + $0x10] sm:$0xff] }
 0x21d   : > { %1924 = vmatmul.mubr.f32.gmra.mxu1 %v1554_v30  ;;  %v2336_v30 = vld [vmem:[%s9095_s8 + $0xb0] sm:$0xff] }
 0x21e   : > { %1928 = vmatprep.mubr.f32.mxu1 %v1559_v22  ;;  %2355 = vmatpush1.msra.mxu0 %v2336_v30  ;;  %v2335_v22 = vld [vmem:[%s9095_s8 + $0xa8] sm:$0xff] }
 0x21f   : > { %2356 = vmatprep.subr.mxu0 %v2335_v22 }
 0x221   : > { %1929 = vmatmul.mubr.f32.gmra.mxu1 %v1558_v9 }
 0x222   : > { %1933 = vmatprep.mubr.f32.mxu1 %v1563_v54  ;;  %v2334_v54 = vld [vmem:[%s9095_s8 + $0xa0] sm:$0xff] }
 0x223   : > { %2357 = vmatpush1.msra.mxu0 %v2334_v54 }
 0x225   : > { %1934 = vmatmul.mubr.f32.gmra.mxu1 %v1562_v12  ;;  %v2333_v12 = vld [vmem:[%s9095_s8 + $0x98] sm:$0xff] }
 0x226   : > { %1938 = vmatprep.mubr.f32.mxu1 %v1567_v37  ;;  %v2332_v37 = vld [vmem:[%s9095_s8 + $0x90] sm:$0xff]  ;;  %2358 = vmatprep.subr.mxu0 %v2333_v12 }
 0x227   : > { %2359 = vmatpush1.msra.mxu0 %v2332_v37 }
 0x229   : > { %1939 = vmatmul.mubr.f32.gmra.mxu1 %v1566_v61  ;;  %v2331_v61 = vld [vmem:[%s9095_s8 + $0x88] sm:$0xff] }
 0x22a   : > { %1943 = vmatprep.mubr.f32.mxu1 %v1571_v49  ;;  %v9138_v49 = vmov 0.0   ;;  %2360 = vmatprep.subr.mxu0 %v2331_v61 }
 0x22b   : > { %2410 = vmatprep.mubr.f32.mxu0 %v9138_v49 }
 0x22d   : > { %1944 = vmatmul.mubr.f32.gmra.mxu1 %v1570_v7 }
 0x22e   : > { %1948 = vmatprep.mubr.f32.mxu1 %v1575_v26  ;;  %v2330_v26 = vld [vmem:[%s9095_s8 + $0x80] sm:$0xff] }
 0x22f   : > { %2361 = vmatpush1.msra.mxu0 %v2330_v26  ;;  %v1632_v26 = vpop.permute.xlu1 %1631 }
 0x231   : > { %1949 = vmatmul.mubr.f32.gmra.mxu1 %v1574_v27  ;;  %v2329_v27 = vld [vmem:[%s9095_s8 + $0x78] sm:$0xff] }
 0x232   : > { %1953 = vmatprep.mubr.f32.mxu1 %v1579_v1  ;;  %2362 = vmatprep.subr.mxu0 %v2329_v27 }
 0x235   : > { %1954 = vmatmul.mubr.f32.gmra.mxu1 %v1578_v53  ;;  %v2328_v53 = vld [vmem:[%s9095_s8 + $0x70] sm:$0xff] }
 0x236   : > { %1958 = vmatprep.mubr.f32.mxu1 %v1583_v63  ;;  %v2327_v63 = vld [vmem:[%s9095_s8 + $0x68] sm:$0xff]  ;;  %2363 = vmatpush1.msra.mxu0 %v2328_v53 }
 0x237   : > { %2364 = vmatprep.subr.mxu0 %v2327_v63 }
 0x239   : > { %1959 = vmatmul.mubr.f32.gmra.mxu1 %v1582_v28 }
 0x23a   : > { %1963 = vmatprep.mubr.f32.mxu1 %v1587_v51  ;;  %v2326_v51 = vld [vmem:[%s9095_s8 + $0x60] sm:$0xff] }
 0x23b   : > { %2365 = vmatpush1.msra.mxu0 %v2326_v51 }
 0x23d   : > { %1964 = vmatmul.mubr.f32.gmra.mxu1 %v1586_v23  ;;  %v2325_v23 = vld [vmem:[%s9095_s8 + $0x58] sm:$0xff] }
 0x23e   : > { %1968 = vmatprep.mubr.f32.mxu1 %v1591_v59  ;;  %2366 = vmatprep.subr.mxu0 %v2325_v23 }
 0x241   : > { %1969 = vmatmul.mubr.f32.gmra.mxu1 %v1590_v29  ;;  %v2324_v29 = vld [vmem:[%s9095_s8 + $0x50] sm:$0xff] }
 0x242   : > { %1973 = vmatprep.mubr.f32.mxu1 %v1595_v6  ;;  %v2323_v6 = vld [vmem:[%s9095_s8 + $0x48] sm:$0xff]  ;;  %2367 = vmatpush1.msra.mxu0 %v2324_v29 }
 0x243   : > { %2368 = vmatprep.subr.mxu0 %v2323_v6 }
 0x245   : > { %1974 = vmatmul.mubr.f32.gmra.mxu1 %v1594_v3  ;;  %v1627_v3 = vpop.permute.xlu0 %1626 }
 0x246   : > { %1978 = vmatprep.mubr.f32.mxu1 %v1599_v45 }
 0x249   : > { %1979 = vmatmul.mubr.f32.gmra.mxu1 %v1598_v46  ;;  %v2322_v46 = vld [vmem:[%s9095_s8 + $0x40] sm:$0xff]  ;;  %v1647_v39 = vpop.permute.xlu0 %1646 }
 0x24a   : > { %1983 = vmatprep.mubr.f32.mxu1 %v1603_v56  ;;  %v2321_v56 = vld [vmem:[%s9095_s8 + $0x38] sm:$0xff]  ;;  %2369 = vmatpush1.msra.mxu0 %v2322_v46 }
 0x24b   : > { %2370 = vmatprep.subr.mxu0 %v2321_v56 }
 0x24d   : > { %1984 = vmatmul.mubr.f32.gmra.mxu1 %v1602_v15 }
 0x24e   : > { %1988 = vmatprep.mubr.f32.mxu1 %v1607_v32  ;;  %v2320_v32 = vld [vmem:[%s9095_s8 + $0x30] sm:$0xff] }
 0x24f   : > { %2371 = vmatpush1.msra.mxu0 %v2320_v32 }
 0x251   : > { %1989 = vmatmul.mubr.f32.gmra.mxu1 %v1606_v48  ;;  %v2319_v48 = vld [vmem:[%s9095_s8 + $0x28] sm:$0xff] }
 0x252   : > { %2672 = vmatprep.mubr.f32.mxu1 %v9138_v49  ;;  %2372 = vmatprep.subr.mxu0 %v2319_v48 }
 0x253   : > { %2373 = vmatpush1.msra.mxu0 %v2318_v4 }
 0x254   : > { %2374 = vmatprep.subr.mxu0 %v2317_v5 }
 0x255   : > { %2375 = vmatpush1.msra.mxu0 %v2316_v2 }
 0x295   : > { %v6615_v31 = vpop.f32.mrf.mxu1 }
 0x297   : > { %v6617_v36 = vpop.f32.mrf.mxu1 }
 0x298   : > { %v5018_v33 = vadd.f32 %v6617_v36, %v6615_v31  ;;  %v2315_v31 = vld [vmem:[%s9095_s8 + $0x8] sm:$0xff] }
 0x299   : > { %v6619_v17 = vpop.f32.mrf.mxu1  ;;  %2376 = vmatprep.subr.mxu0 %v2315_v31 }
 0x29a   : > { %v1771_v22 = vadd.f32 %v5018_v33, %v1627_v3 }
 0x29b   : > { %v6621_v55 = vpop.f32.mrf.mxu1 }
 0x29c   : > { %v5021_v36 = vadd.f32 %v6621_v55, %v6619_v17  ;;  %v1642_v55 = vpop.permute.xlu0 %1641 }
 0x29d   : > { %v6623_v34 = vpop.f32.mrf.mxu1 }
 0x29e   : > { %v1776_v63 = vadd.f32 %v5021_v36, %v1632_v26 }
 0x29f   : > { %v6625_v20 = vpop.f32.mrf.mxu1 }
 0x2a0   : > { %v5024_v21 = vadd.f32 %v6625_v20, %v6623_v34  ;;  %v2314_v20 = vld [vmem:[%s9095_s8] sm:$0xff] }
 0x2a1   : > { %v6627_v57 = vpop.f32.mrf.mxu1  ;;  %2377 = vmatpush1.msra.mxu0 %v2314_v20 }
 0x2a2   : > { %v1781_v54 = vadd.f32 %v5024_v21, %v1637_v38 }
 0x2a3   : > { %v6629_v43 = vpop.f32.mrf.mxu1 }
 0x2a4   : > { %v5027_v12 = vadd.f32 %v6629_v43, %v6627_v57 }
 0x2a5   : > { %v6631_v35 = vpop.f32.mrf.mxu1 }
 0x2a6   : > { %v1786_v23 = vadd.f32 %v5027_v12, %v1642_v55 }
 0x2a7   : > { %v6633_v18 = vpop.f32.mrf.mxu1 }
 0x2a9   : > { %v6635_v24 = vpop.f32.mrf.mxu1 }
 0x2ab   : > { %v6637_v44 = vpop.f32.mrf.mxu1 }
 0x2ac   : > { %v5033_v56 = vadd.f32 %v6637_v44, %v6635_v24  ;;  %v1657_v24 = vpop.permute.xlu1 %1656 }
 0x2ad   : > { %v6639_v25 = vpop.f32.mrf.mxu1 }
 0x2af   : > { %v6641_v8 = vpop.f32.mrf.mxu1 }
 0x2b0   : > { %v5036_v38 = vadd.f32 %v6641_v8, %v6639_v25  ;;  %v1667_v26 = vpop.permute.xlu1 %1666 }
 0x2b1   : > { %v6643_v0 = vpop.f32.mrf.mxu1 }
 0x2b3   : > { %v6645_v47 = vpop.f32.mrf.mxu1 }
 0x2b4   : > { %v5039_v2 = vadd.f32 %v6645_v47, %v6643_v0 }
 0x2b5   : > { %v6647_v41 = vpop.f32.mrf.mxu1 }
 0x2b7   : > { %v6649_v16 = vpop.f32.mrf.mxu1 }
 0x2b9   : > { %v6651_v19 = vpop.f32.mrf.mxu1 }
 0x2bb   : > { %v6653_v50 = vpop.f32.mrf.mxu1 }
 0x2bd   : > { %v6655_v13 = vpop.f32.mrf.mxu1 }
 0x2bf   : > { %v6657_v52 = vpop.f32.mrf.mxu1 }
 0x2c1   : > { %v6659_v14 = vpop.f32.mrf.mxu1 }
 0x2c3   : > { %v6664_v58 = vpop.f32.mrf.mxu1 }
 0x2c5   : > { %v6672_v60 = vpop.f32.mrf.mxu1 }
 0x2c7   : > { %v6680_v40 = vpop.f32.mrf.mxu1 }
 0x2c9   : > { %v6688_v11 = vpop.f32.mrf.mxu1 }
 0x2cb   : > { %v6696_v10 = vpop.f32.mrf.mxu1 }
 0x2cd   : > { %v6704_v9 = vpop.f32.mrf.mxu1 }
 0x2cf   : > { %v6719_v7 = vpop.f32.mrf.mxu1 }
 0x2d1   : > { %v6728_v1 = vpop.f32.mrf.mxu1 }
 0x2d3   : > { %v6736_v28 = vpop.f32.mrf.mxu1 }
 0x2d5   : > { %v5096_v59 = vpop.f32.mrf.mxu1 }
 0x2d7   : > { %v5097_v45 = vpop.f32.mrf.mxu1 }
 0x2d8   : > { %v5098_v30 = vadd.f32 %v5097_v45, %v5096_v59  ;;  %v5030_v59 = vadd.f32 %v6633_v18, %v6631_v35  ;;  %v1652_v18 = vpop.permute.xlu0 %1651 }
 0x2d9   : > { %v5099_v15 = vpop.f32.mrf.mxu1  ;;  %v1796_v4 = vadd.f32 %v5033_v56, %v1652_v18  ;;  %v1677_v56 = vpop.permute.xlu1 %1676 }
 0x2da   : > { %v6785_v27 = vadd.f32 %v5098_v30, %v1771_v22  ;;  %v1791_v46 = vadd.f32 %v5030_v59, %v1647_v39  ;;  %v5042_v22 = vadd.f32 %v6649_v16, %v6647_v41 }
 0x2db   : > { %v5100_v62 = vpop.f32.mrf.mxu1 }
 0x2dc   : > { %v5101_v53 = vadd.f32 %v5100_v62, %v5099_v15  ;;  %v1662_v20 = vpop.permute.xlu0 %1661  ;;  %v1811_v47 = vadd.f32 %v5042_v22, %v1667_v26 }
 0x2dd   : > { %v5102_v42 = vpop.f32.mrf.mxu1  ;;  %v1806_v8 = vadd.f32 %v5039_v2, %v1662_v20 }
 0x2de   : > { %v6793_v6 = vadd.f32 %v5101_v53, %v1776_v63  ;;  %v5045_v53 = vadd.f32 %v6653_v50, %v6651_v19 }
 0x2df   : > { %v5103_v34 = vpop.f32.mrf.mxu1 }
 0x2e0   : > { %v5104_v37 = vadd.f32 %v5103_v34, %v5102_v42  ;;  %v1801_v42 = vadd.f32 %v5036_v38, %v1657_v24  ;;  %v1672_v59 = vpop.permute.xlu0 %1671 }
 0x2e1   : > { %v5105_v61 = vpop.f32.mrf.mxu1  ;;  %v1816_v16 = vadd.f32 %v5045_v53, %v1672_v59 }
 0x2e2   : > { %v6787_v17 = vadd.f32 %v5104_v37, %v1781_v54 }
 0x2e3   : > { %v5106_v51 = vpop.f32.mrf.mxu1 }
 0x2e4   : > { %v2014_v57 = vmax.f32 %v6785_v27, %v6787_v17  ;;  %v5107_v43 = vadd.f32 %v5106_v51, %v5105_v61 }
 0x2e5   : > { %v5108_v29 = vpop.f32.mrf.mxu1 }
 0x2e6   : > { %v6795_v3 = vadd.f32 %v5107_v43, %v1786_v23 }
 0x2e7   : > { %v5109_v45 = vpop.f32.mrf.mxu1 }
 0x2e8   : > { %v2015_v15 = vmax.f32 %v6793_v6, %v6795_v3  ;;  %v5110_v32 = vadd.f32 %v5109_v45, %v5108_v29 }
 0x2e9   : > { %v5111_v48 = vpop.f32.mrf.mxu1 }
 0x2ea   : > { %v6801_v35 = vadd.f32 %v5110_v32, %v1791_v46 }
 0x2eb   : > { %v5112_v62 = vpop.f32.mrf.mxu1 }
 0x2ec   : > { %v2018_v33 = vmax.f32 %v2014_v57, %v6801_v35  ;;  %v5113_v21 = vadd.f32 %v5112_v62, %v5111_v48  ;;  %v5048_v57 = vadd.f32 %v6657_v52, %v6655_v13  ;;  %v5054_v52 = vadd.f32 %v6680_v40, %v6672_v60 }
 0x2ed   : > { %v5114_v5 = vpop.f32.mrf.mxu1  ;;  %v5060_v60 = vadd.f32 %v6719_v7, %v6704_v9 }
 0x2ee   : > { %v6806_v39 = vadd.f32 %v5113_v21, %v1796_v4  ;;  %v1821_v50 = vadd.f32 %v5048_v57, %v1677_v56  ;;  %v1682_v4 = vpop.permute.xlu0 %1681 }
 0x2ef   : > { %v5115_v44 = vpop.f32.mrf.mxu1 }
 0x2f0   : > { %v2019_v30 = vmax.f32 %v2015_v15, %v6806_v39  ;;  %v5116_v31 = vadd.f32 %v5115_v44, %v5114_v5  ;;  %v5051_v15 = vadd.f32 %v6664_v58, %v6659_v14  ;;  %v1687_v44 = vpop.permute.xlu1 %1686  ;;  %v5057_v14 = vadd.f32 %v6696_v10, %v6688_v11 }
 0x2f1   : > { %v5117_v36 = vpop.f32.mrf.mxu1  ;;  %v1831_v2 = vadd.f32 %v5054_v52, %v1687_v44  ;;  %v5063_v10 = vadd.f32 %v6736_v28, %v6728_v1 }
 0x2f2   : > { %v6811_v34 = vadd.f32 %v5116_v31, %v1801_v42  ;;  %v1826_v13 = vadd.f32 %v5051_v15, %v1682_v4  ;;  %v1692_v20 = vpop.permute.xlu0 %1691 }
 0x2f3   : > { %v5118_v25 = vpop.f32.mrf.mxu1 }
 0x2f4   : > { %v2022_v54 = vmax.f32 %v2018_v33, %v6811_v34  ;;  %v5119_v12 = vadd.f32 %v5118_v25, %v5117_v36 }
 0x2f5   : > { %v5120_v37 = vpop.f32.mrf.mxu1 }
 0x2f6   : > { %v6816_v61 = vadd.f32 %v5119_v12, %v1806_v8  ;;  %v1836_v8 = vadd.f32 %v5057_v14, %v1692_v20  ;;  %v1697_v12 = vpop.permute.xlu1 %1696 }
 0x2f7   : > { %v5121_v0 = vpop.f32.mrf.mxu1 }
 0x2f8   : > { %v2023_v55 = vmax.f32 %v2019_v30, %v6816_v61  ;;  %v5122_v63 = vadd.f32 %v5121_v0, %v5120_v37  ;;  %v1841_v0 = vadd.f32 %v5060_v60, %v1697_v12 }
 0x2f9   : > { %v5123_v51 = vpop.f32.mrf.mxu1 }
 0x2fa   : > { %v6821_v23 = vadd.f32 %v5122_v63, %v1811_v47 }
 0x2fb   : > { %v5124_v41 = vpop.f32.mrf.mxu1 }
 0x2fc   : > { %v2026_v43 = vmax.f32 %v2022_v54, %v6821_v23  ;;  %v5125_v29 = vadd.f32 %v5124_v41, %v5123_v51  ;;  %v1702_v51 = vpop.permute.xlu1 %1701 }
 0x2fd   : > { %v5126_v45 = vpop.f32.mrf.mxu1 }
 0x2fe   : > { %v6826_v46 = vadd.f32 %v5125_v29, %v1816_v16  ;;  %v1846_v16 = vadd.f32 %v5063_v10, %v1702_v51 }
 0x2ff   : > { %v5127_v19 = vpop.f32.mrf.mxu1 }
 0x300   : > { %v2027_v32 = vmax.f32 %v2023_v55, %v6826_v46  ;;  %v5128_v48 = vadd.f32 %v5127_v19, %v5126_v45 }
 0x301   : > { %v5129_v18 = vpop.f32.mrf.mxu1 }
 0x302   : > { %v1966_v62 = vadd.f32 %v5128_v48, %v1821_v50 }
 0x303   : > { %v5130_v38 = vpop.f32.mrf.mxu1 }
 0x304   : > { %v2030_v33 = vmax.f32 %v2026_v43, %v1966_v62  ;;  %v5131_v21 = vadd.f32 %v5130_v38, %v5129_v18 }
 0x305   : > { %v5132_v5 = vpop.f32.mrf.mxu1 }
 0x306   : > { %v6833_v24 = vadd.f32 %v5131_v21, %v1826_v13 }
 0x307   : > { %v5133_v42 = vpop.f32.mrf.mxu1 }
 0x308   : > { %v2031_v58 = vmax.f32 %v2027_v32, %v6833_v24  ;;  %v5134_v30 = vadd.f32 %v5133_v42, %v5132_v5 }
 0x309   : > { %v5135_v31 = vpop.f32.mrf.mxu1 }
 0x30a   : > { %v1976_v36 = vadd.f32 %v5134_v30, %v1831_v2 }
 0x30b   : > { %v5136_v25 = vpop.f32.mrf.mxu1 }
 0x30c   : > { %v2034_v40 = vmax.f32 %v2030_v33, %v1976_v36  ;;  %v5137_v22 = vadd.f32 %v5136_v25, %v5135_v31 }
 0x30d   : > { %v5138_v54 = vpop.f32.mrf.mxu1 }
 0x30e   : > { %v1981_v37 = vadd.f32 %v5137_v22, %v1836_v8 }
 0x30f   : > { %v5139_v26 = vpop.f32.mrf.mxu1 }
 0x310   : > { %v2035_v47 = vmax.f32 %v2031_v58, %v1981_v37  ;;  %v5140_v11 = vadd.f32 %v5139_v26, %v5138_v54 }
 0x311   : > { %v5141_v53 = vpop.f32.mrf.mxu1 }
 0x312   : > { %v1986_v55 = vadd.f32 %v5140_v11, %v1841_v0 }
 0x313   : > { %v5142_v63 = vpop.f32.mrf.mxu1 }
 0x314   : > { %v2038_v59 = vmax.f32 %v2034_v40, %v1986_v55  ;;  %v5143_v41 = vadd.f32 %v5142_v63, %v5141_v53 }
 0x316   : > { %v2040_v9 = vsub.f32 %v6785_v27, %v2038_v59  ;;  %v2052_v7 = vsub.f32 %v6787_v17, %v2038_v59  ;;  %v2064_v57 = vsub.f32 %v6801_v35, %v2038_v59  ;;  %v2076_v43 = vsub.f32 %v6811_v34, %v2038_v59 }
 0x317   : > { %v2088_v29 = vsub.f32 %v6821_v23, %v2038_v59  ;;  %v2100_v45 = vsub.f32 %v1966_v62, %v2038_v59  ;;  %v2112_v56 = vsub.f32 %v1976_v36, %v2038_v59  ;;  %v2124_v1 = vsub.f32 %v1986_v55, %v2038_v59 }
 0x318   : > { %v2042_v28 = vmul.f32 1.442695, %v2040_v9  ;;  %v2054_v19 = vmul.f32 1.442695, %v2052_v7  ;;  %v1991_v50 = vadd.f32 %v5143_v41, %v1846_v16  ;;  %v2066_v15 = vmul.f32 1.442695, %v2064_v57 }
 0x319   : > { %v2078_v48 = vmul.f32 1.442695, %v2076_v43  ;;  %v2090_v27 = vmul.f32 1.442695, %v2088_v29  ;;  %v2102_v18 = vmul.f32 1.442695, %v2100_v45 }
 0x31a   : > { %5317 = vpow2.f32 %v2042_v28  ;;  %v2039_v32 = vmax.f32 %v2035_v47, %v1991_v50  ;;  %v2114_v52 = vmul.f32 1.442695, %v2112_v56  ;;  %v2126_v5 = vmul.f32 1.442695, %v2124_v1 }
 0x31b   : > { %5319 = vpow2.f32 %v2054_v19 }
 0x31c   : > { %v2041_v17 = vsub.f32 %v6793_v6, %v2039_v32  ;;  %v2053_v35 = vsub.f32 %v6795_v3, %v2039_v32  ;;  %v2065_v34 = vsub.f32 %v6806_v39, %v2039_v32  ;;  %5321 = vpow2.f32 %v2066_v15 }
 0x31d   : > { %v2077_v23 = vsub.f32 %v6816_v61, %v2039_v32  ;;  %v2089_v62 = vsub.f32 %v6826_v46, %v2039_v32  ;;  %v2101_v4 = vsub.f32 %v6833_v24, %v2039_v32  ;;  %5323 = vpow2.f32 %v2078_v48 }
 0x31e   : > { %v2044_v38 = vmul.f32 1.442695, %v2041_v17  ;;  %v2056_v13 = vmul.f32 1.442695, %v2053_v35  ;;  %5325 = vpow2.f32 %v2090_v27  ;;  %v2113_v33 = vsub.f32 %v1981_v37, %v2039_v32 }
 0x31f   : > { %v2125_v21 = vsub.f32 %v1991_v50, %v2039_v32  ;;  %5327 = vpow2.f32 %v2102_v18  ;;  %v2068_v6 = vmul.f32 1.442695, %v2065_v34  ;;  %v2080_v3 = vmul.f32 1.442695, %v2077_v23 }
 0x320   : > { %5329 = vpow2.f32 %v2044_v38  ;;  %v2092_v39 = vmul.f32 1.442695, %v2089_v62  ;;  %v2104_v46 = vmul.f32 1.442695, %v2101_v4  ;;  %v2116_v42 = vmul.f32 1.442695, %v2113_v33 }
 0x321   : > { %5331 = vpow2.f32 %v2056_v13  ;;  %v2128_v58 = vmul.f32 1.442695, %v2125_v21 }
 0x322   : > { %5333 = vpow2.f32 %v2114_v52 }
 0x323   : > { %5335 = vpow2.f32 %v2068_v6 }
 0x324   : > { %5337 = vpow2.f32 %v2126_v5 }
 0x325   : > { %5339 = vpow2.f32 %v2080_v3 }
 0x326   : > { %5341 = vpow2.f32 %v2092_v39 }
 0x327   : > { %v5318_v61 = vpop.eup %5317  ;;  %5343 = vpow2.f32 %v2104_v46 }
 0x328   : > { %v5320_v24 = vpop.eup %5319  ;;  %5345 = vpow2.f32 %v2116_v42 }
 0x329   : > { %v2060_v44 = vadd.f32 %v5320_v24, %v5318_v61  ;;  %v5322_v2 = vpop.eup %5321  ;;  %5347 = vpow2.f32 %v2128_v58 }
 0x32a   : > { %v5324_v30 = vpop.eup %5323 }
 0x32b   : > { %v2072_v14 = vadd.f32 %v5322_v2, %v2060_v44  ;;  %v5326_v31 = vpop.eup %5325 }
 0x32c   : > { %v5328_v20 = vpop.eup %5327 }
 0x32d   : > { %v2084_v36 = vadd.f32 %v5324_v30, %v2072_v14  ;;  %v5330_v25 = vpop.eup %5329 }
 0x32e   : > { %v5332_v60 = vpop.eup %5331 }
 0x32f   : > { %v2096_v8 = vadd.f32 %v5326_v31, %v2084_v36  ;;  %v5334_v40 = vpop.eup %5333  ;;  %v2061_v54 = vadd.f32 %v5332_v60, %v5330_v25 }
 0x330   : > { %v5336_v12 = vpop.eup %5335 }
 0x331   : > { %v2108_v22 = vadd.f32 %v5328_v20, %v2096_v8  ;;  %v5338_v37 = vpop.eup %5337  ;;  %v2073_v0 = vadd.f32 %v5336_v12, %v2061_v54 }
 0x332   : > { %v5340_v47 = vpop.eup %5339 }
 0x333   : > { %v2120_v26 = vadd.f32 %v5334_v40, %v2108_v22  ;;  %v2085_v10 = vadd.f32 %v5340_v47, %v2073_v0  ;;  %v5342_v53 = vpop.eup %5341 }
 0x334   : > { %v5344_v63 = vpop.eup %5343 }
 0x335   : > { %v2132_v11 = vadd.f32 %v5338_v37, %v2120_v26  ;;  %v2097_v55 = vadd.f32 %v5342_v53, %v2085_v10  ;;  %v5346_v59 = vpop.eup %5345 }
 0x336   : > { %v5348_v16 = vpop.eup %5347 }
 0x337   : > { %5349 = vrcp.f32 %v2132_v11  ;;  %v2109_v51 = vadd.f32 %v5344_v63, %v2097_v55 }
 0x339   : > { %v2121_v41 = vadd.f32 %v5346_v59, %v2109_v51 }
 0x33b   : > { %v2133_v9 = vadd.f32 %v5348_v16, %v2121_v41 }
 0x33d   : > { %5351 = vrcp.f32 %v2133_v9 }
 0x344   : > { %v5350_v7 = vpop.eup %5349 }
 0x345   : > { %v6853_v57 = vmul.f32 %v5350_v7, %v5338_v37  ;;  %v2140_v43 = vmul.f32 %v5350_v7, %v5318_v61  ;;  %v2160_v29 = vmul.f32 %v5350_v7, %v5320_v24  ;;  %v6855_v45 = vmul.f32 %v5350_v7, %v5322_v2 }
 0x346   : > { %v6857_v56 = vmul.f32 %v5350_v7, %v5324_v30  ;;  %v6859_v1 = vmul.f32 %v5350_v7, %v5326_v31  ;;  %v6861_v28 = vmul.f32 %v5350_v7, %v5328_v20  ;;  %v6863_v19 = vmul.f32 %v5350_v7, %v5334_v40 }
 0x347   : > { %5353 = vrsqrt.f32 %v2140_v43  ;;  %vm2144_vm1 = vcmp.eq.f32.partialorder %v2140_v43, inf  ;;  %v2147_v62 = vand.u32 2147483648, %v2140_v43  ;;  %vm2146_vm2 = vcmp.eq.f32.partialorder %v2140_v43, 0.0 }
 0x348   : > { %5355 = vrsqrt.f32 %v2160_v29  ;;  %vm2164_vm5 = vcmp.eq.f32.partialorder %v2160_v29, inf  ;;  %v2167_v42 = vand.u32 2147483648, %v2160_v29  ;;  %vm2166_vm6 = vcmp.eq.f32.partialorder %v2160_v29, 0.0 }
 0x349   : > { %vm2184_vm9 = vcmp.eq.f32.partialorder %v6855_v45, inf  ;;  %vm2186_vm10 = vcmp.eq.f32.partialorder %v6855_v45, 0.0  ;;  %vm2204_vm13 = vcmp.eq.f32.partialorder %v6857_v56, inf  ;;  %v2207_v10 = vand.u32 2147483648, %v6857_v56 }
 0x34a   : > { %v5352_v50 = vpop.eup %5351  ;;  %vm2206_vm14 = vcmp.eq.f32.partialorder %v6857_v56, 0.0 }
 0x34b   : > { %v6865_v15 = vmul.f32 %v5352_v50, %v5348_v16  ;;  %v2141_v32 = vmul.f32 %v5352_v50, %v5330_v25  ;;  %v2161_v48 = vmul.f32 %v5352_v50, %v5332_v60  ;;  %v6867_v27 = vmul.f32 %v5352_v50, %v5336_v12 }
 0x34c   : > { %v6869_v18 = vmul.f32 %v5352_v50, %v5340_v47  ;;  %v6871_v17 = vmul.f32 %v5352_v50, %v5342_v53  ;;  %v6873_v35 = vmul.f32 %v5352_v50, %v5344_v63  ;;  %v6876_v4 = vmul.f32 %v5352_v50, %v5346_v59 }
 0x34d   : > { %5357 = vrsqrt.f32 %v2141_v32  ;;  %vm2151_vm3 = vcmp.eq.f32.partialorder %v2141_v32, inf  ;;  %v2154_v3 = vand.u32 2147483648, %v2141_v32  ;;  %vm2153_vm4 = vcmp.eq.f32.partialorder %v2141_v32, 0.0 }
 0x34e   : > { %5359 = vrsqrt.f32 %v2161_v48  ;;  %vm2171_vm7 = vcmp.eq.f32.partialorder %v2161_v48, inf  ;;  %v2174_v31 = vand.u32 2147483648, %v2161_v48  ;;  %vm2173_vm8 = vcmp.eq.f32.partialorder %v2161_v48, 0.0 }
 0x34f   : > { %5361 = vrsqrt.f32 %v6855_v45  ;;  %v2187_v60 = vand.u32 2147483648, %v6855_v45  ;;  %vm2191_vm11 = vcmp.eq.f32.partialorder %v6867_v27, inf  ;;  %v2194_v37 = vand.u32 2147483648, %v6867_v27 }
 0x350   : > { %5363 = vrsqrt.f32 %v6867_v27  ;;  %vm2193_vm12 = vcmp.eq.f32.partialorder %v6867_v27, 0.0  ;;  %vm2211_vm15 = vcmp.eq.f32.partialorder %v6869_v18, inf  ;;  %v2214_v59 = vand.u32 2147483648, %v6869_v18 }
 0x351   : > { %5365 = vrsqrt.f32 %v6857_v56  ;;  %vm2213_vm0 = vcmp.eq.f32.partialorder %v6869_v18, 0.0 }
 0x352   : > { %5367 = vrsqrt.f32 %v6869_v18 }
 0x353   : > { %5369 = vrsqrt.f32 %v6859_v1 }
 0x354   : > { %v5354_v34 = vpop.eup %5353  ;;  %5371 = vrsqrt.f32 %v6871_v17 }
 0x355   : > { %v2143_v23 = vmul.f32 %v5354_v34, %v2140_v43  ;;  %v5356_v52 = vpop.eup %5355  ;;  %5373 = vrsqrt.f32 %v6861_v28  ;;  %v2247_v34 = vand.u32 2147483648, %v6861_v28 }
 0x356   : > { %v2163_v6 = vmul.f32 %v5356_v52, %v2160_v29  ;;  %5375 = vrsqrt.f32 %v6873_v35 }
 0x357   : > { %v2145_v38 = vsel %vm2144_vm1, %v2140_v43, %v2143_v23  ;;  %5377 = vrsqrt.f32 %v6863_v19  ;;  %vm2224_vm1 = vcmp.eq.f32.partialorder %v6859_v1, inf  ;;  %v2227_v43 = vand.u32 2147483648, %v6859_v1 }
 0x358   : > { %v2148_v13 = vsel %vm2146_vm2, %v2147_v62, %v2145_v38  ;;  %v2165_v46 = vsel %vm2164_vm5, %v2160_v29, %v2163_v6  ;;  %5379 = vrsqrt.f32 %v6876_v4  ;;  %vm2226_vm2 = vcmp.eq.f32.partialorder %v6859_v1, 0.0 }
 0x359   : > { %2411 = vmatmul.mubr.f32.vlgmr.msra.gmra.mxu0 %v2148_v13  ;;  %v2168_v2 = vsel %vm2166_vm6, %v2167_v42, %v2165_v46  ;;  %5381 = vrsqrt.f32 %v6853_v57  ;;  %vm2244_vm5 = vcmp.eq.f32.partialorder %v6861_v28, inf  ;;  %vm2246_vm6 = vcmp.eq.f32.partialorder %v6861_v28, 0.0 }
 0x35a   : > { %2416 = vmatprep.mubr.f32.mxu0 %v9138_v49  ;;  %v5358_v33 = vpop.eup %5357  ;;  %5383 = vrsqrt.f32 %v6865_v15  ;;  %v2254_v13 = vand.u32 2147483648, %v6873_v35  ;;  %v2267_v6 = vand.u32 2147483648, %v6863_v19 }
 0x35b   : > { %v2150_v21 = vmul.f32 %v5358_v33, %v2141_v32  ;;  %v5360_v5 = vpop.eup %5359 }
 0x35c   : > { %v2170_v24 = vmul.f32 %v5360_v5, %v2161_v48  ;;  %v5362_v44 = vpop.eup %5361 }
 0x35d   : > { %v2152_v39 = vsel %vm2151_vm3, %v2141_v32, %v2150_v21  ;;  %v2183_v58 = vmul.f32 %v5362_v44, %v6855_v45  ;;  %v5364_v30 = vpop.eup %5363  ;;  %vm2231_vm3 = vcmp.eq.f32.partialorder %v6871_v17, inf  ;;  %v2234_v32 = vand.u32 2147483648, %v6871_v17 }
 0x35e   : > { %v2155_v61 = vsel %vm2153_vm4, %v2154_v3, %v2152_v39  ;;  %v2172_v14 = vsel %vm2171_vm7, %v2161_v48, %v2170_v24  ;;  %v2190_v25 = vmul.f32 %v5364_v30, %v6867_v27  ;;  %v5366_v8 = vpop.eup %5365  ;;  %vm2233_vm4 = vcmp.eq.f32.partialorder %v6871_v17, 0.0 }
 0x35f   : > { %2417 = vmatmul.mubr.f32.gmra.mxu0 %v2155_v61  ;;  %v2175_v36 = vsel %vm2173_vm8, %v2174_v31, %v2172_v14  ;;  %v2185_v20 = vsel %vm2184_vm9, %v6855_v45, %v2183_v58  ;;  %v2203_v54 = vmul.f32 %v5366_v8, %v6857_v56  ;;  %v5368_v12 = vpop.eup %5367  ;;  %vm2251_vm7 = vcmp.eq.f32.partialorder %v6873_v35, inf  ;;  %v6978_v8 = vld [vmem:[%s6969_s25 + $0x8] sm:$0xff] }
 0x360   : > { %2422 = vmatprep.mubr.f32.mxu0 %v9138_v49  ;;  %v2188_v40 = vsel %vm2186_vm10, %v2187_v60, %v2185_v20  ;;  %v2192_v22 = vsel %vm2191_vm11, %v6867_v27, %v2190_v25  ;;  %v2210_v47 = vmul.f32 %v5368_v12, %v6869_v18  ;;  %v5370_v11 = vpop.eup %5369  ;;  %vm2253_vm8 = vcmp.eq.f32.partialorder %v6873_v35, 0.0 }
 0x361   : > { %v2195_v26 = vsel %vm2193_vm12, %v2194_v37, %v2192_v22  ;;  %v2205_v0 = vsel %vm2204_vm13, %v6857_v56, %v2203_v54  ;;  %v2223_v63 = vmul.f32 %v5370_v11, %v6859_v1  ;;  %v5372_v51 = vpop.eup %5371  ;;  %vm2264_vm9 = vcmp.eq.f32.partialorder %v6863_v19, inf  ;;  %v6984_v22 = vld [vmem:[%s6969_s25 + $0x10] sm:$0xff]  ;;  %v6993_v37 = vld [vmem:[%s6969_s25 + $0x18] sm:$0xff] }
 0x362   : > { %v2208_v53 = vsel %vm2206_vm14, %v2207_v10, %v2205_v0  ;;  %v2212_v55 = vsel %vm2211_vm15, %v6869_v18, %v2210_v47  ;;  %v2230_v9 = vmul.f32 %v5372_v51, %v6871_v17  ;;  %v5374_v7 = vpop.eup %5373  ;;  %vm2266_vm10 = vcmp.eq.f32.partialorder %v6863_v19, 0.0  ;;  %v7002_v47 = vld [vmem:[%s6969_s25 + $0x20] sm:$0xff]  ;;  %v7021_v51 = vld [vmem:[%s6969_s25 + $0x30] sm:$0xff] }
 0x363   : > { %2423 = vmatmul.mubr.f32.gmra.mxu0 %v2168_v2  ;;  %v2215_v41 = vsel %vm2213_vm0, %v2214_v59, %v2212_v55  ;;  %v2225_v16 = vsel %vm2224_vm1, %v6859_v1, %v2223_v63  ;;  %v2243_v56 = vmul.f32 %v5374_v7, %v6861_v28  ;;  %v5376_v50 = vpop.eup %5375  ;;  %vm2271_vm11 = vcmp.eq.f32.partialorder %v6876_v4, inf }
 0x364   : > { %2428 = vmatprep.mubr.f32.mxu0 %v9138_v49  ;;  %v2228_v29 = vsel %vm2226_vm2, %v2227_v43, %v2225_v16  ;;  %v2232_v45 = vsel %vm2231_vm3, %v6871_v17, %v2230_v9  ;;  %v2250_v27 = vmul.f32 %v5376_v50, %v6873_v35  ;;  %v5378_v18 = vpop.eup %5377  ;;  %v2274_v61 = vand.u32 2147483648, %v6876_v4  ;;  %v7033_v16 = vld [vmem:[%s6969_s25 + $0x38] sm:$0xff]  ;;  %v7044_v43 = vld [vmem:[%s6969_s25 + $0x40] sm:$0xff] }
 0x365   : > { %v2235_v48 = vsel %vm2233_vm4, %v2234_v32, %v2232_v45  ;;  %v2245_v1 = vsel %vm2244_vm5, %v6861_v28, %v2243_v56  ;;  %v2263_v62 = vmul.f32 %v5378_v18, %v6863_v19  ;;  %v5380_v38 = vpop.eup %5379  ;;  %vm2273_vm12 = vcmp.eq.f32.partialorder %v6876_v4, 0.0  ;;  %v7055_v56 = vld [vmem:[%s6969_s25 + $0x48] sm:$0xff]  ;;  %v7064_v32 = vld [vmem:[%s6969_s25 + $0x50] sm:$0xff] }
 0x366   : > { %v2248_v23 = vsel %vm2246_vm6, %v2247_v34, %v2245_v1  ;;  %v2252_v17 = vsel %vm2251_vm7, %v6873_v35, %v2250_v27  ;;  %v2270_v33 = vmul.f32 %v5380_v38, %v6876_v4  ;;  %v5382_v21 = vpop.eup %5381  ;;  %vm2284_vm13 = vcmp.eq.f32.partialorder %v6853_v57, inf  ;;  %v7082_v1 = vld [vmem:[%s6969_s25 + $0x60] sm:$0xff]  ;;  %v7093_v18 = vld [vmem:[%s6969_s25 + $0x68] sm:$0xff] }
 0x367   : > { %2429 = vmatmul.mubr.f32.gmra.mxu0 %v2175_v36  ;;  %v2255_v52 = vsel %vm2253_vm8, %v2254_v13, %v2252_v17  ;;  %v2265_v28 = vsel %vm2264_vm9, %v6863_v19, %v2263_v62  ;;  %v2283_v3 = vmul.f32 %v5382_v21, %v6853_v57  ;;  %v5384_v39 = vpop.eup %5383  ;;  %v2287_v44 = vand.u32 2147483648, %v6853_v57  ;;  %v6972_v36 = vld [vmem:[%s6969_s25] sm:$0xff]  ;;  %v7115_v62 = vld [vmem:[%s6969_s25 + $0x78] sm:$0xff] }
 0x368   : > { %2434 = vmatprep.mubr.f32.mxu0 %v9138_v49  ;;  %v2268_v5 = vsel %vm2266_vm10, %v2267_v6, %v2265_v28  ;;  %v2272_v35 = vsel %vm2271_vm11, %v6876_v4, %v2270_v33  ;;  %v2290_v24 = vmul.f32 %v5384_v39, %v6865_v15  ;;  %vm2286_vm14 = vcmp.eq.f32.partialorder %v6853_v57, 0.0 }
 0x369   : > { %v2275_v46 = vsel %vm2273_vm12, %v2274_v61, %v2272_v35  ;;  %v2285_v19 = vsel %vm2284_vm13, %v6853_v57, %v2283_v3  ;;  %vm2291_vm15 = vcmp.eq.f32.partialorder %v6865_v15, inf  ;;  %v2294_v2 = vand.u32 2147483648, %v6865_v15 }
 0x36a   : > { %v2288_v42 = vsel %vm2286_vm14, %v2287_v44, %v2285_v19  ;;  %v2292_v4 = vsel %vm2291_vm15, %v6865_v15, %v2290_v24  ;;  %vm2293_vm0 = vcmp.eq.f32.partialorder %v6865_v15, 0.0  ;;  %vm2559_vm1 = vcmask 130048  }
 0x36b   : > { %2435 = vmatmul.mubr.f32.gmra.mxu0 %v2188_v40  ;;  %v2295_v14 = vsel %vm2293_vm0, %v2294_v2, %v2292_v4 }
 0x36c   : > { %2440 = vmatprep.mubr.f32.mxu0 %v9138_v49 }
 0x36f   : > { %2441 = vmatmul.mubr.f32.gmra.mxu0 %v2195_v26 }
 0x370   : > { %2446 = vmatprep.mubr.f32.mxu0 %v9138_v49 }
 0x373   : > { %2447 = vmatmul.mubr.f32.gmra.mxu0 %v2208_v53  ;;  %v7011_v53 = vld [vmem:[%s6969_s25 + $0x28] sm:$0xff] }
 0x374   : > { %2452 = vmatprep.mubr.f32.mxu0 %v9138_v49 }
 0x377   : > { %2453 = vmatmul.mubr.f32.gmra.mxu0 %v2215_v41 }
 0x378   : > { %2458 = vmatprep.mubr.f32.mxu0 %v9138_v49 }
 0x37b   : > { %2459 = vmatmul.mubr.f32.gmra.mxu0 %v2228_v29 }
 0x37c   : > { %2464 = vmatprep.mubr.f32.mxu0 %v9138_v49 }
 0x37f   : > { %2465 = vmatmul.mubr.f32.gmra.mxu0 %v2235_v48  ;;  %v7073_v48 = vld [vmem:[%s6969_s25 + $0x58] sm:$0xff] }
 0x380   : > { %2470 = vmatprep.mubr.f32.mxu0 %v9138_v49 }
 0x383   : > { %2471 = vmatmul.mubr.f32.gmra.mxu0 %v2248_v23  ;;  %v7104_v23 = vld [vmem:[%s6969_s25 + $0x70] sm:$0xff]  ;;  %s5391_s25 = scalar_lea.vmem %s5390_s24, 8192 }
 0x384   : > { %2476 = vmatprep.mubr.f32.mxu0 %v9138_v49  ;;  %p5393_p1 = scmp.lt.s32.totalorder %s5391_s25, %s5385_s22 }
 0x386   : > { %p5394_p2 = por %p5393_p1, %p5392_p0 }
 0x387   : > { %2477 = vmatmul.mubr.f32.gmra.mxu0 %v2255_v52 }
 0x388   : > { %2482 = vmatprep.mubr.f32.mxu0 %v9138_v49  ;;  %p5395_p3 = pnand %p5394_p2, %p5388_p13 }
 0x38b   : > { %2483 = vmatmul.mubr.f32.gmra.mxu0 %v2268_v5 }
 0x38c   : > { %2488 = vmatprep.mubr.f32.mxu0 %v9138_v49 }
 0x38f   : > { %2489 = vmatmul.mubr.f32.gmra.mxu0 %v2275_v46 }
 0x390   : > { %2494 = vmatprep.mubr.f32.mxu0 %v9138_v49 }
 0x393   : > { %2495 = vmatmul.mubr.f32.gmra.mxu0 %v2288_v42 }
 0x394   : > { %2500 = vmatprep.mubr.f32.mxu0 %v9138_v49 }
 0x397   : > { %2501 = vmatmul.mubr.f32.gmra.mxu0 %v2295_v14 }
 0x398   : > { %2837 = vmatprep.mubr.f32.mxu0 %v9138_v49 }
 0x419   : > { %v2412_v58 = vpop.f32.mrf.mxu0 }
 0x41b   : > { %v2414_v57 = vpop.f32.mrf.mxu0 }
 0x41f   : > { %v2418_v30 = vpop.f32.mrf.mxu0 }
 0x421   : > { %v2420_v31 = vpop.f32.mrf.mxu0 }
 0x422   : > { %2636 = vmatprep.subr.mxu1 %v2420_v31 }
 0x423   : > { %v2424_v15 = vpop.f32.mrf.mxu0  ;;  %2637 = vmatpush1.msra.mxu1 %v2418_v30 }
 0x424   : > { %2638 = vmatprep.subr.mxu1 %v2414_v57 }
 0x425   : > { %v2426_v20 = vpop.f32.mrf.mxu0  ;;  %2639 = vmatpush1.msra.mxu1 %v2412_v58 }
 0x426   : > { %4776 = vmatmul.mubr.msk.f32.vlgmr.msra.gmra.mxu1 %vm2559_vm1, %v6972_v36 }
 0x427   : > { %v2430_v25 = vpop.f32.mrf.mxu0  ;;  %2678 = vmatprep.mubr.f32.mxu1 %v9138_v49 }
 0x429   : > { %v2432_v60 = vpop.f32.mrf.mxu0 }
 0x42a   : > { %4777 = vmatmul.mubr.msk.f32.gmra.mxu1 %vm2559_vm1, %v6978_v8  ;;  %2801 = vmatprep.subr.mxu0 %v2432_v60 }
 0x42b   : > { %v2436_v40 = vpop.f32.mrf.mxu0  ;;  %2802 = vmatpush1.msra.mxu0 %v2430_v25  ;;  %2684 = vmatprep.mubr.f32.mxu1 %v9138_v49 }
 0x42c   : > { %2803 = vmatprep.subr.mxu0 %v2426_v20 }
 0x42d   : > { %v2438_v54 = vpop.f32.mrf.mxu0  ;;  %2804 = vmatpush1.msra.mxu0 %v2424_v15 }
 0x42e   : > { %4778 = vmatmul.mubr.msk.f32.gmra.mxu1 %vm2559_vm1, %v6984_v22  ;;  %4792 = vmatmul.mubr.msk.f32.vlgmr.msra.gmra.mxu0 %vm2559_vm1, %v6972_v36 }
 0x42f   : > { %v2442_v12 = vpop.f32.mrf.mxu0  ;;  %2690 = vmatprep.mubr.f32.mxu1 %v9138_v49  ;;  %2843 = vmatprep.mubr.f32.mxu0 %v9138_v49 }
 0x431   : > { %v2444_v26 = vpop.f32.mrf.mxu0 }
 0x432   : > { %4779 = vmatmul.mubr.msk.f32.gmra.mxu1 %vm2559_vm1, %v6993_v37  ;;  %4793 = vmatmul.mubr.msk.f32.gmra.mxu0 %vm2559_vm1, %v6978_v8 }
 0x433   : > { %3062 = vmatprep.subr.mxu1 %v2444_v26  ;;  %v2448_v0 = vpop.f32.mrf.mxu0  ;;  %2696 = vmatprep.mubr.f32.mxu1 %v9138_v49 }
 0x434   : > { %3063 = vmatpush1.msra.mxu1 %v2442_v12  ;;  %2849 = vmatprep.mubr.f32.mxu0 %v9138_v49 }
 0x435   : > { %3064 = vmatprep.subr.mxu1 %v2438_v54  ;;  %v2450_v11 = vpop.f32.mrf.mxu0 }
 0x436   : > { %3065 = vmatpush1.msra.mxu1 %v2436_v40  ;;  %4794 = vmatmul.mubr.msk.f32.gmra.mxu0 %vm2559_vm1, %v6984_v22 }
 0x437   : > { %4780 = vmatmul.mubr.msk.f32.gmra.mxu1 %vm2559_vm1, %v7002_v47  ;;  %v2454_v10 = vpop.f32.mrf.mxu0  ;;  %2855 = vmatprep.mubr.f32.mxu0 %v9138_v49 }
 0x438   : > { %2702 = vmatprep.mubr.f32.mxu1 %v9138_v49 }
 0x439   : > { %v2456_v55 = vpop.f32.mrf.mxu0 }
 0x43a   : > { %4795 = vmatmul.mubr.msk.f32.gmra.mxu0 %vm2559_vm1, %v6993_v37  ;;  %3323 = vmatprep.subr.mxu0 %v2456_v55 }
 0x43b   : > { %4781 = vmatmul.mubr.msk.f32.gmra.mxu1 %vm2559_vm1, %v7011_v53  ;;  %v7017_v63 = vpop.f32.mrf.mxu0  ;;  %3324 = vmatpush1.msra.mxu0 %v2454_v10 }
 0x43c   : > { %3325 = vmatprep.subr.mxu0 %v2450_v11  ;;  %2708 = vmatprep.mubr.f32.mxu1 %v9138_v49 }
 0x43d   : > { %v7023_v59 = vpop.f32.mrf.mxu0  ;;  %2861 = vmatprep.mubr.f32.mxu0 %v9138_v49  ;;  %3326 = vmatpush1.msra.mxu0 %v2448_v0 }
 0x43e   : > { %4796 = vmatmul.mubr.msk.f32.gmra.mxu0 %vm2559_vm1, %v7002_v47 }
 0x43f   : > { %4782 = vmatmul.mubr.msk.f32.gmra.mxu1 %vm2559_vm1, %v7021_v51  ;;  %v2466_v41 = vpop.f32.mrf.mxu0  ;;  %2867 = vmatprep.mubr.f32.mxu0 %v9138_v49 }
 0x440   : > { %2714 = vmatprep.mubr.f32.mxu1 %v9138_v49 }
 0x441   : > { %v2468_v9 = vpop.f32.mrf.mxu0 }
 0x442   : > { %4797 = vmatmul.mubr.msk.f32.gmra.mxu0 %vm2559_vm1, %v7011_v53  ;;  %3584 = vmatprep.subr.mxu1 %v2468_v9 }
 0x443   : > { %4783 = vmatmul.mubr.msk.f32.gmra.mxu1 %vm2559_vm1, %v7033_v16  ;;  %v7039_v7 = vpop.f32.mrf.mxu0  ;;  %2873 = vmatprep.mubr.f32.mxu0 %v9138_v49 }
 0x444   : > { %2720 = vmatprep.mubr.f32.mxu1 %v9138_v49 }
 0x445   : > { %v7046_v29 = vpop.f32.mrf.mxu0 }
 0x446   : > { %4798 = vmatmul.mubr.msk.f32.gmra.mxu0 %vm2559_vm1, %v7021_v51 }
 0x447   : > { %4784 = vmatmul.mubr.msk.f32.gmra.mxu1 %vm2559_vm1, %v7044_v43  ;;  %v2478_v45 = vpop.f32.mrf.mxu0  ;;  %2879 = vmatprep.mubr.f32.mxu0 %v9138_v49 }
 0x448   : > { %2726 = vmatprep.mubr.f32.mxu1 %v9138_v49 }
 0x449   : > { %v2480_v50 = vpop.f32.mrf.mxu0 }
 0x44a   : > { %4799 = vmatmul.mubr.msk.f32.gmra.mxu0 %vm2559_vm1, %v7033_v16  ;;  %3845 = vmatprep.subr.mxu0 %v2480_v50 }
 0x44b   : > { %4785 = vmatmul.mubr.msk.f32.gmra.mxu1 %vm2559_vm1, %v7055_v56  ;;  %2885 = vmatprep.mubr.f32.mxu0 %v9138_v49  ;;  %v7084_v27 = vpop.f32.mrf.mxu0 }
 0x44c   : > { %2732 = vmatprep.mubr.f32.mxu1 %v9138_v49 }
 0x44d   : > { %v7095_v34 = vpop.f32.mrf.mxu0 }
 0x44e   : > { %4800 = vmatmul.mubr.msk.f32.gmra.mxu0 %vm2559_vm1, %v7044_v43 }
 0x44f   : > { %4786 = vmatmul.mubr.msk.f32.gmra.mxu1 %vm2559_vm1, %v7064_v32  ;;  %2891 = vmatprep.mubr.f32.mxu0 %v9138_v49  ;;  %v7106_v17 = vpop.f32.mrf.mxu0 }
 0x450   : > { %2738 = vmatprep.mubr.f32.mxu1 %v9138_v49 }
 0x451   : > { %v2492_v38 = vpop.f32.mrf.mxu0 }
 0x452   : > { %4801 = vmatmul.mubr.msk.f32.gmra.mxu0 %vm2559_vm1, %v7055_v56 }
 0x453   : > { %4787 = vmatmul.mubr.msk.f32.gmra.mxu1 %vm2559_vm1, %v7073_v48  ;;  %2897 = vmatprep.mubr.f32.mxu0 %v9138_v49  ;;  %v7123_v13 = vpop.f32.mrf.mxu0 }
 0x454   : > { %2744 = vmatprep.mubr.f32.mxu1 %v9138_v49 }
 0x455   : > { %v7131_v52 = vpop.f32.mrf.mxu0 }
 0x456   : > { %4802 = vmatmul.mubr.msk.f32.gmra.mxu0 %vm2559_vm1, %v7064_v32 }
 0x457   : > { %4788 = vmatmul.mubr.msk.f32.gmra.mxu1 %vm2559_vm1, %v7082_v1  ;;  %2903 = vmatprep.mubr.f32.mxu0 %v9138_v49  ;;  %v7141_v28 = vpop.f32.mrf.mxu0 }
 0x458   : > { %2750 = vmatprep.mubr.f32.mxu1 %v9138_v49 }
 0x459   : > { %v2504_v33 = vpop.f32.mrf.mxu0 }
 0x45a   : > { %4803 = vmatmul.mubr.msk.f32.gmra.mxu0 %vm2559_vm1, %v7073_v48 }
 0x45b   : > { %4789 = vmatmul.mubr.msk.f32.gmra.mxu1 %vm2559_vm1, %v7093_v18  ;;  %2909 = vmatprep.mubr.f32.mxu0 %v9138_v49 }
 0x45c   : > { %2756 = vmatprep.mubr.f32.mxu1 %v9138_v49 }
 0x45e   : > { %4804 = vmatmul.mubr.msk.f32.gmra.mxu0 %vm2559_vm1, %v7082_v1 }
 0x45f   : > { %4790 = vmatmul.mubr.msk.f32.gmra.mxu1 %vm2559_vm1, %v7104_v23  ;;  %2915 = vmatprep.mubr.f32.mxu0 %v9138_v49 }
 0x460   : > { %2762 = vmatprep.mubr.f32.mxu1 %v9138_v49 }
 0x462   : > { %4805 = vmatmul.mubr.msk.f32.gmra.mxu0 %vm2559_vm1, %v7093_v18 }
 0x463   : > { %4791 = vmatmul.mubr.msk.f32.gmra.mxu1 %vm2559_vm1, %v7115_v62  ;;  %2921 = vmatprep.mubr.f32.mxu0 %v9138_v49 }
 0x464   : > { %3098 = vmatprep.mubr.f32.mxu1 %v9138_v49 }
 0x466   : > { %4806 = vmatmul.mubr.msk.f32.gmra.mxu0 %vm2559_vm1, %v7104_v23 }
 0x467   : > { %4808 = vmatmul.mubr.msk.f32.vlgmr.msra.gmra.mxu1 %vm2559_vm1, %v6972_v36  ;;  %2927 = vmatprep.mubr.f32.mxu0 %v9138_v49 }
 0x468   : > { %3585 = vmatpush1.msra.mxu1 %v2466_v41  ;;  %3104 = vmatprep.mubr.f32.mxu1 %v9138_v49 }
 0x469   : > { %3586 = vmatprep.subr.mxu1 %v7023_v59 }
 0x46a   : > { %3587 = vmatpush1.msra.mxu1 %v7017_v63  ;;  %4807 = vmatmul.mubr.msk.f32.gmra.mxu0 %vm2559_vm1, %v7115_v62 }
 0x46b   : > { %4106 = vmatprep.subr.mxu1 %v2492_v38  ;;  %4809 = vmatmul.mubr.msk.f32.gmra.mxu1 %vm2559_vm1, %v6978_v8 }
 0x46c   : > { %3110 = vmatprep.mubr.f32.mxu1 %v9138_v49  ;;  %3359 = vmatprep.mubr.f32.mxu0 %v9138_v49 }
 0x46e   : > { %4824 = vmatmul.mubr.msk.f32.vlgmr.msra.gmra.mxu0 %vm2559_vm1, %v6972_v36 }
 0x46f   : > { %4810 = vmatmul.mubr.msk.f32.gmra.mxu1 %vm2559_vm1, %v6984_v22  ;;  %3846 = vmatpush1.msra.mxu0 %v2478_v45 }
 0x470   : > { %3847 = vmatprep.subr.mxu0 %v7046_v29  ;;  %3116 = vmatprep.mubr.f32.mxu1 %v9138_v49 }
 0x471   : > { %3848 = vmatpush1.msra.mxu0 %v7039_v7  ;;  %3365 = vmatprep.mubr.f32.mxu0 %v9138_v49 }
 0x472   : > { %4367 = vmatprep.subr.mxu0 %v2504_v33  ;;  %4825 = vmatmul.mubr.msk.f32.gmra.mxu0 %vm2559_vm1, %v6978_v8 }
 0x473   : > { %4811 = vmatmul.mubr.msk.f32.gmra.mxu1 %vm2559_vm1, %v6993_v37  ;;  %3371 = vmatprep.mubr.f32.mxu0 %v9138_v49 }
 0x474   : > { %3122 = vmatprep.mubr.f32.mxu1 %v9138_v49 }
 0x476   : > { %4826 = vmatmul.mubr.msk.f32.gmra.mxu0 %vm2559_vm1, %v6984_v22 }
 0x477   : > { %4812 = vmatmul.mubr.msk.f32.gmra.mxu1 %vm2559_vm1, %v7002_v47  ;;  %3377 = vmatprep.mubr.f32.mxu0 %v9138_v49 }
 0x478   : > { %3128 = vmatprep.mubr.f32.mxu1 %v9138_v49 }
 0x47a   : > { %4827 = vmatmul.mubr.msk.f32.gmra.mxu0 %vm2559_vm1, %v6993_v37 }
 0x47b   : > { %4813 = vmatmul.mubr.msk.f32.gmra.mxu1 %vm2559_vm1, %v7011_v53  ;;  %3383 = vmatprep.mubr.f32.mxu0 %v9138_v49 }
 0x47c   : > { %3134 = vmatprep.mubr.f32.mxu1 %v9138_v49 }
 0x47e   : > { %4828 = vmatmul.mubr.msk.f32.gmra.mxu0 %vm2559_vm1, %v7002_v47 }
 0x47f   : > { %4814 = vmatmul.mubr.msk.f32.gmra.mxu1 %vm2559_vm1, %v7021_v51  ;;  %3389 = vmatprep.mubr.f32.mxu0 %v9138_v49 }
 0x480   : > { %3140 = vmatprep.mubr.f32.mxu1 %v9138_v49 }
 0x482   : > { %4829 = vmatmul.mubr.msk.f32.gmra.mxu0 %vm2559_vm1, %v7011_v53 }
 0x483   : > { %4815 = vmatmul.mubr.msk.f32.gmra.mxu1 %vm2559_vm1, %v7033_v16  ;;  %3395 = vmatprep.mubr.f32.mxu0 %v9138_v49 }
 0x484   : > { %3146 = vmatprep.mubr.f32.mxu1 %v9138_v49 }
 0x486   : > { %4830 = vmatmul.mubr.msk.f32.gmra.mxu0 %vm2559_vm1, %v7021_v51 }
 0x487   : > { %4816 = vmatmul.mubr.msk.f32.gmra.mxu1 %vm2559_vm1, %v7044_v43  ;;  %3401 = vmatprep.mubr.f32.mxu0 %v9138_v49 }
 0x488   : > { %3152 = vmatprep.mubr.f32.mxu1 %v9138_v49 }
 0x48a   : > { %4831 = vmatmul.mubr.msk.f32.gmra.mxu0 %vm2559_vm1, %v7033_v16 }
 0x48b   : > { %4817 = vmatmul.mubr.msk.f32.gmra.mxu1 %vm2559_vm1, %v7055_v56  ;;  %3407 = vmatprep.mubr.f32.mxu0 %v9138_v49 }
 0x48c   : > { %3158 = vmatprep.mubr.f32.mxu1 %v9138_v49 }
 0x48e   : > { %4832 = vmatmul.mubr.msk.f32.gmra.mxu0 %vm2559_vm1, %v7044_v43 }
 0x48f   : > { %4818 = vmatmul.mubr.msk.f32.gmra.mxu1 %vm2559_vm1, %v7064_v32  ;;  %3413 = vmatprep.mubr.f32.mxu0 %v9138_v49 }
 0x490   : > { %3164 = vmatprep.mubr.f32.mxu1 %v9138_v49 }
 0x492   : > { %4833 = vmatmul.mubr.msk.f32.gmra.mxu0 %vm2559_vm1, %v7055_v56 }
 0x493   : > { %4819 = vmatmul.mubr.msk.f32.gmra.mxu1 %vm2559_vm1, %v7073_v48  ;;  %3419 = vmatprep.mubr.f32.mxu0 %v9138_v49 }
 0x494   : > { %3170 = vmatprep.mubr.f32.mxu1 %v9138_v49 }
 0x496   : > { %4834 = vmatmul.mubr.msk.f32.gmra.mxu0 %vm2559_vm1, %v7064_v32 }
 0x497   : > { %4820 = vmatmul.mubr.msk.f32.gmra.mxu1 %vm2559_vm1, %v7082_v1  ;;  %3425 = vmatprep.mubr.f32.mxu0 %v9138_v49 }
 0x498   : > { %3176 = vmatprep.mubr.f32.mxu1 %v9138_v49 }
 0x49a   : > { %4835 = vmatmul.mubr.msk.f32.gmra.mxu0 %vm2559_vm1, %v7073_v48 }
 0x49b   : > { %4821 = vmatmul.mubr.msk.f32.gmra.mxu1 %vm2559_vm1, %v7093_v18  ;;  %3431 = vmatprep.mubr.f32.mxu0 %v9138_v49 }
 0x49c   : > { %3182 = vmatprep.mubr.f32.mxu1 %v9138_v49 }
 0x49e   : > { %4836 = vmatmul.mubr.msk.f32.gmra.mxu0 %vm2559_vm1, %v7082_v1 }
 0x49f   : > { %4822 = vmatmul.mubr.msk.f32.gmra.mxu1 %vm2559_vm1, %v7104_v23  ;;  %3437 = vmatprep.mubr.f32.mxu0 %v9138_v49 }
 0x4a0   : > { %3188 = vmatprep.mubr.f32.mxu1 %v9138_v49 }
 0x4a2   : > { %4837 = vmatmul.mubr.msk.f32.gmra.mxu0 %vm2559_vm1, %v7093_v18 }
 0x4a3   : > { %4823 = vmatmul.mubr.msk.f32.gmra.mxu1 %vm2559_vm1, %v7115_v62  ;;  %3443 = vmatprep.mubr.f32.mxu0 %v9138_v49 }
 0x4a4   : > { %3620 = vmatprep.mubr.f32.mxu1 %v9138_v49 }
 0x4a6   : > { %4838 = vmatmul.mubr.msk.f32.gmra.mxu0 %vm2559_vm1, %v7104_v23 }
 0x4a7   : > { %4840 = vmatmul.mubr.msk.f32.vlgmr.msra.gmra.mxu1 %vm2559_vm1, %v6972_v36  ;;  %3449 = vmatprep.mubr.f32.mxu0 %v9138_v49 }
 0x4a8   : > { %4107 = vmatpush1.msra.mxu1 %v7106_v17  ;;  %3626 = vmatprep.mubr.f32.mxu1 %v9138_v49 }
 0x4a9   : > { %4108 = vmatprep.subr.mxu1 %v7095_v34 }
 0x4aa   : > { %4109 = vmatpush1.msra.mxu1 %v7084_v27  ;;  %4839 = vmatmul.mubr.msk.f32.gmra.mxu0 %vm2559_vm1, %v7115_v62 }
 0x4ab   : > { %4841 = vmatmul.mubr.msk.f32.gmra.mxu1 %vm2559_vm1, %v6978_v8  ;;  %3881 = vmatprep.mubr.f32.mxu0 %v9138_v49 }
 0x4ac   : > { %3632 = vmatprep.mubr.f32.mxu1 %v9138_v49 }
 0x4ae   : > { %4856 = vmatmul.mubr.msk.f32.vlgmr.msra.gmra.mxu0 %vm2559_vm1, %v6972_v36 }
 0x4af   : > { %4842 = vmatmul.mubr.msk.f32.gmra.mxu1 %vm2559_vm1, %v6984_v22  ;;  %4368 = vmatpush1.msra.mxu0 %v7141_v28 }
 0x4b0   : > { %4369 = vmatprep.subr.mxu0 %v7131_v52  ;;  %3638 = vmatprep.mubr.f32.mxu1 %v9138_v49 }
 0x4b1   : > { %4370 = vmatpush1.msra.mxu0 %v7123_v13  ;;  %3887 = vmatprep.mubr.f32.mxu0 %v9138_v49 }
 0x4b2   : > { %4857 = vmatmul.mubr.msk.f32.gmra.mxu0 %vm2559_vm1, %v6978_v8 }
 0x4b3   : > { %4843 = vmatmul.mubr.msk.f32.gmra.mxu1 %vm2559_vm1, %v6993_v37  ;;  %3893 = vmatprep.mubr.f32.mxu0 %v9138_v49 }
 0x4b4   : > { %3644 = vmatprep.mubr.f32.mxu1 %v9138_v49 }
 0x4b6   : > { %4858 = vmatmul.mubr.msk.f32.gmra.mxu0 %vm2559_vm1, %v6984_v22 }
 0x4b7   : > { %4844 = vmatmul.mubr.msk.f32.gmra.mxu1 %vm2559_vm1, %v7002_v47  ;;  %3899 = vmatprep.mubr.f32.mxu0 %v9138_v49 }
 0x4b8   : > { %3650 = vmatprep.mubr.f32.mxu1 %v9138_v49 }
 0x4ba   : > { %4859 = vmatmul.mubr.msk.f32.gmra.mxu0 %vm2559_vm1, %v6993_v37 }
 0x4bb   : > { %4845 = vmatmul.mubr.msk.f32.gmra.mxu1 %vm2559_vm1, %v7011_v53  ;;  %3905 = vmatprep.mubr.f32.mxu0 %v9138_v49 }
 0x4bc   : > { %3656 = vmatprep.mubr.f32.mxu1 %v9138_v49 }
 0x4be   : > { %4860 = vmatmul.mubr.msk.f32.gmra.mxu0 %vm2559_vm1, %v7002_v47 }
 0x4bf   : > { %4846 = vmatmul.mubr.msk.f32.gmra.mxu1 %vm2559_vm1, %v7021_v51  ;;  %3911 = vmatprep.mubr.f32.mxu0 %v9138_v49 }
 0x4c0   : > { %3662 = vmatprep.mubr.f32.mxu1 %v9138_v49 }
 0x4c2   : > { %4861 = vmatmul.mubr.msk.f32.gmra.mxu0 %vm2559_vm1, %v7011_v53 }
 0x4c3   : > { %4847 = vmatmul.mubr.msk.f32.gmra.mxu1 %vm2559_vm1, %v7033_v16  ;;  %3917 = vmatprep.mubr.f32.mxu0 %v9138_v49 }
 0x4c4   : > { %3668 = vmatprep.mubr.f32.mxu1 %v9138_v49 }
 0x4c6   : > { %4862 = vmatmul.mubr.msk.f32.gmra.mxu0 %vm2559_vm1, %v7021_v51 }
 0x4c7   : > { %4848 = vmatmul.mubr.msk.f32.gmra.mxu1 %vm2559_vm1, %v7044_v43  ;;  %3923 = vmatprep.mubr.f32.mxu0 %v9138_v49 }
 0x4c8   : > { %3674 = vmatprep.mubr.f32.mxu1 %v9138_v49 }
 0x4ca   : > { %4863 = vmatmul.mubr.msk.f32.gmra.mxu0 %vm2559_vm1, %v7033_v16 }
 0x4cb   : > { %4849 = vmatmul.mubr.msk.f32.gmra.mxu1 %vm2559_vm1, %v7055_v56  ;;  %3929 = vmatprep.mubr.f32.mxu0 %v9138_v49 }
 0x4cc   : > { %3680 = vmatprep.mubr.f32.mxu1 %v9138_v49 }
 0x4ce   : > { %4864 = vmatmul.mubr.msk.f32.gmra.mxu0 %vm2559_vm1, %v7044_v43 }
 0x4cf   : > { %4850 = vmatmul.mubr.msk.f32.gmra.mxu1 %vm2559_vm1, %v7064_v32  ;;  %3935 = vmatprep.mubr.f32.mxu0 %v9138_v49 }
 0x4d0   : > { %3686 = vmatprep.mubr.f32.mxu1 %v9138_v49 }
 0x4d2   : > { %4865 = vmatmul.mubr.msk.f32.gmra.mxu0 %vm2559_vm1, %v7055_v56 }
 0x4d3   : > { %4851 = vmatmul.mubr.msk.f32.gmra.mxu1 %vm2559_vm1, %v7073_v48  ;;  %3941 = vmatprep.mubr.f32.mxu0 %v9138_v49 }
 0x4d4   : > { %3692 = vmatprep.mubr.f32.mxu1 %v9138_v49 }
 0x4d6   : > { %4866 = vmatmul.mubr.msk.f32.gmra.mxu0 %vm2559_vm1, %v7064_v32 }
 0x4d7   : > { %4852 = vmatmul.mubr.msk.f32.gmra.mxu1 %vm2559_vm1, %v7082_v1  ;;  %3947 = vmatprep.mubr.f32.mxu0 %v9138_v49 }
 0x4d8   : > { %3698 = vmatprep.mubr.f32.mxu1 %v9138_v49 }
 0x4da   : > { %4867 = vmatmul.mubr.msk.f32.gmra.mxu0 %vm2559_vm1, %v7073_v48 }
 0x4db   : > { %4853 = vmatmul.mubr.msk.f32.gmra.mxu1 %vm2559_vm1, %v7093_v18  ;;  %3953 = vmatprep.mubr.f32.mxu0 %v9138_v49 }
 0x4dc   : > { %3704 = vmatprep.mubr.f32.mxu1 %v9138_v49 }
 0x4de   : > { %4868 = vmatmul.mubr.msk.f32.gmra.mxu0 %vm2559_vm1, %v7082_v1 }
 0x4df   : > { %4854 = vmatmul.mubr.msk.f32.gmra.mxu1 %vm2559_vm1, %v7104_v23  ;;  %3959 = vmatprep.mubr.f32.mxu0 %v9138_v49 }
 0x4e0   : > { %3710 = vmatprep.mubr.f32.mxu1 %v9138_v49 }
 0x4e2   : > { %4869 = vmatmul.mubr.msk.f32.gmra.mxu0 %vm2559_vm1, %v7093_v18 }
 0x4e3   : > { %4855 = vmatmul.mubr.msk.f32.gmra.mxu1 %vm2559_vm1, %v7115_v62  ;;  %3965 = vmatprep.mubr.f32.mxu0 %v9138_v49 }
 0x4e4   : > { %4142 = vmatprep.mubr.f32.mxu1 %v9138_v49 }
 0x4e6   : > { %v7331_v21 = vpop.f32.mrf.mxu1  ;;  %4870 = vmatmul.mubr.msk.f32.gmra.mxu0 %vm2559_vm1, %v7104_v23 }
 0x4e7   : > { %4872 = vmatmul.mubr.msk.f32.vlgmr.msra.gmra.mxu1 %vm2559_vm1, %v6972_v36  ;;  %3971 = vmatprep.mubr.f32.mxu0 %v9138_v49 }
 0x4e8   : > { %v7338_v6 = vpop.f32.mrf.mxu1  ;;  %4148 = vmatprep.mubr.f32.mxu1 %v9138_v49 }
 0x4ea   : > { %v7341_v5 = vpop.f32.mrf.mxu1  ;;  %4871 = vmatmul.mubr.msk.f32.gmra.mxu0 %vm2559_vm1, %v7115_v62 }
 0x4eb   : > { %4873 = vmatmul.mubr.msk.f32.gmra.mxu1 %vm2559_vm1, %v6978_v8  ;;  %4403 = vmatprep.mubr.f32.mxu0 %v9138_v49 }
 0x4ec   : > { %v7348_v35 = vpop.f32.mrf.mxu1  ;;  %4154 = vmatprep.mubr.f32.mxu1 %v9138_v49 }
 0x4ee   : > { %v7351_v3 = vpop.f32.mrf.mxu1  ;;  %v7353_v39 = vpop.f32.mrf.mxu0  ;;  %4888 = vmatmul.mubr.msk.f32.vlgmr.msra.gmra.mxu0 %vm2559_vm1, %v6972_v36 }
 0x4ef   : > { %vm2934_vm2 = vcmp.gt.f32.partialorder %v7353_v39, %v7331_v21  ;;  %4874 = vmatmul.mubr.msk.f32.gmra.mxu1 %vm2559_vm1, %v6984_v22  ;;  %4409 = vmatprep.mubr.f32.mxu0 %v9138_v49 }
 0x4f0   : > { %v7367_v61 = vsel %vm2934_vm2, %v7353_v39, %v7331_v21  ;;  %v7369_v46 = vpop.f32.mrf.mxu1  ;;  %v7371_v19 = vpop.f32.mrf.mxu0  ;;  %4160 = vmatprep.mubr.f32.mxu1 %v9138_v49 }
 0x4f1   : > { %vm2935_vm3 = vcmp.gt.f32.partialorder %v7371_v19, %v7338_v6 }
 0x4f2   : > { %v7376_v24 = vpop.f32.mrf.mxu1  ;;  %v7378_v44 = vpop.f32.mrf.mxu0  ;;  %4889 = vmatmul.mubr.msk.f32.gmra.mxu0 %vm2559_vm1, %v6978_v8  ;;  %v7387_v42 = vsel %vm2935_vm3, %v7371_v19, %v7338_v6 }
 0x4f3   : > { %vm2936_vm4 = vcmp.gt.f32.partialorder %v7378_v44, %v7341_v5  ;;  %4875 = vmatmul.mubr.msk.f32.gmra.mxu1 %vm2559_vm1, %v6993_v37  ;;  %4415 = vmatprep.mubr.f32.mxu0 %v9138_v49 }
 0x4f4   : > { %v7399_v4 = vsel %vm2936_vm4, %v7378_v44, %v7341_v5  ;;  %v7401_v2 = vpop.f32.mrf.mxu1  ;;  %v7403_v14 = vpop.f32.mrf.mxu0  ;;  %4166 = vmatprep.mubr.f32.mxu1 %v9138_v49 }
 0x4f5   : > { %vm2937_vm5 = vcmp.gt.f32.partialorder %v7403_v14, %v7348_v35 }
 0x4f6   : > { %v7408_v58 = vpop.f32.mrf.mxu0  ;;  %4890 = vmatmul.mubr.msk.f32.gmra.mxu0 %vm2559_vm1, %v6984_v22  ;;  %v7417_v57 = vsel %vm2937_vm5, %v7403_v14, %v7348_v35 }
 0x4f7   : > { %v7419_v30 = vpop.f32.mrf.mxu1  ;;  %vm2938_vm6 = vcmp.gt.f32.partialorder %v7408_v58, %v7351_v3  ;;  %4876 = vmatmul.mubr.msk.f32.gmra.mxu1 %vm2559_vm1, %v7002_v47  ;;  %4421 = vmatprep.mubr.f32.mxu0 %v9138_v49 }
 0x4f8   : > { %v7431_v31 = vsel %vm2938_vm6, %v7408_v58, %v7351_v3  ;;  %v7433_v15 = vpop.f32.mrf.mxu0  ;;  %4172 = vmatprep.mubr.f32.mxu1 %v9138_v49 }
 0x4f9   : > { %v7436_v36 = vpop.f32.mrf.mxu1  ;;  %vm2939_vm7 = vcmp.gt.f32.partialorder %v7433_v15, %v7369_v46 }
 0x4fa   : > { %v7440_v20 = vpop.f32.mrf.mxu0  ;;  %4891 = vmatmul.mubr.msk.f32.gmra.mxu0 %vm2559_vm1, %v6993_v37  ;;  %v7449_v25 = vsel %vm2939_vm7, %v7433_v15, %v7369_v46 }
 0x4fb   : > { %v7451_v8 = vpop.f32.mrf.mxu1  ;;  %vm2940_vm8 = vcmp.gt.f32.partialorder %v7440_v20, %v7376_v24  ;;  %4877 = vmatmul.mubr.msk.f32.gmra.mxu1 %vm2559_vm1, %v7011_v53  ;;  %4427 = vmatprep.mubr.f32.mxu0 %v9138_v49 }
 0x4fc   : > { %v7463_v60 = vsel %vm2940_vm8, %v7440_v20, %v7376_v24  ;;  %v7465_v40 = vpop.f32.mrf.mxu0  ;;  %4178 = vmatprep.mubr.f32.mxu1 %v9138_v49 }
 0x4fd   : > { %v7468_v22 = vpop.f32.mrf.mxu1  ;;  %vm2941_vm9 = vcmp.gt.f32.partialorder %v7465_v40, %v7401_v2 }
 0x4fe   : > { %v7472_v54 = vpop.f32.mrf.mxu0  ;;  %4892 = vmatmul.mubr.msk.f32.gmra.mxu0 %vm2559_vm1, %v7002_v47  ;;  %v7481_v12 = vsel %vm2941_vm9, %v7465_v40, %v7401_v2 }
 0x4ff   : > { %v7483_v37 = vpop.f32.mrf.mxu1  ;;  %vm2942_vm10 = vcmp.gt.f32.partialorder %v7472_v54, %v7419_v30  ;;  %4878 = vmatmul.mubr.msk.f32.gmra.mxu1 %vm2559_vm1, %v7021_v51  ;;  %4433 = vmatprep.mubr.f32.mxu0 %v9138_v49 }
 0x500   : > { %v7495_v26 = vsel %vm2942_vm10, %v7472_v54, %v7419_v30  ;;  %v7497_v0 = vpop.f32.mrf.mxu0  ;;  %4184 = vmatprep.mubr.f32.mxu1 %v9138_v49 }
 0x501   : > { %v7500_v47 = vpop.f32.mrf.mxu1  ;;  %vm2943_vm11 = vcmp.gt.f32.partialorder %v7497_v0, %v7436_v36 }
 0x502   : > { %v7504_v11 = vpop.f32.mrf.mxu0  ;;  %4893 = vmatmul.mubr.msk.f32.gmra.mxu0 %vm2559_vm1, %v7011_v53  ;;  %v7513_v10 = vsel %vm2943_vm11, %v7497_v0, %v7436_v36 }
 0x503   : > { %v7515_v55 = vpop.f32.mrf.mxu1  ;;  %vm2944_vm12 = vcmp.gt.f32.partialorder %v7504_v11, %v7451_v8  ;;  %4879 = vmatmul.mubr.msk.f32.gmra.mxu1 %vm2559_vm1, %v7033_v16  ;;  %4439 = vmatprep.mubr.f32.mxu0 %v9138_v49 }
 0x504   : > { %v7527_v53 = vsel %vm2944_vm12, %v7504_v11, %v7451_v8  ;;  %v7529_v63 = vpop.f32.mrf.mxu0  ;;  %4190 = vmatprep.mubr.f32.mxu1 %v9138_v49 }
 0x505   : > { %v7532_v59 = vpop.f32.mrf.mxu1  ;;  %vm2945_vm13 = vcmp.gt.f32.partialorder %v7529_v63, %v7468_v22 }
 0x506   : > { %9272 = vst [vmem:[#allocation24_spill] sm:$0xff] %v7532_v59  ;;  %v7536_v41 = vpop.f32.mrf.mxu0  ;;  %4894 = vmatmul.mubr.msk.f32.gmra.mxu0 %vm2559_vm1, %v7021_v51  ;;  %v7545_v9 = vsel %vm2945_vm13, %v7529_v63, %v7468_v22 }
 0x507   : > { %v7547_v7 = vpop.f32.mrf.mxu1  ;;  %vm9149_vm14 = vcmp.gt.f32.partialorder %v7536_v41, %v7483_v37  ;;  %4880 = vmatmul.mubr.msk.f32.gmra.mxu1 %vm2559_vm1, %v7044_v43  ;;  %4445 = vmatprep.mubr.f32.mxu0 %v9138_v49 }
 0x508   : > { %9273 = vst [vmem:[#allocation10_spill] sm:$0xff] %v7547_v7  ;;  %v7559_v51 = vsel %vm9149_vm14, %v7536_v41, %v7483_v37  ;;  %v7561_v29 = vpop.f32.mrf.mxu0  ;;  %4196 = vmatprep.mubr.f32.mxu1 %v9138_v49 }
 0x509   : > { %v7564_v45 = vpop.f32.mrf.mxu1  ;;  %vm9099_vm15 = vcmp.gt.f32.partialorder %v7561_v29, %v7500_v47 }
 0x50a   : > { %9274 = vst [vmem:[#allocation9_spill] sm:$0xff] %v7564_v45  ;;  %v7568_v50 = vpop.f32.mrf.mxu0  ;;  %4895 = vmatmul.mubr.msk.f32.gmra.mxu0 %vm2559_vm1, %v7033_v16  ;;  %v7577_v27 = vsel %vm9099_vm15, %v7561_v29, %v7500_v47 }
 0x50b   : > { %v7579_v34 = vpop.f32.mrf.mxu1  ;;  %vm9100_vm0 = vcmp.gt.f32.partialorder %v7568_v50, %v7515_v55  ;;  %4881 = vmatmul.mubr.msk.f32.gmra.mxu1 %vm2559_vm1, %v7055_v56  ;;  %4451 = vmatprep.mubr.f32.mxu0 %v9138_v49 }
 0x50c   : > { %9275 = vst [vmem:[#allocation11_spill] sm:$0xff] %v7579_v34  ;;  %v7591_v16 = vsel %vm9100_vm0, %v7568_v50, %v7515_v55  ;;  %v7593_v17 = vpop.f32.mrf.mxu0  ;;  %4202 = vmatprep.mubr.f32.mxu1 %v9138_v49 }
 0x50d   : > { %9276 = vst [vmem:[#allocation18_spill] sm:$0xff] %v7593_v17  ;;  %v7596_v38 = vpop.f32.mrf.mxu1  ;;  %vm9102_vm15 = vcmp.gt.f32.partialorder %v7593_v17, %v7532_v59 }
 0x50e   : > { %9277 = vst [vmem:[#allocation12_spill] sm:$0xff] %v7596_v38  ;;  %v7600_v13 = vpop.f32.mrf.mxu0  ;;  %4896 = vmatmul.mubr.msk.f32.gmra.mxu0 %vm2559_vm1, %v7044_v43  ;;  %v7609_v52 = vsel %vm9102_vm15, %v7593_v17, %v7532_v59 }
 0x50f   : > { %9278 = vst [vmem:[#allocation7_spill] sm:$0xff] %v7609_v52  ;;  %v7611_v28 = vpop.f32.mrf.mxu1  ;;  %vm9106_vm0 = vcmp.gt.f32.partialorder %v7600_v13, %v7547_v7  ;;  %4882 = vmatmul.mubr.msk.f32.gmra.mxu1 %vm2559_vm1, %v7064_v32  ;;  %4457 = vmatprep.mubr.f32.mxu0 %v9138_v49 }
 0x510   : > { %9279 = vst [vmem:[#allocation13_spill] sm:$0xff] %v7611_v28  ;;  %v7623_v43 = vsel %vm9106_vm0, %v7600_v13, %v7547_v7  ;;  %v7625_v33 = vpop.f32.mrf.mxu0  ;;  %4208 = vmatprep.mubr.f32.mxu1 %v9138_v49 }
 0x511   : > { %9280 = vst [vmem:[#allocation20_spill] sm:$0xff] %v7623_v43  ;;  %9281 = vst [vmem:[#allocation14_spill] sm:$0xff] %v7625_v33  ;;  %v7628_v52 = vpop.f32.mrf.mxu1  ;;  %vm9109_vm15 = vcmp.gt.f32.partialorder %v7625_v33, %v7564_v45 }
 0x512   : > { %9282 = vst [vmem:[#allocation8_spill] sm:$0xff] %v7628_v52  ;;  %v7637_v59 = vsel %vm9109_vm15, %v7625_v33, %v7564_v45  ;;  %v7639_v17 = vpop.f32.mrf.mxu0  ;;  %4897 = vmatmul.mubr.msk.f32.gmra.mxu0 %vm2559_vm1, %v7055_v56 }
 0x513   : > { %9283 = vst [vmem:[#allocation15_spill] sm:$0xff] %v7637_v59  ;;  %v7643_v43 = vpop.f32.mrf.mxu1  ;;  %vm9113_vm0 = vcmp.gt.f32.partialorder %v7639_v17, %v7579_v34  ;;  %4883 = vmatmul.mubr.msk.f32.gmra.mxu1 %vm2559_vm1, %v7073_v48  ;;  %4463 = vmatprep.mubr.f32.mxu0 %v9138_v49 }
 0x514   : > { %9284 = vst [vmem:[#allocation21_spill] sm:$0xff] %v7643_v43  ;;  %v7655_v59 = vsel %vm9113_vm0, %v7639_v17, %v7579_v34  ;;  %v7657_v45 = vpop.f32.mrf.mxu0  ;;  %4214 = vmatprep.mubr.f32.mxu1 %v9138_v49 }
 0x515   : > { %9285 = vst [vmem:[#allocation17_spill] sm:$0xff] %v7655_v59  ;;  %9286 = vst [vmem:[#allocation25_spill] sm:$0xff] %v7657_v45  ;;  %v7660_v56 = vpop.f32.mrf.mxu1  ;;  %vm9116_vm15 = vcmp.gt.f32.partialorder %v7657_v45, %v7596_v38 }
 0x516   : > { %9287 = vst [vmem:[#allocation22_spill] sm:$0xff] %v7660_v56  ;;  %v7669_v33 = vsel %vm9116_vm15, %v7657_v45, %v7596_v38  ;;  %v7671_v7 = vpop.f32.mrf.mxu0  ;;  %4898 = vmatmul.mubr.msk.f32.gmra.mxu0 %vm2559_vm1, %v7064_v32 }
 0x517   : > { %9288 = vst [vmem:[#allocation27_spill] sm:$0xff] %v7669_v33  ;;  %v7675_v59 = vpop.f32.mrf.mxu1  ;;  %vm9120_vm0 = vcmp.gt.f32.partialorder %v7671_v7, %v7611_v28  ;;  %4884 = vmatmul.mubr.msk.f32.gmra.mxu1 %vm2559_vm1, %v7082_v1  ;;  %4469 = vmatprep.mubr.f32.mxu0 %v9138_v49 }
 0x518   : > { %9289 = vst [vmem:[#allocation29_spill] sm:$0xff] %v7675_v59  ;;  %v7687_v33 = vsel %vm9120_vm0, %v7671_v7, %v7611_v28  ;;  %v7689_v38 = vpop.f32.mrf.mxu0  ;;  %4220 = vmatprep.mubr.f32.mxu1 %v9138_v49 }
 0x519   : > { %9290 = vst [vmem:[#allocation30_spill] sm:$0xff] %v7687_v33  ;;  %9291 = vst [vmem:[#allocation32_spill] sm:$0xff] %v7689_v38  ;;  %v7692_v32 = vpop.f32.mrf.mxu1  ;;  %vm9123_vm15 = vcmp.gt.f32.partialorder %v7689_v38, %v7628_v52 }
 0x51a   : > { %9292 = vst [vmem:[#allocation34_spill] sm:$0xff] %v7692_v32  ;;  %v7701_v45 = vsel %vm9123_vm15, %v7689_v38, %v7628_v52  ;;  %v7703_v34 = vpop.f32.mrf.mxu0  ;;  %4899 = vmatmul.mubr.msk.f32.gmra.mxu0 %vm2559_vm1, %v7073_v48 }
 0x51b   : > { %9293 = vst [vmem:[#allocation36_spill] sm:$0xff] %v7701_v45  ;;  %v7707_v33 = vpop.f32.mrf.mxu1  ;;  %vm9127_vm0 = vcmp.gt.f32.partialorder %v7703_v34, %v7643_v43  ;;  %4885 = vmatmul.mubr.msk.f32.gmra.mxu1 %vm2559_vm1, %v7093_v18  ;;  %4475 = vmatprep.mubr.f32.mxu0 %v9138_v49 }
 0x51c   : > { %9294 = vst [vmem:[#allocation33_spill] sm:$0xff] %v7707_v33  ;;  %v7719_v45 = vsel %vm9127_vm0, %v7703_v34, %v7643_v43  ;;  %v7721_v52 = vpop.f32.mrf.mxu0  ;;  %4226 = vmatprep.mubr.f32.mxu1 %v9138_v49 }
 0x51d   : > { %9295 = vst [vmem:[#allocation35_spill] sm:$0xff] %v7719_v45  ;;  %9296 = vst [vmem:[#allocation28_spill] sm:$0xff] %v7721_v52  ;;  %v7724_v48 = vpop.f32.mrf.mxu1  ;;  %vm9130_vm15 = vcmp.gt.f32.partialorder %v7721_v52, %v7660_v56 }
 0x51e   : > { %9297 = vst [vmem:[#allocation31_spill] sm:$0xff] %v7724_v48  ;;  %v7733_v38 = vsel %vm9130_vm15, %v7721_v52, %v7660_v56  ;;  %v7735_v28 = vpop.f32.mrf.mxu0  ;;  %4900 = vmatmul.mubr.msk.f32.gmra.mxu0 %vm2559_vm1, %v7082_v1 }
 0x51f   : > { %9298 = vst [vmem:[#allocation23_spill] sm:$0xff] %v7733_v38  ;;  %v7739_v45 = vpop.f32.mrf.mxu1  ;;  %vm9134_vm0 = vcmp.gt.f32.partialorder %v7735_v28, %v7675_v59  ;;  %4886 = vmatmul.mubr.msk.f32.gmra.mxu1 %vm2559_vm1, %v7104_v23  ;;  %4481 = vmatprep.mubr.f32.mxu0 %v9138_v49 }
 0x520   : > { %v7751_v38 = vsel %vm9134_vm0, %v7735_v28, %v7675_v59  ;;  %v7753_v56 = vpop.f32.mrf.mxu0  ;;  %4232 = vmatprep.mubr.f32.mxu1 %v9138_v49 }
 0x521   : > { %9299 = vst [vmem:[#allocation26_spill] sm:$0xff] %v7751_v38  ;;  %9300 = vst [vmem:[#allocation16_spill] sm:$0xff] %v7753_v56  ;;  %v7756_v1 = vpop.f32.mrf.mxu1  ;;  %vm9137_vm15 = vcmp.gt.f32.partialorder %v7753_v56, %v7692_v32 }
 0x522   : > { %9301 = vst [vmem:[#allocation19_spill] sm:$0xff] %v7756_v1  ;;  %v7765_v52 = vsel %vm9137_vm15, %v7753_v56, %v7692_v32  ;;  %v7767_v43 = vpop.f32.mrf.mxu0  ;;  %4901 = vmatmul.mubr.msk.f32.gmra.mxu0 %vm2559_vm1, %v7093_v18 }
 0x523   : > { %9302 = vst [vmem:[#allocation37_spill] sm:$0xff] %v7765_v52  ;;  %9303 = vst [vmem:[#allocation38_spill] sm:$0xff] %v7767_v43  ;;  %v7771_v38 = vpop.f32.mrf.mxu1  ;;  %vm9140_vm0 = vcmp.gt.f32.partialorder %v7767_v43, %v7707_v33  ;;  %4887 = vmatmul.mubr.msk.f32.gmra.mxu1 %vm2559_vm1, %v7115_v62  ;;  %4487 = vmatprep.mubr.f32.mxu0 %v9138_v49 }
 0x524   : > { %9304 = vst [vmem:[#allocation39_spill] sm:$0xff] %v7771_v38  ;;  %v7783_v52 = vsel %vm9140_vm0, %v7767_v43, %v7707_v33  ;;  %v7785_v32 = vpop.f32.mrf.mxu0  ;;  %v9309_v33 = vmov 0.0   ;;  %v9310_v43 = vmov 0  }
 0x525   : > { %9305 = vst [vmem:[#allocation40_spill] sm:$0xff] %v7783_v52  ;;  %9306 = vst [vmem:[#allocation41_spill] sm:$0xff] %v7785_v32  ;;  %v7787_v18 = vpop.f32.mrf.mxu1  ;;  %vm9146_vm15 = vcmp.gt.f32.partialorder %v7785_v32, %v7724_v48  ;;  %v2998_v59 = vsel %vm2934_vm2, 1, %v9310_v43  ;;  %v2999_v39 = vsel %vm2935_vm3, 1, %v9310_v43  ;;  %v3000_v6 = vsel %vm2936_vm4, 1, %v9310_v43 }
 0x526   : > { %9307 = vst [vmem:[#allocation42_spill] sm:$0xff] %v7787_v18  ;;  %v7796_v49 = vsel %vm9146_vm15, %v7785_v32, %v7724_v48  ;;  %v7798_v56 = vpop.f32.mrf.mxu0  ;;  %4902 = vmatmul.mubr.msk.f32.gmra.mxu0 %vm2559_vm1, %v7104_v23  ;;  %v3001_v44 = vsel %vm2937_vm5, 1, %v9310_v43 }
 0x527   : > { %9308 = vst [vmem:[#allocation43_spill] sm:$0xff] %v7796_v49  ;;  %vm2962_vm0 = vcmp.gt.f32.partialorder %v7798_v56, %v7739_v45  ;;  %v3100_v52 = vpop.f32.mrf.mxu1  ;;  %4493 = vmatprep.mubr.f32.mxu0 %v9309_v33 }
 0x528   : > { %v7814_v49 = vsel %vm2962_vm0, %v7798_v56, %v7739_v45  ;;  %vm3195_vm15 = vcmp.gt.f32.partialorder %v3100_v52, %v7367_v61  ;;  %v7817_v23 = vpop.f32.mrf.mxu0 }
 0x529   : > { %v3227_v48 = vsel %vm3195_vm15, %v3100_v52, %v7367_v61  ;;  %v3259_v32 = vsel %vm3195_vm15, 2, %v2998_v59  ;;  %vm2963_vm14 = vcmp.gt.f32.partialorder %v7817_v23, %v7756_v1  ;;  %v3102_v33 = vpop.f32.mrf.mxu1 }
 0x52a   : > { %v7827_v21 = vsel %vm2963_vm14, %v7817_v23, %v7756_v1  ;;  %vm3196_vm2 = vcmp.gt.f32.partialorder %v3102_v33, %v7387_v42  ;;  %v7834_v61 = vpop.f32.mrf.mxu0  ;;  %4903 = vmatmul.mubr.msk.f32.gmra.mxu0 %vm2559_vm1, %v7115_v62 }
 0x52b   : > { %9311 = vst [vmem:[#allocation44_spill] sm:$0xff] %v7834_v61  ;;  %v3228_v59 = vsel %vm3196_vm2, %v3102_v33, %v7387_v42  ;;  %v3260_v52 = vsel %vm3196_vm2, 2, %v2999_v39  ;;  %vm2964_vm15 = vcmp.gt.f32.partialorder %v7834_v61, %v7771_v38  ;;  %v3106_v1 = vpop.f32.mrf.mxu1 }
 0x52c   : > { %v7850_v19 = vsel %vm2964_vm15, %v7834_v61, %v7771_v38  ;;  %vm3197_vm1 = vcmp.gt.f32.partialorder %v3106_v1, %v7399_v4  ;;  %v7853_v62 = vpop.f32.mrf.mxu0  ;;  %v3002_v38 = vsel %vm2938_vm6, 1, %v9310_v43 }
 0x52d   : > { %9312 = vst [vmem:[#allocation45_spill] sm:$0xff] %v7850_v19  ;;  %9313 = vst [vmem:[#allocation46_spill] sm:$0xff] %v7853_v62  ;;  %v3229_v42 = vsel %vm3197_vm1, %v3106_v1, %v7399_v4  ;;  %v3261_v33 = vsel %vm3197_vm1, 2, %v3000_v6  ;;  %vm2965_vm3 = vcmp.gt.f32.partialorder %v7853_v62, %v7787_v18  ;;  %v3108_v39 = vpop.f32.mrf.mxu1 }
 0x52e   : > { %v7863_v5 = vsel %vm2965_vm3, %v7853_v62, %v7787_v18  ;;  %vm3198_vm4 = vcmp.gt.f32.partialorder %v3108_v39, %v7417_v57  ;;  %v3361_v4 = vpop.f32.mrf.mxu0 }
 0x52f   : > { %9314 = vst [vmem:[#allocation47_spill] sm:$0xff] %v7863_v5  ;;  %v3230_v1 = vsel %vm3198_vm4, %v3108_v39, %v7417_v57  ;;  %v3262_v6 = vsel %vm3198_vm4, 2, %v3001_v44  ;;  %v3112_v19 = vpop.f32.mrf.mxu1  ;;  %vm3456_vm2 = vcmp.gt.f32.partialorder %v3361_v4, %v3227_v48  ;;  %v3003_v57 = vsel %vm2939_vm7, 1, %v9310_v43 }
 0x530   : > { %vm3199_vm1 = vcmp.gt.f32.partialorder %v3112_v19, %v7431_v31  ;;  %v7876_v5 = vsel %vm3456_vm2, %v3361_v4, %v3227_v48  ;;  %v7878_v18 = vsel %vm3456_vm2, 3, %v3259_v32  ;;  %v3363_v35 = vpop.f32.mrf.mxu0 }
 0x531   : > { %v3231_v14 = vsel %vm3199_vm1, %v3112_v19, %v7431_v31  ;;  %v3263_v62 = vsel %vm3199_vm1, 2, %v3002_v38  ;;  %v3114_v61 = vpop.f32.mrf.mxu1  ;;  %vm3457_vm5 = vcmp.gt.f32.partialorder %v3363_v35, %v3228_v59  ;;  %v3004_v31 = vsel %vm2940_vm8, 1, %v9310_v43 }
 0x532   : > { %vm3200_vm4 = vcmp.gt.f32.partialorder %v3114_v61, %v7449_v25  ;;  %v7886_v3 = vsel %vm3457_vm5, %v3363_v35, %v3228_v59  ;;  %v7888_v58 = vsel %vm3457_vm5, 3, %v3260_v52  ;;  %v3367_v48 = vpop.f32.mrf.mxu0 }
 0x533   : > { %v3232_v32 = vsel %vm3200_vm4, %v3114_v61, %v7449_v25  ;;  %v3264_v39 = vsel %vm3200_vm4, 2, %v3003_v57  ;;  %v3118_v44 = vpop.f32.mrf.mxu1  ;;  %vm3458_vm6 = vcmp.gt.f32.partialorder %v3367_v48, %v3229_v42  ;;  %v3005_v25 = vsel %vm2941_vm9, 1, %v9310_v43 }
 0x534   : > { %vm3201_vm2 = vcmp.gt.f32.partialorder %v3118_v44, %v7463_v60  ;;  %v7896_v46 = vsel %vm3458_vm6, %v3367_v48, %v3229_v42  ;;  %v7898_v15 = vsel %vm3458_vm6, 3, %v3261_v33  ;;  %v3369_v38 = vpop.f32.mrf.mxu0 }
 0x535   : > { %v3233_v59 = vsel %vm3201_vm2, %v3118_v44, %v7463_v60  ;;  %v3265_v52 = vsel %vm3201_vm2, 2, %v3004_v31  ;;  %v3120_v19 = vpop.f32.mrf.mxu1  ;;  %vm3459_vm7 = vcmp.gt.f32.partialorder %v3369_v38, %v3230_v1  ;;  %v3006_v60 = vsel %vm2942_vm10, 1, %v9310_v43 }
 0x536   : > { %vm3202_vm1 = vcmp.gt.f32.partialorder %v3120_v19, %v7481_v12  ;;  %v7906_v24 = vsel %vm3459_vm7, %v3369_v38, %v3230_v1  ;;  %v7908_v20 = vsel %vm3459_vm7, 3, %v3262_v6  ;;  %v3373_v61 = vpop.f32.mrf.mxu0  ;;  %vm9315_vm7 = vcmp.gt.f32.partialorder %v7536_v41, %v7483_v37 }
 0x537   : > { %v3234_v42 = vsel %vm3202_vm1, %v3120_v19, %v7481_v12  ;;  %v3266_v33 = vsel %vm3202_vm1, 2, %v3005_v25  ;;  %v3124_v4 = vpop.f32.mrf.mxu1  ;;  %vm3460_vm8 = vcmp.gt.f32.partialorder %v3373_v61, %v3231_v14  ;;  %v3007_v12 = vsel %vm2943_vm11, 1, %v9310_v43 }
 0x538   : > { %vm3203_vm5 = vcmp.gt.f32.partialorder %v3124_v4, %v7495_v26  ;;  %v7916_v2 = vsel %vm3460_vm8, %v3373_v61, %v3231_v14  ;;  %v7918_v40 = vsel %vm3460_vm8, 3, %v3263_v62  ;;  %v3375_v1 = vpop.f32.mrf.mxu0  ;;  %vm9316_vm8 = vcmp.gt.f32.partialorder %v7561_v29, %v7500_v47 }
 0x539   : > { %v3235_v6 = vsel %vm3203_vm5, %v3124_v4, %v7495_v26  ;;  %v3267_v35 = vsel %vm3203_vm5, 2, %v3006_v60  ;;  %v3126_v57 = vpop.f32.mrf.mxu1  ;;  %vm3461_vm9 = vcmp.gt.f32.partialorder %v3375_v1, %v3232_v32  ;;  %v3008_v26 = vsel %vm2944_vm12, 1, %v9310_v43 }
 0x53a   : > { %vm3204_vm4 = vcmp.gt.f32.partialorder %v3126_v57, %v7513_v10  ;;  %v7926_v30 = vsel %vm3461_vm9, %v3375_v1, %v3232_v32  ;;  %v7928_v54 = vsel %vm3461_vm9, 3, %v3264_v39  ;;  %v3379_v14 = vpop.f32.mrf.mxu0 }
 0x53b   : > { %v3236_v62 = vsel %vm3204_vm4, %v3126_v57, %v7513_v10  ;;  %v3268_v48 = vsel %vm3204_vm4, 2, %v3007_v12  ;;  %v3130_v44 = vpop.f32.mrf.mxu1  ;;  %vm3462_vm10 = vcmp.gt.f32.partialorder %v3379_v14, %v3233_v59  ;;  %v3009_v10 = vsel %vm2945_vm13, 1, %v9310_v43 }
 0x53c   : > { %vm3205_vm6 = vcmp.gt.f32.partialorder %v3130_v44, %v7527_v53  ;;  %v7936_v36 = vsel %vm3462_vm10, %v3379_v14, %v3233_v59  ;;  %v7938_v0 = vsel %vm3462_vm10, 3, %v3265_v52  ;;  %v3381_v32 = vpop.f32.mrf.mxu0  ;;  %vm9317_vm4 = vcmp.gt.f32.partialorder %v7568_v50, %v7515_v55 }
 0x53d   : > { %v3237_v39 = vsel %vm3205_vm6, %v3130_v44, %v7527_v53  ;;  %v3269_v31 = vsel %vm3205_vm6, 2, %v3008_v26  ;;  %v3132_v38 = vpop.f32.mrf.mxu1  ;;  %vm3463_vm11 = vcmp.gt.f32.partialorder %v3381_v32, %v3234_v42  ;;  %v3010_v53 = vsel %vm9315_vm7, 1, %v9310_v43  ;;  %v9321_v26 = vld [vmem:[#allocation7_spill] sm:$0xff] }
 0x53e   : > { %vm3206_vm2 = vcmp.gt.f32.partialorder %v3132_v38, %v7545_v9  ;;  %v7946_v8 = vsel %vm3463_vm11, %v3381_v32, %v3234_v42  ;;  %v7948_v11 = vsel %vm3463_vm11, 3, %v3266_v33  ;;  %v3385_v59 = vpop.f32.mrf.mxu0 }
 0x53f   : > { %v3238_v52 = vsel %vm3206_vm2, %v3132_v38, %v7545_v9  ;;  %v3270_v19 = vsel %vm3206_vm2, 2, %v3009_v10  ;;  %v3136_v25 = vpop.f32.mrf.mxu1  ;;  %vm3464_vm12 = vcmp.gt.f32.partialorder %v3385_v59, %v3235_v6  ;;  %v3011_v9 = vsel %vm9316_vm8, 1, %v9310_v43 }
 0x540   : > { %vm3207_vm1 = vcmp.gt.f32.partialorder %v3136_v25, %v7559_v51  ;;  %v7956_v22 = vsel %vm3464_vm12, %v3385_v59, %v3235_v6  ;;  %v7958_v63 = vsel %vm3464_vm12, 3, %v3267_v35  ;;  %v3387_v61 = vpop.f32.mrf.mxu0  ;;  %v9324_v59 = vld [vmem:[#allocation20_spill] sm:$0xff] }
 0x541   : > { %v3239_v42 = vsel %vm3207_vm1, %v3136_v25, %v7559_v51  ;;  %v3271_v33 = vsel %vm3207_vm1, 2, %v3010_v53  ;;  %v3138_v4 = vpop.f32.mrf.mxu1  ;;  %vm3465_vm13 = vcmp.gt.f32.partialorder %v3387_v61, %v3236_v62  ;;  %v3012_v51 = vsel %vm9317_vm4, 1, %v9310_v43 }
 0x542   : > { %vm3208_vm5 = vcmp.gt.f32.partialorder %v3138_v4, %v7577_v27  ;;  %v7966_v37 = vsel %vm3465_vm13, %v3387_v61, %v3236_v62  ;;  %v7968_v41 = vsel %vm3465_vm13, 3, %v3268_v48  ;;  %v3391_v60 = vpop.f32.mrf.mxu0  ;;  %v9319_v48 = vld [vmem:[#allocation24_spill] sm:$0xff] }
 0x543   : > { %v3240_v1 = vsel %vm3208_vm5, %v3138_v4, %v7577_v27  ;;  %v3272_v6 = vsel %vm3208_vm5, 2, %v3011_v9  ;;  %v3142_v35 = vpop.f32.mrf.mxu1  ;;  %vm3466_vm9 = vcmp.gt.f32.partialorder %v3391_v60, %v3237_v39  ;;  %v9318_v27 = vld [vmem:[#allocation18_spill] sm:$0xff] }
 0x544   : > { %vm3209_vm10 = vcmp.gt.f32.partialorder %v3142_v35, %v7591_v16  ;;  %v7976_v47 = vsel %vm3466_vm9, %v3391_v60, %v3237_v39  ;;  %v7978_v29 = vsel %vm3466_vm9, 3, %v3269_v31  ;;  %v3393_v57 = vpop.f32.mrf.mxu0  ;;  %vm9320_vm11 = vcmp.gt.f32.partialorder %v9318_v27, %v9319_v48  ;;  %v9325_v9 = vld [vmem:[#allocation14_spill] sm:$0xff]  ;;  %v9326_v60 = vld [vmem:[#allocation9_spill] sm:$0xff]  ;;  %v9329_v48 = vld [vmem:[#allocation11_spill] sm:$0xff] }
 0x545   : > { %v3241_v12 = vsel %vm3209_vm10, %v3142_v35, %v7591_v16  ;;  %v3273_v14 = vsel %vm3209_vm10, 2, %v3012_v51  ;;  %v3144_v62 = vpop.f32.mrf.mxu1  ;;  %vm3467_vm6 = vcmp.gt.f32.partialorder %v3393_v57, %v3238_v52  ;;  %v3013_v44 = vsel %vm9320_vm11, 1, %v9310_v43  ;;  %v9322_v16 = vld [vmem:[#allocation10_spill] sm:$0xff]  ;;  %v9328_v51 = vld [vmem:[#allocation15_spill] sm:$0xff] }
 0x546   : > { %vm3210_vm2 = vcmp.gt.f32.partialorder %v3144_v62, %v9321_v26  ;;  %v7986_v55 = vsel %vm3467_vm6, %v3393_v57, %v3238_v52  ;;  %v7988_v50 = vsel %vm3467_vm6, 3, %v3270_v19  ;;  %v3397_v32 = vpop.f32.mrf.mxu0  ;;  %vm9323_vm7 = vcmp.gt.f32.partialorder %v7600_v13, %v9322_v16 }
 0x547   : > { %v3242_v39 = vsel %vm3210_vm2, %v3144_v62, %v9321_v26  ;;  %v3274_v31 = vsel %vm3210_vm2, 2, %v3013_v44  ;;  %v3148_v38 = vpop.f32.mrf.mxu1  ;;  %vm3468_vm12 = vcmp.gt.f32.partialorder %v3397_v32, %v3239_v42  ;;  %v3014_v10 = vsel %vm9323_vm7, 1, %v9310_v43  ;;  %v9331_v26 = vld [vmem:[#allocation17_spill] sm:$0xff] }
 0x548   : > { %vm3211_vm1 = vcmp.gt.f32.partialorder %v3148_v38, %v9324_v59  ;;  %v7996_v25 = vsel %vm3468_vm12, %v3397_v32, %v3239_v42  ;;  %v7998_v53 = vsel %vm3468_vm12, 3, %v3271_v33  ;;  %v3399_v52 = vpop.f32.mrf.mxu0  ;;  %vm9327_vm8 = vcmp.gt.f32.partialorder %v9325_v9, %v9326_v60  ;;  %v9335_v9 = vld [vmem:[#allocation27_spill] sm:$0xff] }
 0x549   : > { %v3243_v19 = vsel %vm3211_vm1, %v3148_v38, %v9324_v59  ;;  %v3275_v61 = vsel %vm3211_vm1, 2, %v3014_v10  ;;  %v3150_v4 = vpop.f32.mrf.mxu1  ;;  %vm3469_vm13 = vcmp.gt.f32.partialorder %v3399_v52, %v3240_v1  ;;  %v3015_v35 = vsel %vm9327_vm8, 1, %v9310_v43  ;;  %v9332_v59 = vld [vmem:[#allocation25_spill] sm:$0xff] }
 0x54a   : > { %vm3212_vm5 = vcmp.gt.f32.partialorder %v3150_v4, %v9328_v51  ;;  %v8006_v13 = vsel %vm3469_vm13, %v3399_v52, %v3240_v1  ;;  %v8008_v57 = vsel %vm3469_vm13, 3, %v3272_v6  ;;  %v3403_v42 = vpop.f32.mrf.mxu0  ;;  %vm9330_vm4 = vcmp.gt.f32.partialorder %v7639_v17, %v9329_v48  ;;  %v9333_v52 = vld [vmem:[#allocation12_spill] sm:$0xff]  ;;  %v9338_v48 = vld [vmem:[#allocation30_spill] sm:$0xff] }
 0x54b   : > { %v3244_v33 = vsel %vm3212_vm5, %v3150_v4, %v9328_v51  ;;  %v3276_v62 = vsel %vm3212_vm5, 2, %v3015_v35  ;;  %v3154_v27 = vpop.f32.mrf.mxu1  ;;  %vm3470_vm9 = vcmp.gt.f32.partialorder %v3403_v42, %v3241_v12  ;;  %v3016_v44 = vsel %vm9330_vm4, 1, %v9310_v43 }
 0x54c   : > { %vm3213_vm10 = vcmp.gt.f32.partialorder %v3154_v27, %v9331_v26  ;;  %v8016_v32 = vsel %vm3470_vm9, %v3403_v42, %v3241_v12  ;;  %v8018_v38 = vsel %vm3470_vm9, 3, %v3273_v14  ;;  %v3405_v1 = vpop.f32.mrf.mxu0  ;;  %vm9334_vm11 = vcmp.gt.f32.partialorder %v9332_v59, %v9333_v52  ;;  %v9336_v42 = vld [vmem:[#allocation13_spill] sm:$0xff]  ;;  %v9341_v52 = vld [vmem:[#allocation8_spill] sm:$0xff] }
 0x54d   : > { %v3245_v6 = vsel %vm3213_vm10, %v3154_v27, %v9331_v26  ;;  %v3277_v16 = vsel %vm3213_vm10, 2, %v3016_v44  ;;  %v3156_v10 = vpop.f32.mrf.mxu1  ;;  %vm3471_vm6 = vcmp.gt.f32.partialorder %v3405_v1, %v3242_v39  ;;  %v3017_v4 = vsel %vm9334_vm11, 1, %v9310_v43 }
 0x54e   : > { %vm3214_vm2 = vcmp.gt.f32.partialorder %v3156_v10, %v9335_v9  ;;  %v8026_v17 = vsel %vm3471_vm6, %v3405_v1, %v3242_v39  ;;  %v8028_v60 = vsel %vm3471_vm6, 3, %v3274_v31  ;;  %v3409_v12 = vpop.f32.mrf.mxu0  ;;  %vm9337_vm7 = vcmp.gt.f32.partialorder %v7671_v7, %v9336_v42 }
 0x54f   : > { %v3246_v14 = vsel %vm3214_vm2, %v3156_v10, %v9335_v9  ;;  %v3278_v35 = vsel %vm3214_vm2, 2, %v3017_v4  ;;  %v3160_v51 = vpop.f32.mrf.mxu1  ;;  %vm3472_vm12 = vcmp.gt.f32.partialorder %v3409_v12, %v3243_v19  ;;  %v3018_v27 = vsel %vm9337_vm7, 1, %v9310_v43  ;;  %v9340_v10 = vld [vmem:[#allocation32_spill] sm:$0xff] }
 0x550   : > { %vm3215_vm1 = vcmp.gt.f32.partialorder %v3160_v51, %v9338_v48  ;;  %v8036_v44 = vsel %vm3472_vm12, %v3409_v12, %v3243_v19  ;;  %v8038_v26 = vsel %vm3472_vm12, 3, %v3275_v61  ;;  %v3411_v39 = vpop.f32.mrf.mxu0  ;;  %vm9342_vm8 = vcmp.gt.f32.partialorder %v9340_v10, %v9341_v52  ;;  %v9343_v9 = vld [vmem:[#allocation36_spill] sm:$0xff] }
 0x551   : > { %9339 = vst [vmem:[#allocation18_spill] sm:$0xff] %v8038_v26  ;;  %v3247_v31 = vsel %vm3215_vm1, %v3160_v51, %v9338_v48  ;;  %v3279_v1 = vsel %vm3215_vm1, 2, %v3018_v27  ;;  %v3162_v59 = vpop.f32.mrf.mxu1  ;;  %vm3473_vm13 = vcmp.gt.f32.partialorder %v3411_v39, %v3244_v33  ;;  %v3019_v4 = vsel %vm9342_vm8, 1, %v9310_v43  ;;  %v9346_v51 = vld [vmem:[#allocation21_spill] sm:$0xff]  ;;  %v9348_v48 = vld [vmem:[#allocation35_spill] sm:$0xff] }
 0x552   : > { %vm3216_vm5 = vcmp.gt.f32.partialorder %v3162_v59, %v9343_v9  ;;  %v8046_v7 = vsel %vm3473_vm13, %v3411_v39, %v3244_v33  ;;  %v8048_v42 = vsel %vm3473_vm13, 3, %v3276_v62  ;;  %v3415_v19 = vpop.f32.mrf.mxu0  ;;  %vm9347_vm4 = vcmp.gt.f32.partialorder %v7703_v34, %v9346_v51 }
 0x553   : > { %9344 = vst [vmem:[#allocation24_spill] sm:$0xff] %v8046_v7  ;;  %9345 = vst [vmem:[#allocation7_spill] sm:$0xff] %v8048_v42  ;;  %v3248_v61 = vsel %vm3216_vm5, %v3162_v59, %v9343_v9  ;;  %v3280_v12 = vsel %vm3216_vm5, 2, %v3019_v4  ;;  %v3166_v26 = vpop.f32.mrf.mxu1  ;;  %vm3474_vm9 = vcmp.gt.f32.partialorder %v3415_v19, %v3245_v6  ;;  %v3020_v27 = vsel %vm9347_vm4, 1, %v9310_v43  ;;  %v9350_v59 = vld [vmem:[#allocation28_spill] sm:$0xff]  ;;  %v9351_v4 = vld [vmem:[#allocation22_spill] sm:$0xff] }
 0x554   : > { %vm3217_vm10 = vcmp.gt.f32.partialorder %v3166_v26, %v9348_v48  ;;  %v8056_v10 = vsel %vm3474_vm9, %v3415_v19, %v3245_v6  ;;  %v8058_v52 = vsel %vm3474_vm9, 3, %v3277_v16  ;;  %v3417_v33 = vpop.f32.mrf.mxu0  ;;  %vm9352_vm11 = vcmp.gt.f32.partialorder %v9350_v59, %v9351_v4  ;;  %v9353_v7 = vld [vmem:[#allocation23_spill] sm:$0xff] }
 0x555   : > { %9349 = vst [vmem:[#allocation10_spill] sm:$0xff] %v8058_v52  ;;  %v3249_v62 = vsel %vm3217_vm10, %v3166_v26, %v9348_v48  ;;  %v3281_v39 = vsel %vm3217_vm10, 2, %v3020_v27  ;;  %v3168_v42 = vpop.f32.mrf.mxu1  ;;  %vm3475_vm6 = vcmp.gt.f32.partialorder %v3417_v33, %v3246_v14  ;;  %v3021_v9 = vsel %vm9352_vm11, 1, %v9310_v43  ;;  %v9356_v26 = vld [vmem:[#allocation29_spill] sm:$0xff]  ;;  %v9358_v48 = vld [vmem:[#allocation26_spill] sm:$0xff] }
 0x556   : > { %vm3218_vm2 = vcmp.gt.f32.partialorder %v3168_v42, %v9353_v7  ;;  %v8066_v34 = vsel %vm3475_vm6, %v3417_v33, %v3246_v14  ;;  %v8068_v51 = vsel %vm3475_vm6, 3, %v3278_v35  ;;  %v3421_v6 = vpop.f32.mrf.mxu0  ;;  %vm9357_vm7 = vcmp.gt.f32.partialorder %v7735_v28, %v9356_v26 }
 0x557   : > { %9354 = vst [vmem:[#allocation20_spill] sm:$0xff] %v8066_v34  ;;  %9355 = vst [vmem:[#allocation14_spill] sm:$0xff] %v8068_v51  ;;  %v3250_v16 = vsel %vm3218_vm2, %v3168_v42, %v9353_v7  ;;  %v3282_v19 = vsel %vm3218_vm2, 2, %v3021_v9  ;;  %v3172_v52 = vpop.f32.mrf.mxu1  ;;  %vm3476_vm12 = vcmp.gt.f32.partialorder %v3421_v6, %v3247_v31  ;;  %v3022_v27 = vsel %vm9357_vm7, 1, %v9310_v43  ;;  %v9361_v7 = vld [vmem:[#allocation16_spill] sm:$0xff]  ;;  %v9362_v42 = vld [vmem:[#allocation34_spill] sm:$0xff] }
 0x558   : > { %vm3219_vm1 = vcmp.gt.f32.partialorder %v3172_v52, %v9358_v48  ;;  %v8076_v59 = vsel %vm3476_vm12, %v3421_v6, %v3247_v31  ;;  %v8078_v4 = vsel %vm3476_vm12, 3, %v3279_v1  ;;  %v3423_v14 = vpop.f32.mrf.mxu0  ;;  %vm9363_vm8 = vcmp.gt.f32.partialorder %v9361_v7, %v9362_v42  ;;  %v9364_v34 = vld [vmem:[#allocation37_spill] sm:$0xff] }
 0x559   : > { %9359 = vst [vmem:[#allocation9_spill] sm:$0xff] %v8076_v59  ;;  %9360 = vst [vmem:[#allocation15_spill] sm:$0xff] %v8078_v4  ;;  %v3251_v35 = vsel %vm3219_vm1, %v3172_v52, %v9358_v48  ;;  %v3283_v33 = vsel %vm3219_vm1, 2, %v3022_v27  ;;  %v3174_v51 = vpop.f32.mrf.mxu1  ;;  %vm3477_vm13 = vcmp.gt.f32.partialorder %v3423_v14, %v3248_v61  ;;  %v3023_v9 = vsel %vm9363_vm8, 1, %v9310_v43  ;;  %v9367_v52 = vld [vmem:[#allocation38_spill] sm:$0xff]  ;;  %v9368_v27 = vld [vmem:[#allocation33_spill] sm:$0xff] }
 0x55a   : > { %vm3220_vm5 = vcmp.gt.f32.partialorder %v3174_v51, %v9364_v34  ;;  %v8086_v28 = vsel %vm3477_vm13, %v3423_v14, %v3248_v61  ;;  %v8088_v26 = vsel %vm3477_vm13, 3, %v3280_v12  ;;  %v3427_v31 = vpop.f32.mrf.mxu0  ;;  %vm9369_vm4 = vcmp.gt.f32.partialorder %v9367_v52, %v9368_v27  ;;  %v9370_v59 = vld [vmem:[#allocation40_spill] sm:$0xff] }
 0x55b   : > { %9365 = vst [vmem:[#allocation11_spill] sm:$0xff] %v8086_v28  ;;  %9366 = vst [vmem:[#allocation17_spill] sm:$0xff] %v8088_v26  ;;  %v3252_v1 = vsel %vm3220_vm5, %v3174_v51, %v9364_v34  ;;  %v3284_v6 = vsel %vm3220_vm5, 2, %v3023_v9  ;;  %v3178_v4 = vpop.f32.mrf.mxu1  ;;  %vm3478_vm9 = vcmp.gt.f32.partialorder %v3427_v31, %v3249_v62  ;;  %v3024_v48 = vsel %vm9369_vm4, 1, %v9310_v43  ;;  %v9372_v34 = vld [vmem:[#allocation41_spill] sm:$0xff]  ;;  %v9373_v51 = vld [vmem:[#allocation31_spill] sm:$0xff] }
 0x55c   : > { %vm3221_vm10 = vcmp.gt.f32.partialorder %v3178_v4, %v9370_v59  ;;  %v8096_v7 = vsel %vm3478_vm9, %v3427_v31, %v3249_v62  ;;  %v8098_v42 = vsel %vm3478_vm9, 3, %v3281_v39  ;;  %v3429_v61 = vpop.f32.mrf.mxu0  ;;  %vm9374_vm11 = vcmp.gt.f32.partialorder %v9372_v34, %v9373_v51  ;;  %v9375_v28 = vld [vmem:[#allocation43_spill] sm:$0xff] }
 0x55d   : > { %9371 = vst [vmem:[#allocation25_spill] sm:$0xff] %v8098_v42  ;;  %v3253_v12 = vsel %vm3221_vm10, %v3178_v4, %v9370_v59  ;;  %v3285_v14 = vsel %vm3221_vm10, 2, %v3024_v48  ;;  %v3180_v26 = vpop.f32.mrf.mxu1  ;;  %vm3479_vm6 = vcmp.gt.f32.partialorder %v3429_v61, %v3250_v16  ;;  %v3025_v9 = vsel %vm9374_vm11, 1, %v9310_v43 }
 0x55e   : > { %vm3222_vm2 = vcmp.gt.f32.partialorder %v3180_v26, %v9375_v28  ;;  %v8106_v52 = vsel %vm3479_vm6, %v3429_v61, %v3250_v16  ;;  %v8108_v27 = vsel %vm3479_vm6, 3, %v3282_v19  ;;  %v3433_v62 = vpop.f32.mrf.mxu0  ;;  %v3026_v59 = vsel %vm2962_vm0, 1, %v9310_v43 }
 0x55f   : > { %v3254_v39 = vsel %vm3222_vm2, %v3180_v26, %v9375_v28  ;;  %v3286_v31 = vsel %vm3222_vm2, 2, %v3025_v9  ;;  %v3184_v42 = vpop.f32.mrf.mxu1  ;;  %vm3480_vm12 = vcmp.gt.f32.partialorder %v3433_v62, %v3251_v35  ;;  %v3027_v26 = vsel %vm2963_vm14, 1, %v9310_v43 }
 0x560   : > { %vm3223_vm7 = vcmp.gt.f32.partialorder %v3184_v42, %v7814_v49  ;;  %v8116_v4 = vsel %vm3480_vm12, %v3433_v62, %v3251_v35  ;;  %v8118_v48 = vsel %vm3480_vm12, 3, %v3283_v33  ;;  %v3435_v16 = vpop.f32.mrf.mxu0  ;;  %v3028_v62 = vsel %vm2964_vm15, 1, %v9310_v43 }
 0x561   : > { %v3255_v19 = vsel %vm3223_vm7, %v3184_v42, %v7814_v49  ;;  %v3287_v61 = vsel %vm3223_vm7, 2, %v3026_v59  ;;  %v3186_v34 = vpop.f32.mrf.mxu1  ;;  %vm3481_vm1 = vcmp.gt.f32.partialorder %v3435_v16, %v3252_v1  ;;  %v9381_v59 = vld [vmem:[#allocation45_spill] sm:$0xff] }
 0x562   : > { %vm3224_vm13 = vcmp.gt.f32.partialorder %v3186_v34, %v7827_v21  ;;  %v8126_v45 = vsel %vm3481_vm1, %v3435_v16, %v3252_v1  ;;  %v8128_v56 = vsel %vm3481_vm1, 3, %v3284_v6  ;;  %v3439_v35 = vpop.f32.mrf.mxu0 }
 0x563   : > { %9377 = vst [vmem:[#allocation12_spill] sm:$0xff] %v8126_v45  ;;  %9378 = vst [vmem:[#allocation27_spill] sm:$0xff] %v8128_v56  ;;  %v3256_v33 = vsel %vm3224_vm13, %v3186_v34, %v7827_v21  ;;  %v3288_v51 = vsel %vm3224_vm13, 2, %v3027_v26  ;;  %v3190_v9 = vpop.f32.mrf.mxu1  ;;  %vm3482_vm0 = vcmp.gt.f32.partialorder %v3439_v35, %v3253_v12  ;;  %v3029_v26 = vsel %vm2965_vm3, 1, %v9310_v43  ;;  %v9384_v45 = vld [vmem:[#allocation47_spill] sm:$0xff] }
 0x564   : > { %vm3225_vm8 = vcmp.gt.f32.partialorder %v3190_v9, %v9381_v59  ;;  %v8136_v23 = vsel %vm3482_vm0, %v3439_v35, %v3253_v12  ;;  %v8138_v28 = vsel %vm3482_vm0, 3, %v3285_v14  ;;  %v3441_v1 = vpop.f32.mrf.mxu0 }
 0x565   : > { %v3257_v6 = vsel %vm3225_vm8, %v3190_v9, %v9381_v59  ;;  %v3289_v16 = vsel %vm3225_vm8, 2, %v3028_v62  ;;  %v3192_v56 = vpop.f32.mrf.mxu1  ;;  %vm3483_vm14 = vcmp.gt.f32.partialorder %v3441_v1, %v3254_v39 }
 0x566   : > { %vm3226_vm5 = vcmp.gt.f32.partialorder %v3192_v56, %v9384_v45  ;;  %v8146_v49 = vsel %vm3483_vm14, %v3441_v1, %v3254_v39  ;;  %v8148_v42 = vsel %vm3483_vm14, 3, %v3286_v31  ;;  %v3445_v12 = vpop.f32.mrf.mxu0 }
 0x567   : > { %v3258_v14 = vsel %vm3226_vm5, %v3192_v56, %v9384_v45  ;;  %v3290_v35 = vsel %vm3226_vm5, 2, %v3029_v26  ;;  %vm3484_vm15 = vcmp.gt.f32.partialorder %v3445_v12, %v3255_v19  ;;  %v3622_v9 = vpop.f32.mrf.mxu1 }
 0x568   : > { %v8151_v62 = vsel %vm3484_vm15, %v3445_v12, %v3255_v19  ;;  %v8153_v59 = vsel %vm3484_vm15, 3, %v3287_v61  ;;  %vm3717_vm9 = vcmp.gt.f32.partialorder %v3622_v9, %v7876_v5  ;;  %v3447_v21 = vpop.f32.mrf.mxu0 }
 0x569   : > { %v3781_v43 = vsel %vm3717_vm9, 4, %v7878_v18  ;;  %vm3485_vm3 = vcmp.gt.f32.partialorder %v3447_v21, %v3256_v33  ;;  %v3624_v39 = vpop.f32.mrf.mxu1  ;;  %v8178_v26 = vsel %vm3717_vm9, %v3622_v9, %v7876_v5 }
 0x56a   : > { %v8159_v31 = vsel %vm3485_vm3, %v3447_v21, %v3256_v33  ;;  %v8161_v1 = vsel %vm3485_vm3, 3, %v3288_v51  ;;  %vm3718_vm4 = vcmp.gt.f32.partialorder %v3624_v39, %v7886_v3  ;;  %v3451_v45 = vpop.f32.mrf.mxu0 }
 0x56b   : > { %v3782_v19 = vsel %vm3718_vm4, 4, %v7888_v58  ;;  %vm3486_vm10 = vcmp.gt.f32.partialorder %v3451_v45, %v3257_v6  ;;  %v3628_v61 = vpop.f32.mrf.mxu1  ;;  %v8195_v5 = vsel %vm3718_vm4, %v3624_v39, %v7886_v3 }
 0x56c   : > { %v8167_v56 = vsel %vm3486_vm10, %v3451_v45, %v3257_v6  ;;  %v8169_v34 = vsel %vm3486_vm10, 3, %v3289_v16  ;;  %vm3719_vm6 = vcmp.gt.f32.partialorder %v3628_v61, %v7896_v46  ;;  %v3453_v18 = vpop.f32.mrf.mxu0 }
 0x56d   : > { %v3783_v33 = vsel %vm3719_vm6, 4, %v7898_v15  ;;  %vm3487_vm11 = vcmp.gt.f32.partialorder %v3453_v18, %v3258_v14  ;;  %v3630_v51 = vpop.f32.mrf.mxu1  ;;  %v8213_v3 = vsel %vm3719_vm6, %v3628_v61, %v7896_v46 }
 0x56e   : > { %v8180_v58 = vsel %vm3487_vm11, %v3453_v18, %v3258_v14  ;;  %v8182_v6 = vsel %vm3487_vm11, 3, %v3290_v35  ;;  %vm3720_vm2 = vcmp.gt.f32.partialorder %v3630_v51, %v7906_v24  ;;  %v8185_v16 = vpop.f32.mrf.mxu0 }
 0x56f   : > { %v3784_v12 = vsel %vm3720_vm2, 4, %v7908_v20  ;;  %v3634_v15 = vpop.f32.mrf.mxu1  ;;  %vm3978_vm12 = vcmp.gt.f32.partialorder %v8185_v16, %v8178_v26  ;;  %v8231_v46 = vsel %vm3720_vm2, %v3630_v51, %v7906_v24 }
 0x570   : > { %vm3721_vm7 = vcmp.gt.f32.partialorder %v3634_v15, %v7916_v2  ;;  %v8201_v14 = vsel %vm3978_vm12, 5, %v3781_v43  ;;  %v8203_v35 = vpop.f32.mrf.mxu0 }
 0x571   : > { %v3785_v20 = vsel %vm3721_vm7, 4, %v7918_v40  ;;  %v3636_v9 = vpop.f32.mrf.mxu1  ;;  %vm3979_vm1 = vcmp.gt.f32.partialorder %v8203_v35, %v8195_v5  ;;  %v8249_v24 = vsel %vm3721_vm7, %v3634_v15, %v7916_v2 }
 0x572   : > { %vm3722_vm13 = vcmp.gt.f32.partialorder %v3636_v9, %v7926_v30  ;;  %v8219_v21 = vsel %vm3979_vm1, 5, %v3782_v19  ;;  %v8221_v43 = vpop.f32.mrf.mxu0 }
 0x573   : > { %v3786_v40 = vsel %vm3722_vm13, 4, %v7928_v54  ;;  %v3640_v39 = vpop.f32.mrf.mxu1  ;;  %vm3980_vm0 = vcmp.gt.f32.partialorder %v8221_v43, %v8213_v3  ;;  %v8267_v2 = vsel %vm3722_vm13, %v3636_v9, %v7926_v30 }
 0x574   : > { %vm3723_vm8 = vcmp.gt.f32.partialorder %v3640_v39, %v7936_v36  ;;  %v8237_v45 = vsel %vm3980_vm0, 5, %v3783_v33  ;;  %v8239_v19 = vpop.f32.mrf.mxu0 }
 0x575   : > { %v3787_v54 = vsel %vm3723_vm8, 4, %v7938_v0  ;;  %v3642_v61 = vpop.f32.mrf.mxu1  ;;  %vm3981_vm14 = vcmp.gt.f32.partialorder %v8239_v19, %v8231_v46  ;;  %v8285_v30 = vsel %vm3723_vm8, %v3640_v39, %v7936_v36 }
 0x576   : > { %vm3724_vm5 = vcmp.gt.f32.partialorder %v3642_v61, %v7946_v8  ;;  %v8255_v18 = vsel %vm3981_vm14, 5, %v3784_v12  ;;  %v8257_v33 = vpop.f32.mrf.mxu0 }
 0x577   : > { %9385 = vst [vmem:[#allocation13_spill] sm:$0xff] %v8255_v18  ;;  %v3788_v0 = vsel %vm3724_vm5, 4, %v7948_v11  ;;  %v3646_v51 = vpop.f32.mrf.mxu1  ;;  %vm3982_vm15 = vcmp.gt.f32.partialorder %v8257_v33, %v8249_v24  ;;  %v8303_v36 = vsel %vm3724_vm5, %v3642_v61, %v7946_v8 }
 0x578   : > { %vm3725_vm9 = vcmp.gt.f32.partialorder %v3646_v51, %v7956_v22  ;;  %v8273_v12 = vsel %vm3982_vm15, 5, %v3785_v20  ;;  %v8275_v15 = vpop.f32.mrf.mxu0 }
 0x579   : > { %9386 = vst [vmem:[#allocation30_spill] sm:$0xff] %v8273_v12  ;;  %v3789_v11 = vsel %vm3725_vm9, 4, %v7958_v63  ;;  %v3648_v18 = vpop.f32.mrf.mxu1  ;;  %vm3983_vm3 = vcmp.gt.f32.partialorder %v8275_v15, %v8267_v2  ;;  %v8321_v8 = vsel %vm3725_vm9, %v3646_v51, %v7956_v22 }
 0x57a   : > { %vm3726_vm4 = vcmp.gt.f32.partialorder %v3648_v18, %v7966_v37  ;;  %v8291_v20 = vsel %vm3983_vm3, 5, %v3786_v40  ;;  %v8293_v9 = vpop.f32.mrf.mxu0 }
 0x57b   : > { %9387 = vst [vmem:[#allocation32_spill] sm:$0xff] %v8291_v20  ;;  %v3790_v63 = vsel %vm3726_vm4, 4, %v7968_v41  ;;  %v3652_v12 = vpop.f32.mrf.mxu1  ;;  %vm3984_vm10 = vcmp.gt.f32.partialorder %v8293_v9, %v8285_v30  ;;  %v8339_v22 = vsel %vm3726_vm4, %v3648_v18, %v7966_v37 }
 0x57c   : > { %vm3727_vm6 = vcmp.gt.f32.partialorder %v3652_v12, %v7976_v47  ;;  %v8309_v40 = vsel %vm3984_vm10, 5, %v3787_v54  ;;  %v8311_v39 = vpop.f32.mrf.mxu0 }
 0x57d   : > { %9388 = vst [vmem:[#allocation8_spill] sm:$0xff] %v8309_v40  ;;  %v3791_v41 = vsel %vm3727_vm6, 4, %v7978_v29  ;;  %v3654_v20 = vpop.f32.mrf.mxu1  ;;  %vm3985_vm11 = vcmp.gt.f32.partialorder %v8311_v39, %v8303_v36  ;;  %v8357_v37 = vsel %vm3727_vm6, %v3652_v12, %v7976_v47 }
 0x57e   : > { %vm3728_vm2 = vcmp.gt.f32.partialorder %v3654_v20, %v7986_v55  ;;  %v8327_v54 = vsel %vm3985_vm11, 5, %v3788_v0  ;;  %v8329_v61 = vpop.f32.mrf.mxu0 }
 0x57f   : > { %9389 = vst [vmem:[#allocation36_spill] sm:$0xff] %v8327_v54  ;;  %v3792_v29 = vsel %vm3728_vm2, 4, %v7988_v50  ;;  %v3658_v40 = vpop.f32.mrf.mxu1  ;;  %vm3986_vm7 = vcmp.gt.f32.partialorder %v8329_v61, %v8321_v8  ;;  %v8375_v47 = vsel %vm3728_vm2, %v3654_v20, %v7986_v55 }
 0x580   : > { %vm3729_vm13 = vcmp.gt.f32.partialorder %v3658_v40, %v7996_v25  ;;  %v8345_v0 = vsel %vm3986_vm7, 5, %v3789_v11  ;;  %v8347_v51 = vpop.f32.mrf.mxu0 }
 0x581   : > { %9390 = vst [vmem:[#allocation21_spill] sm:$0xff] %v8345_v0  ;;  %v3793_v50 = vsel %vm3729_vm13, 4, %v7998_v53  ;;  %v3660_v54 = vpop.f32.mrf.mxu1  ;;  %vm3987_vm8 = vcmp.gt.f32.partialorder %v8347_v51, %v8339_v22  ;;  %v8393_v55 = vsel %vm3729_vm13, %v3658_v40, %v7996_v25 }
 0x582   : > { %vm3730_vm5 = vcmp.gt.f32.partialorder %v3660_v54, %v8006_v13  ;;  %v8363_v18 = vsel %vm3987_vm8, 5, %v3790_v63  ;;  %v8365_v11 = vpop.f32.mrf.mxu0  ;;  %9394 = vst [vmem:[#allocation23_spill] sm:$0xff] %v8393_v55 }
 0x583   : > { %9391 = vst [vmem:[#allocation35_spill] sm:$0xff] %v8363_v18  ;;  %v3794_v53 = vsel %vm3730_vm5, 4, %v8008_v57  ;;  %v3664_v0 = vpop.f32.mrf.mxu1  ;;  %vm9162_vm9 = vcmp.gt.f32.partialorder %v8365_v11, %v8357_v37  ;;  %v8411_v25 = vsel %vm3730_vm5, %v3660_v54, %v8006_v13  ;;  %v9401_v54 = vld [vmem:[#allocation24_spill] sm:$0xff] }
 0x584   : > { %vm3731_vm4 = vcmp.gt.f32.partialorder %v3664_v0, %v8016_v32  ;;  %v8381_v12 = vsel %vm9162_vm9, 5, %v3791_v41  ;;  %v8383_v63 = vpop.f32.mrf.mxu0 }
 0x585   : > { %9392 = vst [vmem:[#allocation28_spill] sm:$0xff] %v8381_v12  ;;  %9393 = vst [vmem:[#allocation22_spill] sm:$0xff] %v8383_v63  ;;  %v3795_v57 = vsel %vm3731_vm4, 4, %v8018_v38  ;;  %v3666_v18 = vpop.f32.mrf.mxu1  ;;  %vm9165_vm6 = vcmp.gt.f32.partialorder %v8383_v63, %v8375_v47  ;;  %v8429_v13 = vsel %vm3731_vm4, %v3664_v0, %v8016_v32 }
 0x586   : > { %vm3732_vm2 = vcmp.gt.f32.partialorder %v3666_v18, %v8026_v17  ;;  %v8399_v20 = vsel %vm9165_vm6, 5, %v3792_v29  ;;  %v8401_v41 = vpop.f32.mrf.mxu0  ;;  %9400 = vst [vmem:[#allocation37_spill] sm:$0xff] %v8429_v13 }
 0x587   : > { %9395 = vst [vmem:[#allocation29_spill] sm:$0xff] %v8399_v20  ;;  %9396 = vst [vmem:[#allocation26_spill] sm:$0xff] %v8401_v41  ;;  %v3796_v38 = vsel %vm3732_vm2, 4, %v8028_v60  ;;  %v3670_v12 = vpop.f32.mrf.mxu1  ;;  %vm9170_vm9 = vcmp.gt.f32.partialorder %v8401_v41, %v8393_v55  ;;  %v9399_v20 = vld [vmem:[#allocation18_spill] sm:$0xff]  ;;  %v9404_v41 = vld [vmem:[#allocation7_spill] sm:$0xff]  ;;  %v8447_v32 = vsel %vm3732_vm2, %v3666_v18, %v8026_v17 }
 0x588   : > { %vm3733_vm13 = vcmp.gt.f32.partialorder %v3670_v12, %v8036_v44  ;;  %v8417_v40 = vsel %vm9170_vm9, 5, %v3793_v50  ;;  %v8419_v29 = vpop.f32.mrf.mxu0  ;;  %9405 = vst [vmem:[#allocation40_spill] sm:$0xff] %v8447_v32  ;;  %v9410_v18 = vld [vmem:[#allocation20_spill] sm:$0xff] }
 0x589   : > { %9397 = vst [vmem:[#allocation16_spill] sm:$0xff] %v8417_v40  ;;  %9398 = vst [vmem:[#allocation34_spill] sm:$0xff] %v8419_v29  ;;  %v3797_v60 = vsel %vm3733_vm13, 4, %v9399_v20  ;;  %v3672_v63 = vpop.f32.mrf.mxu1  ;;  %vm9173_vm6 = vcmp.gt.f32.partialorder %v8419_v29, %v8411_v25  ;;  %v8465_v17 = vsel %vm3733_vm13, %v3670_v12, %v8036_v44  ;;  %v9414_v12 = vld [vmem:[#allocation9_spill] sm:$0xff] }
 0x58a   : > { %vm3734_vm5 = vcmp.gt.f32.partialorder %v3672_v63, %v9401_v54  ;;  %v8435_v50 = vsel %vm9173_vm6, 5, %v3794_v53  ;;  %v8437_v40 = vpop.f32.mrf.mxu0  ;;  %9409 = vst [vmem:[#allocation43_spill] sm:$0xff] %v8465_v17 }
 0x58b   : > { %9402 = vst [vmem:[#allocation38_spill] sm:$0xff] %v8435_v50  ;;  %9403 = vst [vmem:[#allocation33_spill] sm:$0xff] %v8437_v40  ;;  %v3798_v20 = vsel %vm3734_vm5, 4, %v9404_v41  ;;  %v3676_v55 = vpop.f32.mrf.mxu1  ;;  %vm9178_vm9 = vcmp.gt.f32.partialorder %v8437_v40, %v8429_v13  ;;  %v9408_v50 = vld [vmem:[#allocation10_spill] sm:$0xff]  ;;  %v8483_v44 = vsel %vm3734_vm5, %v3672_v63, %v9401_v54  ;;  %v9418_v54 = vld [vmem:[#allocation11_spill] sm:$0xff] }
 0x58c   : > { %vm3735_vm4 = vcmp.gt.f32.partialorder %v3676_v55, %v8056_v10  ;;  %v8453_v0 = vsel %vm9178_vm9, 5, %v3795_v57  ;;  %v8455_v53 = vpop.f32.mrf.mxu0  ;;  %v9413_v40 = vld [vmem:[#allocation14_spill] sm:$0xff] }
 0x58d   : > { %9406 = vst [vmem:[#allocation41_spill] sm:$0xff] %v8453_v0  ;;  %9407 = vst [vmem:[#allocation31_spill] sm:$0xff] %v8455_v53  ;;  %v3799_v41 = vsel %vm3735_vm4, 4, %v9408_v50  ;;  %v3678_v29 = vpop.f32.mrf.mxu1  ;;  %vm9183_vm6 = vcmp.gt.f32.partialorder %v8455_v53, %v8447_v32  ;;  %v9417_v53 = vld [vmem:[#allocation15_spill] sm:$0xff]  ;;  %v8501_v63 = vsel %vm3735_vm4, %v3676_v55, %v8056_v10 }
 0x58e   : > { %vm3736_vm2 = vcmp.gt.f32.partialorder %v3678_v29, %v9410_v18  ;;  %v8471_v57 = vsel %vm9183_vm6, 5, %v3796_v38  ;;  %v8473_v0 = vpop.f32.mrf.mxu0 }
 0x58f   : > { %9411 = vst [vmem:[#allocation19_spill] sm:$0xff] %v8471_v57  ;;  %9412 = vst [vmem:[#allocation44_spill] sm:$0xff] %v8473_v0  ;;  %v3800_v50 = vsel %vm3736_vm2, 4, %v9413_v40  ;;  %v3682_v13 = vpop.f32.mrf.mxu1  ;;  %vm9188_vm9 = vcmp.gt.f32.partialorder %v8473_v0, %v8465_v17  ;;  %v9420_v0 = vld [vmem:[#allocation17_spill] sm:$0xff]  ;;  %v8519_v10 = vsel %vm3736_vm2, %v3678_v29, %v9410_v18 }
 0x590   : > { %vm3737_vm13 = vcmp.gt.f32.partialorder %v3682_v13, %v9414_v12  ;;  %v8489_v38 = vsel %vm9188_vm9, 5, %v3797_v60  ;;  %v8491_v57 = vpop.f32.mrf.mxu0 }
 0x591   : > { %9415 = vst [vmem:[#allocation39_spill] sm:$0xff] %v8489_v38  ;;  %9416 = vst [vmem:[#allocation45_spill] sm:$0xff] %v8491_v57  ;;  %v3801_v40 = vsel %vm3737_vm13, 4, %v9417_v53  ;;  %v3684_v32 = vpop.f32.mrf.mxu1  ;;  %vm9191_vm6 = vcmp.gt.f32.partialorder %v8491_v57, %v8483_v44  ;;  %v8537_v29 = vsel %vm3737_vm13, %v3682_v13, %v9414_v12 }
 0x592   : > { %vm3738_vm5 = vcmp.gt.f32.partialorder %v3684_v32, %v9418_v54  ;;  %v8507_v60 = vsel %vm9191_vm6, 5, %v3798_v20  ;;  %v8509_v38 = vpop.f32.mrf.mxu0  ;;  %9423 = vst [vmem:[#allocation47_spill] sm:$0xff] %v8537_v29 }
 0x593   : > { %9419 = vst [vmem:[#allocation46_spill] sm:$0xff] %v8507_v60  ;;  %v3802_v53 = vsel %vm3738_vm5, 4, %v9420_v0  ;;  %v3688_v17 = vpop.f32.mrf.mxu1  ;;  %vm9192_vm9 = vcmp.gt.f32.partialorder %v8509_v38, %v8501_v63  ;;  %v9422_v60 = vld [vmem:[#allocation25_spill] sm:$0xff]  ;;  %v8555_v13 = vsel %vm3738_vm5, %v3684_v32, %v9418_v54  ;;  %v9427_v54 = vld [vmem:[#allocation12_spill] sm:$0xff] }
 0x594   : > { %vm3739_vm4 = vcmp.gt.f32.partialorder %v3688_v17, %v8096_v7  ;;  %v8525_v55 = vsel %vm9192_vm9, 5, %v3799_v41  ;;  %v8527_v20 = vpop.f32.mrf.mxu0 }
 0x595   : > { %9421 = vst [vmem:[#allocation42_spill] sm:$0xff] %v8525_v55  ;;  %v3803_v0 = vsel %vm3739_vm4, 4, %v9422_v60  ;;  %v3690_v57 = vpop.f32.mrf.mxu1  ;;  %vm9193_vm6 = vcmp.gt.f32.partialorder %v8527_v20, %v8519_v10  ;;  %v8573_v32 = vsel %vm3739_vm4, %v3688_v17, %v8096_v7 }
 0x596   : > { %vm3740_vm2 = vcmp.gt.f32.partialorder %v3690_v57, %v8106_v52  ;;  %v8543_v41 = vsel %vm9193_vm6, 5, %v3800_v50  ;;  %v8545_v18 = vpop.f32.mrf.mxu0 }
 0x597   : > { %9424 = vst [vmem:[#allocation18_spill] sm:$0xff] %v8543_v41  ;;  %9425 = vst [vmem:[#allocation24_spill] sm:$0xff] %v8545_v18  ;;  %v3804_v60 = vsel %vm3740_vm2, 4, %v8108_v27  ;;  %v3694_v55 = vpop.f32.mrf.mxu1  ;;  %vm9198_vm9 = vcmp.gt.f32.partialorder %v8545_v18, %v8537_v29  ;;  %v9429_v18 = vld [vmem:[#allocation27_spill] sm:$0xff]  ;;  %v8591_v7 = vsel %vm3740_vm2, %v3690_v57, %v8106_v52 }
 0x598   : > { %vm3741_vm13 = vcmp.gt.f32.partialorder %v3694_v55, %v8116_v4  ;;  %v8561_v50 = vsel %vm9198_vm9, 5, %v3801_v40  ;;  %v8563_v12 = vpop.f32.mrf.mxu0 }
 0x599   : > { %9426 = vst [vmem:[#allocation7_spill] sm:$0xff] %v8561_v50  ;;  %v3805_v27 = vsel %vm3741_vm13, 4, %v8118_v48  ;;  %v3696_v41 = vpop.f32.mrf.mxu1  ;;  %vm9199_vm6 = vcmp.gt.f32.partialorder %v8563_v12, %v8555_v13  ;;  %v8609_v52 = vsel %vm3741_vm13, %v3694_v55, %v8116_v4 }
 0x59a   : > { %vm3742_vm5 = vcmp.gt.f32.partialorder %v3696_v41, %v9427_v54  ;;  %v8579_v40 = vsel %vm9199_vm6, 5, %v3802_v53  ;;  %v8581_v50 = vpop.f32.mrf.mxu0 }
 0x59b   : > { %9428 = vst [vmem:[#allocation10_spill] sm:$0xff] %v8579_v40  ;;  %v3806_v48 = vsel %vm3742_vm5, 4, %v9429_v18  ;;  %v3700_v29 = vpop.f32.mrf.mxu1  ;;  %vm9200_vm9 = vcmp.gt.f32.partialorder %v8581_v50, %v8573_v32  ;;  %v8627_v4 = vsel %vm3742_vm5, %v3696_v41, %v9427_v54 }
 0x59c   : > { %vm3743_vm4 = vcmp.gt.f32.partialorder %v3700_v29, %v8136_v23  ;;  %v8597_v17 = vsel %vm9200_vm9, 5, %v3803_v0  ;;  %v8599_v53 = vpop.f32.mrf.mxu0 }
 0x59d   : > { %9430 = vst [vmem:[#allocation20_spill] sm:$0xff] %v8597_v17  ;;  %v3807_v18 = vsel %vm3743_vm4, 4, %v8138_v28  ;;  %v3702_v40 = vpop.f32.mrf.mxu1  ;;  %vm9201_vm6 = vcmp.gt.f32.partialorder %v8599_v53, %v8591_v7  ;;  %v8645_v41 = vsel %vm3743_vm4, %v3700_v29, %v8136_v23 }
 0x59e   : > { %vm3744_vm2 = vcmp.gt.f32.partialorder %v3702_v40, %v8146_v49  ;;  %v8615_v57 = vsel %vm9201_vm6, 5, %v3804_v60  ;;  %v8617_v0 = vpop.f32.mrf.mxu0 }
 0x59f   : > { %9431 = vst [vmem:[#allocation14_spill] sm:$0xff] %v8615_v57  ;;  %v3808_v28 = vsel %vm3744_vm2, 4, %v8148_v42  ;;  %v3706_v17 = vpop.f32.mrf.mxu1  ;;  %vm9202_vm9 = vcmp.gt.f32.partialorder %v8617_v0, %v8609_v52  ;;  %v8663_v23 = vsel %vm3744_vm2, %v3702_v40, %v8146_v49 }
 0x5a0   : > { %vm3745_vm13 = vcmp.gt.f32.partialorder %v3706_v17, %v8151_v62  ;;  %v8633_v55 = vsel %vm9202_vm9, 5, %v3805_v27  ;;  %v8635_v60 = vpop.f32.mrf.mxu0 }
 0x5a1   : > { %9432 = vst [vmem:[#allocation9_spill] sm:$0xff] %v8633_v55  ;;  %v3809_v42 = vsel %vm3745_vm13, 4, %v8153_v59  ;;  %v3708_v57 = vpop.f32.mrf.mxu1  ;;  %vm9203_vm6 = vcmp.gt.f32.partialorder %v8635_v60, %v8627_v4  ;;  %v8681_v49 = vsel %vm3745_vm13, %v3706_v17, %v8151_v62 }
 0x5a2   : > { %vm3746_vm5 = vcmp.gt.f32.partialorder %v3708_v57, %v8159_v31  ;;  %v8651_v27 = vsel %vm9203_vm6, 5, %v3806_v48  ;;  %v8653_v54 = vpop.f32.mrf.mxu0 }
 0x5a3   : > { %9433 = vst [vmem:[#allocation15_spill] sm:$0xff] %v8651_v27  ;;  %v3810_v59 = vsel %vm3746_vm5, 4, %v8161_v1  ;;  %v3712_v55 = vpop.f32.mrf.mxu1  ;;  %vm4004_vm9 = vcmp.gt.f32.partialorder %v8653_v54, %v8645_v41 }
 0x5a4   : > { %vm3747_vm4 = vcmp.gt.f32.partialorder %v3712_v55, %v8167_v56  ;;  %v8669_v29 = vsel %vm4004_vm9, 5, %v3807_v18  ;;  %v8671_v48 = vpop.f32.mrf.mxu0 }
 0x5a5   : > { %v3811_v1 = vsel %vm3747_vm4, 4, %v8169_v34  ;;  %v3714_v27 = vpop.f32.mrf.mxu1  ;;  %vm9204_vm6 = vcmp.gt.f32.partialorder %v8671_v48, %v8663_v23  ;;  %v4010_v34 = vsel %vm3978_vm12, %v8185_v16, %v8178_v26 }
 0x5a6   : > { %vm3748_vm2 = vcmp.gt.f32.partialorder %v3714_v27, %v8180_v58  ;;  %v8687_v40 = vsel %vm9204_vm6, 5, %v3808_v28  ;;  %v8689_v18 = vpop.f32.mrf.mxu0  ;;  %v8704_v28 = vsel %vm3746_vm5, %v3708_v57, %v8159_v31  ;;  %v8725_v57 = vsel %vm3747_vm4, %v3712_v55, %v8167_v56 }
 0x5a7   : > { %9434 = vst [vmem:[#allocation11_spill] sm:$0xff] %v8687_v40  ;;  %v3812_v62 = vsel %vm3748_vm2, 4, %v8182_v6  ;;  %vm4006_vm13 = vcmp.gt.f32.partialorder %v8689_v18, %v8681_v49  ;;  %v4144_v17 = vpop.f32.mrf.mxu1  ;;  %v4011_v6 = vsel %vm3979_vm1, %v8203_v35, %v8195_v5  ;;  %v8747_v55 = vsel %vm3748_vm2, %v3714_v27, %v8180_v58 }
 0x5a8   : > { %v8709_v40 = vsel %vm4006_vm13, 5, %v3809_v42  ;;  %vm4239_vm12 = vcmp.gt.f32.partialorder %v4144_v17, %v4010_v34  ;;  %v8711_v26 = vpop.f32.mrf.mxu0 }
 0x5a9   : > { %vm4007_vm6 = vcmp.gt.f32.partialorder %v8711_v26, %v8704_v28  ;;  %v4146_v16 = vpop.f32.mrf.mxu1  ;;  %v4303_v31 = vsel %vm4239_vm12, 6, %v8201_v14  ;;  %v4012_v14 = vsel %vm3980_vm0, %v8221_v43, %v8213_v3  ;;  %v4013_v3 = vsel %vm3981_vm14, %v8239_v19, %v8231_v46 }
 0x5aa   : > { %v8730_v42 = vsel %vm4007_vm6, 5, %v3810_v59  ;;  %vm4240_vm5 = vcmp.gt.f32.partialorder %v4146_v16, %v4011_v6  ;;  %v8732_v5 = vpop.f32.mrf.mxu0  ;;  %v4271_v43 = vsel %vm4239_vm12, %v4144_v17, %v4010_v34  ;;  %v4014_v46 = vsel %vm3982_vm15, %v8257_v33, %v8249_v24  ;;  %v9441_v24 = vld [vmem:[#allocation30_spill] sm:$0xff] }
 0x5ab   : > { %9435 = vst [vmem:[#allocation17_spill] sm:$0xff] %v8730_v42  ;;  %9436 = vst [vmem:[#allocation25_spill] sm:$0xff] %v8732_v5  ;;  %vm9205_vm1 = vcmp.gt.f32.partialorder %v8732_v5, %v8725_v57  ;;  %v4150_v56 = vpop.f32.mrf.mxu1  ;;  %v4304_v35 = vsel %vm4240_vm5, 6, %v8219_v21  ;;  %v4272_v34 = vsel %vm4240_vm5, %v4146_v16, %v4011_v6  ;;  %v4016_v6 = vsel %vm3984_vm10, %v8293_v9, %v8285_v30  ;;  %v9442_v16 = vld [vmem:[#allocation32_spill] sm:$0xff] }
 0x5ac   : > { %v8752_v59 = vsel %vm9205_vm1, 5, %v3811_v1  ;;  %vm4241_vm4 = vcmp.gt.f32.partialorder %v4150_v56, %v4012_v14  ;;  %v8754_v42 = vpop.f32.mrf.mxu0  ;;  %v4017_v30 = vsel %vm3985_vm11, %v8311_v39, %v8303_v36 }
 0x5ad   : > { %9437 = vst [vmem:[#allocation12_spill] sm:$0xff] %v8752_v59  ;;  %9438 = vst [vmem:[#allocation27_spill] sm:$0xff] %v8754_v42  ;;  %vm4009_vm0 = vcmp.gt.f32.partialorder %v8754_v42, %v8747_v55  ;;  %v4152_v21 = vpop.f32.mrf.mxu1  ;;  %v4305_v58 = vsel %vm4241_vm4, 6, %v8237_v45  ;;  %v9440_v59 = vld [vmem:[#allocation13_spill] sm:$0xff] }
 0x5ae   : > { %vm4242_vm2 = vcmp.gt.f32.partialorder %v4152_v21, %v4013_v3  ;;  %v4405_v27 = vpop.f32.mrf.mxu0  ;;  %v8771_v1 = vsel %vm4009_vm0, 5, %v3812_v62  ;;  %v4015_v62 = vsel %vm3983_vm3, %v8275_v15, %v8267_v2 }
 0x5af   : > { %9439 = vst [vmem:[#allocation48_spill] sm:$0xff] %v8771_v1  ;;  %v4156_v19 = vpop.f32.mrf.mxu1  ;;  %vm4500_vm14 = vcmp.gt.f32.partialorder %v4405_v27, %v4271_v43  ;;  %v4306_v45 = vsel %vm4242_vm2, 6, %v9440_v59  ;;  %v4273_v59 = vsel %vm4241_vm4, %v4150_v56, %v4012_v14  ;;  %v4274_v56 = vsel %vm4242_vm2, %v4152_v21, %v4013_v3 }
 0x5b0   : > { %vm4243_vm1 = vcmp.gt.f32.partialorder %v4156_v19, %v4014_v46  ;;  %v4532_v5 = vsel %vm4500_vm14, 7, %v4303_v31  ;;  %v4407_v17 = vpop.f32.mrf.mxu0  ;;  %v4018_v21 = vsel %vm3986_vm7, %v8329_v61, %v8321_v8  ;;  %vm9446_vm14 = vcmp.gt.f32.partialorder %v8365_v11, %v8357_v37 }
 0x5b1   : > { %v4564_v1 = vadd.s32 1, %v4532_v5  ;;  %v4158_v42 = vpop.f32.mrf.mxu1  ;;  %vm4501_vm12 = vcmp.gt.f32.partialorder %v4407_v17, %v4272_v34  ;;  %v4307_v33 = vsel %vm4243_vm1, 6, %v9441_v24  ;;  %v9444_v24 = vld [vmem:[#allocation36_spill] sm:$0xff] }
 0x5b2   : > { %vm4244_vm15 = vcmp.gt.f32.partialorder %v4158_v42, %v4015_v62  ;;  %v4533_v43 = vsel %vm4501_vm12, 7, %v4304_v35  ;;  %v4411_v31 = vpop.f32.mrf.mxu0 }
 0x5b3   : > { %4596 = vst [vmem:[%s8794_s28] sm:$0xff] %v4564_v1  ;;  %v4565_v2 = vadd.s32 1, %v4533_v43  ;;  %v4162_v15 = vpop.f32.mrf.mxu1  ;;  %vm4502_vm3 = vcmp.gt.f32.partialorder %v4411_v31, %v4273_v59  ;;  %v4308_v5 = vsel %vm4244_vm15, 6, %v9442_v16  ;;  %v9443_v1 = vld [vmem:[#allocation8_spill] sm:$0xff]  ;;  %v9445_v31 = vld [vmem:[#allocation21_spill] sm:$0xff] }
 0x5b4   : > { %vm4245_vm5 = vcmp.gt.f32.partialorder %v4162_v15, %v4016_v6  ;;  %v4534_v14 = vsel %vm4502_vm3, 7, %v4305_v58  ;;  %v4413_v35 = vpop.f32.mrf.mxu0  ;;  %v4275_v58 = vsel %vm4243_vm1, %v4156_v19, %v4014_v46  ;;  %v4019_v19 = vsel %vm3987_vm8, %v8347_v51, %v8339_v22 }
 0x5b5   : > { %4597 = vst [vmem:[%s8794_s28 + $0x8] sm:$0xff] %v4565_v2  ;;  %v4566_v9 = vadd.s32 1, %v4534_v14  ;;  %v4164_v27 = vpop.f32.mrf.mxu1  ;;  %vm4503_vm10 = vcmp.gt.f32.partialorder %v4413_v35, %v4274_v56  ;;  %v4309_v34 = vsel %vm4245_vm5, 6, %v9443_v1  ;;  %v9447_v14 = vld [vmem:[#allocation35_spill] sm:$0xff]  ;;  %v9450_v1 = vld [vmem:[#allocation28_spill] sm:$0xff] }
 0x5b6   : > { %vm4246_vm4 = vcmp.gt.f32.partialorder %v4164_v27, %v4017_v30  ;;  %v4535_v17 = vsel %vm4503_vm10, 7, %v4306_v45  ;;  %v4417_v3 = vpop.f32.mrf.mxu0  ;;  %v4276_v45 = vsel %vm4244_vm15, %v4158_v42, %v4015_v62  ;;  %v4020_v62 = vsel %vm9446_vm14, %v8365_v11, %v8357_v37 }
 0x5b7   : > { %4598 = vst [vmem:[%s8794_s28 + $0x10] sm:$0xff] %v4566_v9  ;;  %v4567_v36 = vadd.s32 1, %v4535_v17  ;;  %v4168_v39 = vpop.f32.mrf.mxu1  ;;  %vm4504_vm11 = vcmp.gt.f32.partialorder %v4417_v3, %v4275_v58  ;;  %v4310_v43 = vsel %vm4246_vm4, 6, %v9444_v24  ;;  %v9452_v3 = vld [vmem:[#allocation26_spill] sm:$0xff] }
 0x5b8   : > { %vm4247_vm2 = vcmp.gt.f32.partialorder %v4168_v39, %v4018_v21  ;;  %v4536_v59 = vsel %vm4504_vm11, 7, %v4307_v33  ;;  %v4419_v46 = vpop.f32.mrf.mxu0  ;;  %v4277_v33 = vsel %vm4245_vm5, %v4162_v15, %v4016_v6  ;;  %v9448_v15 = vld [vmem:[#allocation22_spill] sm:$0xff] }
 0x5b9   : > { %4599 = vst [vmem:[%s8794_s28 + $0x18] sm:$0xff] %v4567_v36  ;;  %v4568_v8 = vadd.s32 1, %v4536_v59  ;;  %v4170_v61 = vpop.f32.mrf.mxu1  ;;  %vm4505_vm7 = vcmp.gt.f32.partialorder %v4419_v46, %v4276_v45  ;;  %v4311_v2 = vsel %vm4247_vm2, 6, %v9445_v31  ;;  %vm9449_vm15 = vcmp.gt.f32.partialorder %v9448_v15, %v8375_v47  ;;  %v9454_v59 = vld [vmem:[#allocation29_spill] sm:$0xff] }
 0x5ba   : > { %vm4248_vm1 = vcmp.gt.f32.partialorder %v4170_v61, %v4019_v19  ;;  %v4537_v16 = vsel %vm4505_vm7, 7, %v4308_v5  ;;  %v4423_v42 = vpop.f32.mrf.mxu0  ;;  %v4278_v5 = vsel %vm4246_vm4, %v4164_v27, %v4017_v30  ;;  %v4021_v9 = vsel %vm9449_vm15, %v9448_v15, %v8375_v47  ;;  %v9451_v27 = vld [vmem:[#allocation23_spill] sm:$0xff] }
 0x5bb   : > { %4600 = vst [vmem:[%s8794_s28 + $0x20] sm:$0xff] %v4568_v8  ;;  %v4569_v22 = vadd.s32 1, %v4537_v16  ;;  %v4174_v51 = vpop.f32.mrf.mxu1  ;;  %vm4506_vm8 = vcmp.gt.f32.partialorder %v4423_v42, %v4277_v33  ;;  %v4312_v56 = vsel %vm4248_vm1, 6, %v9447_v14  ;;  %vm9453_vm10 = vcmp.gt.f32.partialorder %v9452_v3, %v9451_v27  ;;  %v9457_v33 = vld [vmem:[#allocation16_spill] sm:$0xff]  ;;  %v9459_v14 = vld [vmem:[#allocation33_spill] sm:$0xff] }
 0x5bc   : > { %vm4249_vm12 = vcmp.gt.f32.partialorder %v4174_v51, %v4020_v62  ;;  %v4538_v35 = vsel %vm4506_vm8, 7, %v4309_v34  ;;  %v4425_v6 = vpop.f32.mrf.mxu0  ;;  %v4279_v34 = vsel %vm4247_vm2, %v4168_v39, %v4018_v21  ;;  %v4022_v36 = vsel %vm9453_vm10, %v9452_v3, %v9451_v27  ;;  %v9455_v39 = vld [vmem:[#allocation34_spill] sm:$0xff]  ;;  %v9465_v27 = vld [vmem:[#allocation41_spill] sm:$0xff] }
 0x5bd   : > { %4601 = vst [vmem:[%s8794_s28 + $0x28] sm:$0xff] %v4569_v22  ;;  %v4570_v37 = vadd.s32 1, %v4538_v35  ;;  %v4176_v11 = vpop.f32.mrf.mxu1  ;;  %vm4507_vm3 = vcmp.gt.f32.partialorder %v4425_v6, %v4278_v5  ;;  %v4313_v17 = vsel %vm4249_vm12, 6, %v9450_v1  ;;  %vm9456_vm2 = vcmp.gt.f32.partialorder %v9455_v39, %v8411_v25  ;;  %v9461_v6 = vld [vmem:[#allocation38_spill] sm:$0xff]  ;;  %v9463_v1 = vld [vmem:[#allocation31_spill] sm:$0xff] }
 0x5be   : > { %vm4250_vm5 = vcmp.gt.f32.partialorder %v4176_v11, %v4021_v9  ;;  %v4539_v58 = vsel %vm4507_vm3, 7, %v4310_v43  ;;  %v4429_v30 = vpop.f32.mrf.mxu0  ;;  %v4280_v43 = vsel %vm4248_vm1, %v4170_v61, %v4019_v19  ;;  %v4023_v8 = vsel %vm9456_vm2, %v9455_v39, %v8411_v25  ;;  %v9458_v61 = vld [vmem:[#allocation37_spill] sm:$0xff]  ;;  %v9469_v39 = vld [vmem:[#allocation19_spill] sm:$0xff] }
 0x5bf   : > { %4602 = vst [vmem:[%s8794_s28 + $0x30] sm:$0xff] %v4570_v37  ;;  %v4571_v47 = vadd.s32 1, %v4539_v58  ;;  %v4180_v24 = vpop.f32.mrf.mxu1  ;;  %vm4508_vm4 = vcmp.gt.f32.partialorder %v4429_v30, %v4279_v34  ;;  %v4314_v45 = vsel %vm4250_vm5, 6, %v9454_v59  ;;  %vm9460_vm1 = vcmp.gt.f32.partialorder %v9459_v14, %v9458_v61  ;;  %v9467_v59 = vld [vmem:[#allocation44_spill] sm:$0xff] }
 0x5c0   : > { %vm4251_vm11 = vcmp.gt.f32.partialorder %v4180_v24, %v4022_v36  ;;  %v4540_v46 = vsel %vm4508_vm4, 7, %v4311_v2  ;;  %v4431_v21 = vpop.f32.mrf.mxu0  ;;  %v4281_v2 = vsel %vm4249_vm12, %v4174_v51, %v4020_v62  ;;  %v4024_v35 = vsel %vm9460_vm1, %v9459_v14, %v9458_v61  ;;  %v9462_v51 = vld [vmem:[#allocation40_spill] sm:$0xff]  ;;  %v9472_v61 = vld [vmem:[#allocation39_spill] sm:$0xff] }
 0x5c1   : > { %4603 = vst [vmem:[%s8794_s28 + $0x38] sm:$0xff] %v4571_v47  ;;  %v4572_v31 = vadd.s32 1, %v4540_v46  ;;  %v4182_v16 = vpop.f32.mrf.mxu1  ;;  %vm4509_vm7 = vcmp.gt.f32.partialorder %v4431_v21, %v4280_v43  ;;  %v4315_v42 = vsel %vm4251_vm11, 6, %v9457_v33  ;;  %vm9464_vm12 = vcmp.gt.f32.partialorder %v9463_v1, %v9462_v51 }
 0x5c2   : > { %vm4252_vm14 = vcmp.gt.f32.partialorder %v4182_v16, %v4023_v8  ;;  %v4541_v22 = vsel %vm4509_vm7, 7, %v4312_v56  ;;  %v4435_v19 = vpop.f32.mrf.mxu0  ;;  %v4282_v56 = vsel %vm4250_vm5, %v4176_v11, %v4021_v9  ;;  %v4025_v58 = vsel %vm9464_vm12, %v9463_v1, %v9462_v51  ;;  %v9466_v11 = vld [vmem:[#allocation43_spill] sm:$0xff]  ;;  %v9476_v51 = vld [vmem:[#allocation42_spill] sm:$0xff] }
 0x5c3   : > { %4604 = vst [vmem:[%s8794_s28 + $0x40] sm:$0xff] %v4572_v31  ;;  %v4573_v25 = vadd.s32 1, %v4541_v22  ;;  %v4186_v5 = vpop.f32.mrf.mxu1  ;;  %vm4510_vm8 = vcmp.gt.f32.partialorder %v4435_v19, %v4281_v2  ;;  %v4316_v15 = vsel %vm4252_vm14, 6, %v9461_v6  ;;  %vm9468_vm5 = vcmp.gt.f32.partialorder %v9467_v59, %v9466_v11 }
 0x5c4   : > { %vm4253_vm15 = vcmp.gt.f32.partialorder %v4186_v5, %v4024_v35  ;;  %v4542_v37 = vsel %vm4510_vm8, 7, %v4313_v17  ;;  %v4437_v62 = vpop.f32.mrf.mxu0  ;;  %v4283_v17 = vsel %vm4251_vm11, %v4180_v24, %v4022_v36  ;;  %v4026_v46 = vsel %vm9468_vm5, %v9467_v59, %v9466_v11  ;;  %v9470_v24 = vld [vmem:[#allocation45_spill] sm:$0xff] }
 0x5c5   : > { %4605 = vst [vmem:[%s8794_s28 + $0x48] sm:$0xff] %v4573_v25  ;;  %v4574_v34 = vadd.s32 1, %v4542_v37  ;;  %v4188_v30 = vpop.f32.mrf.mxu1  ;;  %vm4511_vm3 = vcmp.gt.f32.partialorder %v4437_v62, %v4282_v56  ;;  %v4317_v3 = vsel %vm4253_vm15, 6, %v9465_v27  ;;  %vm9471_vm11 = vcmp.gt.f32.partialorder %v9470_v24, %v8483_v44  ;;  %v9474_v37 = vld [vmem:[#allocation46_spill] sm:$0xff] }
 0x5c6   : > { %vm4254_vm10 = vcmp.gt.f32.partialorder %v4188_v30, %v4025_v58  ;;  %v4543_v47 = vsel %vm4511_vm3, 7, %v4314_v45  ;;  %v4441_v9 = vpop.f32.mrf.mxu0  ;;  %v4284_v45 = vsel %vm4252_vm14, %v4182_v16, %v4023_v8  ;;  %v4027_v22 = vsel %vm9471_vm11, %v9470_v24, %v8483_v44 }
 0x5c7   : > { %4606 = vst [vmem:[%s8794_s28 + $0x50] sm:$0xff] %v4574_v34  ;;  %v4575_v43 = vadd.s32 1, %v4543_v47  ;;  %v4192_v21 = vpop.f32.mrf.mxu1  ;;  %vm4512_vm4 = vcmp.gt.f32.partialorder %v4441_v9, %v4283_v17  ;;  %v4318_v31 = vsel %vm4254_vm10, 6, %v9469_v39  ;;  %vm9473_vm14 = vcmp.gt.f32.partialorder %v8509_v38, %v8501_v63  ;;  %v9480_v17 = vld [vmem:[#allocation18_spill] sm:$0xff] }
 0x5c8   : > { %vm4255_vm2 = vcmp.gt.f32.partialorder %v4192_v21, %v4026_v46  ;;  %v4544_v33 = vsel %vm4512_vm4, 7, %v4315_v42  ;;  %v4443_v36 = vpop.f32.mrf.mxu0  ;;  %v4285_v42 = vsel %vm4253_vm15, %v4186_v5, %v4024_v35  ;;  %v4028_v16 = vsel %vm9473_vm14, %v8509_v38, %v8501_v63 }
 0x5c9   : > { %4607 = vst [vmem:[%s8794_s28 + $0x58] sm:$0xff] %v4575_v43  ;;  %v4576_v2 = vadd.s32 1, %v4544_v33  ;;  %v4194_v19 = vpop.f32.mrf.mxu1  ;;  %vm4513_vm7 = vcmp.gt.f32.partialorder %v4443_v36, %v4284_v45  ;;  %v4319_v14 = vsel %vm4255_vm2, 6, %v9472_v61  ;;  %vm9475_vm15 = vcmp.gt.f32.partialorder %v8527_v20, %v8519_v10 }
 0x5ca   : > { %vm4256_vm1 = vcmp.gt.f32.partialorder %v4194_v19, %v4027_v22  ;;  %v4545_v25 = vsel %vm4513_vm7, 7, %v4316_v15  ;;  %v4447_v8 = vpop.f32.mrf.mxu0  ;;  %v4286_v15 = vsel %vm4254_vm10, %v4188_v30, %v4025_v58  ;;  %v4029_v5 = vsel %vm9475_vm15, %v8527_v20, %v8519_v10  ;;  %v9477_v30 = vld [vmem:[#allocation47_spill] sm:$0xff] }
 0x5cb   : > { %4608 = vst [vmem:[%s8794_s28 + $0x60] sm:$0xff] %v4576_v2  ;;  %v4577_v44 = vadd.s32 1, %v4545_v25  ;;  %v4198_v6 = vpop.f32.mrf.mxu1  ;;  %vm4514_vm8 = vcmp.gt.f32.partialorder %v4447_v8, %v4285_v42  ;;  %v4320_v56 = vsel %vm4256_vm1, 6, %v9474_v37  ;;  %v4287_v27 = vsel %vm4255_vm2, %v4192_v21, %v4026_v46  ;;  %v9484_v2 = vld [vmem:[#allocation10_spill] sm:$0xff]  ;;  %v9486_v8 = vld [vmem:[#allocation20_spill] sm:$0xff] }
 0x5cc   : > { %vm4257_vm12 = vcmp.gt.f32.partialorder %v4198_v6, %v4028_v16  ;;  %v4546_v62 = vsel %vm4514_vm8, 7, %v4317_v3  ;;  %v4449_v35 = vpop.f32.mrf.mxu0  ;;  %v9478_v3 = vld [vmem:[#allocation24_spill] sm:$0xff]  ;;  %v4288_v59 = vsel %vm4256_vm1, %v4194_v19, %v4027_v22  ;;  %vm9481_vm2 = vcmp.gt.f32.partialorder %v8563_v12, %v8555_v13 }
 0x5cd   : > { %4609 = vst [vmem:[%s8794_s28 + $0x68] sm:$0xff] %v4577_v44  ;;  %v4578_v38 = vadd.s32 1, %v4546_v62  ;;  %v4200_v63 = vpop.f32.mrf.mxu1  ;;  %vm4515_vm3 = vcmp.gt.f32.partialorder %v4449_v35, %v4286_v15  ;;  %v4321_v1 = vsel %vm4257_vm12, 6, %v9476_v51  ;;  %vm9479_vm10 = vcmp.gt.f32.partialorder %v9478_v3, %v9477_v30  ;;  %v9488_v62 = vld [vmem:[#allocation14_spill] sm:$0xff]  ;;  %v9490_v51 = vld [vmem:[#allocation9_spill] sm:$0xff] }
 0x5ce   : > { %vm4258_vm5 = vcmp.gt.f32.partialorder %v4200_v63, %v4029_v5  ;;  %v4547_v34 = vsel %vm4515_vm3, 7, %v4318_v31  ;;  %v4453_v58 = vpop.f32.mrf.mxu0  ;;  %v4030_v47 = vsel %vm9479_vm10, %v9478_v3, %v9477_v30  ;;  %v4031_v43 = vsel %vm9481_vm2, %v8563_v12, %v8555_v13  ;;  %v9482_v31 = vld [vmem:[#allocation7_spill] sm:$0xff] }
 0x5cf   : > { %4610 = vst [vmem:[%s8794_s28 + $0x70] sm:$0xff] %v4578_v38  ;;  %v4579_v10 = vadd.s32 1, %v4547_v34  ;;  %v4204_v20 = vpop.f32.mrf.mxu1  ;;  %vm4516_vm4 = vcmp.gt.f32.partialorder %v4453_v58, %v4287_v27  ;;  %v4322_v9 = vsel %vm4258_vm5, 6, %v9480_v17  ;;  %v4289_v36 = vsel %vm4257_vm12, %v4198_v6, %v4028_v16  ;;  %v9491_v3 = vld [vmem:[#allocation15_spill] sm:$0xff] }
 0x5d0   : > { %vm4259_vm11 = vcmp.gt.f32.partialorder %v4204_v20, %v4030_v47  ;;  %v4548_v11 = vsel %vm4516_vm4, 7, %v4319_v14  ;;  %v4455_v46 = vpop.f32.mrf.mxu0  ;;  %vm9483_vm1 = vcmp.gt.f32.partialorder %v8581_v50, %v8573_v32  ;;  %v4290_v14 = vsel %vm4258_vm5, %v4200_v63, %v4029_v5 }
 0x5d1   : > { %4611 = vst [vmem:[%s8794_s28 + $0x78] sm:$0xff] %v4579_v10  ;;  %v4580_v21 = vadd.s32 1, %v4548_v11  ;;  %v4206_v39 = vpop.f32.mrf.mxu1  ;;  %vm4517_vm7 = vcmp.gt.f32.partialorder %v4455_v46, %v4288_v59  ;;  %v4323_v33 = vsel %vm4259_vm11, 6, %v9482_v31  ;;  %v4032_v22 = vsel %vm9483_vm1, %v8581_v50, %v8573_v32 }
 0x5d2   : > { %vm4260_vm14 = vcmp.gt.f32.partialorder %v4206_v39, %v4031_v43  ;;  %v4549_v45 = vsel %vm4517_vm7, 7, %v4320_v56  ;;  %v4459_v24 = vpop.f32.mrf.mxu0  ;;  %vm9485_vm12 = vcmp.gt.f32.partialorder %v8599_v53, %v8591_v7  ;;  %v4291_v6 = vsel %vm4259_vm11, %v4204_v20, %v4030_v47 }
 0x5d3   : > { %4612 = vst [vmem:[%s8794_s28 + $0x80] sm:$0xff] %v4580_v21  ;;  %v4581_v13 = vadd.s32 1, %v4549_v45  ;;  %v4210_v12 = vpop.f32.mrf.mxu1  ;;  %vm4518_vm8 = vcmp.gt.f32.partialorder %v4459_v24, %v4289_v36  ;;  %v4324_v19 = vsel %vm4260_vm14, 6, %v9484_v2  ;;  %v4033_v42 = vsel %vm9485_vm12, %v8599_v53, %v8591_v7  ;;  %v9494_v2 = vld [vmem:[#allocation25_spill] sm:$0xff] }
 0x5d4   : > { %vm4261_vm15 = vcmp.gt.f32.partialorder %v4210_v12, %v4032_v22  ;;  %v4550_v61 = vsel %vm4518_vm8, 7, %v4321_v1  ;;  %v4461_v25 = vpop.f32.mrf.mxu0  ;;  %vm9487_vm5 = vcmp.gt.f32.partialorder %v8617_v0, %v8609_v52  ;;  %v4292_v5 = vsel %vm4260_vm14, %v4206_v39, %v4031_v43  ;;  %v9493_v39 = vld [vmem:[#allocation11_spill] sm:$0xff] }
 0x5d5   : > { %4613 = vst [vmem:[%s8794_s28 + $0x88] sm:$0xff] %v4581_v13  ;;  %v4582_v50 = vadd.s32 1, %v4550_v61  ;;  %v4212_v32 = vpop.f32.mrf.mxu1  ;;  %vm4519_vm3 = vcmp.gt.f32.partialorder %v4461_v25, %v4290_v14  ;;  %v4325_v16 = vsel %vm4261_vm15, 6, %v9486_v8  ;;  %v4034_v56 = vsel %vm9487_vm5, %v8617_v0, %v8609_v52  ;;  %v9496_v61 = vld [vmem:[#allocation17_spill] sm:$0xff] }
 0x5d6   : > { %vm4262_vm10 = vcmp.gt.f32.partialorder %v4212_v32, %v4033_v42  ;;  %v4551_v44 = vsel %vm4519_vm3, 7, %v4322_v9  ;;  %v4465_v37 = vpop.f32.mrf.mxu0  ;;  %vm9489_vm11 = vcmp.gt.f32.partialorder %v8635_v60, %v8627_v4  ;;  %v4293_v27 = vsel %vm4261_vm15, %v4210_v12, %v4032_v22 }
 0x5d7   : > { %4614 = vst [vmem:[%s8794_s28 + $0x90] sm:$0xff] %v4582_v50  ;;  %v4583_v7 = vadd.s32 1, %v4551_v44  ;;  %v4216_v53 = vpop.f32.mrf.mxu1  ;;  %vm4520_vm4 = vcmp.gt.f32.partialorder %v4465_v37, %v4291_v6  ;;  %v4326_v15 = vsel %vm4262_vm10, 6, %v9488_v62  ;;  %v4035_v63 = vsel %vm9489_vm11, %v8635_v60, %v8627_v4 }
 0x5d8   : > { %vm4263_vm2 = vcmp.gt.f32.partialorder %v4216_v53, %v4034_v56  ;;  %v4552_v35 = vsel %vm4520_vm4, 7, %v4323_v33  ;;  %v4467_v38 = vpop.f32.mrf.mxu0  ;;  %v4036_v30 = vsel %vm4004_vm9, %v8653_v54, %v8645_v41  ;;  %v4294_v20 = vsel %vm4262_vm10, %v4212_v32, %v4033_v42  ;;  %v9497_v32 = vld [vmem:[#allocation27_spill] sm:$0xff] }
 0x5d9   : > { %4615 = vst [vmem:[%s8794_s28 + $0x98] sm:$0xff] %v4583_v7  ;;  %v4584_v52 = vadd.s32 1, %v4552_v35  ;;  %v4218_v0 = vpop.f32.mrf.mxu1  ;;  %vm4521_vm7 = vcmp.gt.f32.partialorder %v4467_v38, %v4292_v5  ;;  %v4327_v1 = vsel %vm4263_vm2, 6, %v9490_v51  ;;  %vm9492_vm15 = vcmp.gt.f32.partialorder %v8671_v48, %v8663_v23  ;;  %v9499_v7 = vld [vmem:[#allocation48_spill] sm:$0xff] }
 0x5da   : > { %vm4264_vm1 = vcmp.gt.f32.partialorder %v4218_v0, %v4035_v63  ;;  %v4553_v34 = vsel %vm4521_vm7, 7, %v4324_v19  ;;  %v4471_v58 = vpop.f32.mrf.mxu0  ;;  %v4037_v9 = vsel %vm9492_vm15, %v8671_v48, %v8663_v23  ;;  %v4295_v46 = vsel %vm4263_vm2, %v4216_v53, %v4034_v56 }
 0x5db   : > { %4616 = vst [vmem:[%s8794_s28 + $0xa0] sm:$0xff] %v4584_v52  ;;  %v4585_v4 = vadd.s32 1, %v4553_v34  ;;  %v4222_v60 = vpop.f32.mrf.mxu1  ;;  %vm4522_vm14 = vcmp.gt.f32.partialorder %v4471_v58, %v4293_v27  ;;  %v4328_v47 = vsel %vm4264_vm1, 6, %v9491_v3  ;;  %v4038_v21 = vsel %vm4006_vm13, %v8689_v18, %v8681_v49 }
 0x5dc   : > { %vm4265_vm8 = vcmp.gt.f32.partialorder %v4222_v60, %v4036_v30  ;;  %v4554_v10 = vsel %vm4522_vm14, 7, %v4325_v16  ;;  %v4473_v17 = vpop.f32.mrf.mxu0  ;;  %v4296_v33 = vsel %vm4264_vm1, %v4218_v0, %v4035_v63  ;;  %v4039_v36 = vsel %vm4007_vm6, %v8711_v26, %v8704_v28  ;;  %v9498_v16 = vld [vmem:[#allocation12_spill] sm:$0xff] }
 0x5dd   : > { %4617 = vst [vmem:[%s8794_s28 + $0xa8] sm:$0xff] %v4585_v4  ;;  %v4586_v41 = vadd.s32 1, %v4554_v10  ;;  %v4224_v54 = vpop.f32.mrf.mxu1  ;;  %vm4523_vm9 = vcmp.gt.f32.partialorder %v4473_v17, %v4294_v20  ;;  %v4329_v11 = vsel %vm4265_vm8, 6, %v8669_v29  ;;  %v4297_v13 = vsel %vm4265_vm8, %v4222_v60, %v4036_v30 }
 0x5de   : > { %vm4266_vm12 = vcmp.gt.f32.partialorder %v4224_v54, %v4037_v9  ;;  %v4555_v59 = vsel %vm4523_vm9, 7, %v4326_v15  ;;  %v4477_v43 = vpop.f32.mrf.mxu0  ;;  %vm9495_vm4 = vcmp.gt.f32.partialorder %v9494_v2, %v8725_v57 }
 0x5df   : > { %4618 = vst [vmem:[%s8794_s28 + $0xb0] sm:$0xff] %v4586_v41  ;;  %v4587_v23 = vadd.s32 1, %v4555_v59  ;;  %v4228_v48 = vpop.f32.mrf.mxu1  ;;  %vm4524_vm3 = vcmp.gt.f32.partialorder %v4477_v43, %v4295_v46  ;;  %v4330_v31 = vsel %vm4266_vm12, 6, %v9493_v39  ;;  %v4040_v19 = vsel %vm9495_vm4, %v9494_v2, %v8725_v57 }
 0x5e0   : > { %vm4267_vm10 = vcmp.gt.f32.partialorder %v4228_v48, %v4038_v21  ;;  %v4556_v29 = vsel %vm4524_vm3, 7, %v4327_v1  ;;  %v4479_v45 = vpop.f32.mrf.mxu0  ;;  %v4298_v25 = vsel %vm4266_vm12, %v4224_v54, %v4037_v9  ;;  %v4041_v57 = vsel %vm4009_vm0, %v9497_v32, %v8747_v55 }
 0x5e1   : > { %4619 = vst [vmem:[%s8794_s28 + $0xb8] sm:$0xff] %v4587_v23  ;;  %v4588_v49 = vadd.s32 1, %v4556_v29  ;;  %v4230_v18 = vpop.f32.mrf.mxu1  ;;  %vm4525_vm13 = vcmp.gt.f32.partialorder %v4479_v45, %v4296_v33  ;;  %v4331_v24 = vsel %vm4267_vm10, 6, %v8709_v40  ;;  %v4299_v37 = vsel %vm4267_vm10, %v4228_v48, %v4038_v21 }
 0x5e2   : > { %vm4268_vm5 = vcmp.gt.f32.partialorder %v4230_v18, %v4039_v36  ;;  %v4557_v22 = vsel %vm4525_vm13, 7, %v4328_v47  ;;  %v4483_v12 = vpop.f32.mrf.mxu0 }
 0x5e3   : > { %4620 = vst [vmem:[%s8794_s28 + $0xc0] sm:$0xff] %v4588_v49  ;;  %v4589_v28 = vadd.s32 1, %v4557_v22  ;;  %v4234_v26 = vpop.f32.mrf.mxu1  ;;  %vm4526_vm6 = vcmp.gt.f32.partialorder %v4483_v12, %v4297_v13  ;;  %v4332_v14 = vsel %vm4268_vm5, 6, %v9496_v61  ;;  %v4300_v15 = vsel %vm4268_vm5, %v4230_v18, %v4039_v36 }
 0x5e4   : > { %vm4269_vm2 = vcmp.gt.f32.partialorder %v4234_v26, %v4040_v19  ;;  %v4558_v40 = vsel %vm4526_vm6, 7, %v4329_v11  ;;  %v4485_v42 = vpop.f32.mrf.mxu0 }
 0x5e5   : > { %4621 = vst [vmem:[%s8794_s28 + $0xc8] sm:$0xff] %v4589_v28  ;;  %v4590_v50 = vadd.s32 1, %v4558_v40  ;;  %v4236_v8 = vpop.f32.mrf.mxu1  ;;  %vm4527_vm11 = vcmp.gt.f32.partialorder %v4485_v42, %v4298_v25  ;;  %v4333_v44 = vsel %vm4269_vm2, 6, %v9498_v16  ;;  %v4301_v63 = vsel %vm4269_vm2, %v4234_v26, %v4040_v19 }
 0x5e6   : > { %vm4270_vm7 = vcmp.gt.f32.partialorder %v4236_v8, %v4041_v57  ;;  %v4559_v6 = vsel %vm4527_vm11, 7, %v4330_v31  ;;  %v4489_v56 = vpop.f32.mrf.mxu0 }
 0x5e7   : > { %4622 = vst [vmem:[%s8794_s28 + $0xd0] sm:$0xff] %v4590_v50  ;;  %v4334_v53 = vsel %vm4270_vm7, 6, %v9499_v7  ;;  %v4591_v62 = vadd.s32 1, %v4559_v6  ;;  %vm4528_vm1 = vcmp.gt.f32.partialorder %v4489_v56, %v4299_v37  ;;  %v4302_v1 = vsel %vm4270_vm7, %v4236_v8, %v4041_v57 }
 0x5e8   : > { %v4560_v55 = vsel %vm4528_vm1, 7, %v4331_v24  ;;  %v4491_v35 = vpop.f32.mrf.mxu0 }
 0x5e9   : > { %4623 = vst [vmem:[%s8794_s28 + $0xd8] sm:$0xff] %v4591_v62  ;;  %v4592_v5 = vadd.s32 1, %v4560_v55  ;;  %vm4529_vm0 = vcmp.gt.f32.partialorder %v4491_v35, %v4300_v15 }
 0x5ea   : > { %v4561_v38 = vsel %vm4529_vm0, 7, %v4332_v14  ;;  %v4495_v52 = vpop.f32.mrf.mxu0 }
 0x5eb   : > { %4624 = vst [vmem:[%s8794_s28 + $0xe0] sm:$0xff] %v4592_v5  ;;  %v4593_v0 = vadd.s32 1, %v4561_v38  ;;  %vm4530_vm14 = vcmp.gt.f32.partialorder %v4495_v52, %v4301_v63 }
 0x5ec   : > { %v4562_v51 = vsel %vm4530_vm14, 7, %v4333_v44  ;;  %v4497_v34 = vpop.f32.mrf.mxu0 }
 0x5ed   : > { %4625 = vst [vmem:[%s8794_s28 + $0xe8] sm:$0xff] %v4593_v0  ;;  %v4594_v27 = vadd.s32 1, %v4562_v51  ;;  %vm4531_vm8 = vcmp.gt.f32.partialorder %v4497_v34, %v4302_v1 }
 0x5ee   : > { %v4563_v58 = vsel %vm4531_vm8, 7, %v4334_v53 }
 0x5ef   : > { %4626 = vst [vmem:[%s8794_s28 + $0xf0] sm:$0xff] %v4594_v27  ;;  %v4595_v30 = vadd.s32 1, %v4563_v58 }
 0x5f1   : > { %4627 = vst [vmem:[%s8794_s28 + $0xf8] sm:$0xff] %v4595_v30 }
 0x5f2   : > { %5398 = shalt.err (!%p5395_p3)
}
 0x5f3   : > { %s5399_s26 = scalar_lea.hbm %s9039_s21, 4096  ;;  %s5403_s29 = scalar_lea.hbm %s9096_s9, 8192 }
 0x5f4   : > { %p5400_p4 = scmp.ne.s32.totalorder %s9039_s21, %s5399_s26  ;;  %p5404_p9 = scmp.lt.s32.totalorder %s9039_s21, %s9096_s9 }
 0x5f5   : > { %p5405_p10 = scmp.lt.s32.totalorder %s5403_s29, %s5399_s26 }
 0x5f6   : > { %p5401_p7 = pnand %p5400_p4, %p5540_p5 }
 0x5f7   : > { %p5406_p11 = por %p5405_p10, %p5404_p9 }
 0x5f8   : > { %p5402_p8 = pneg %p5401_p7 }
 0x5fa   : > { %p5407_p12 = pnand %p5406_p11, %p5402_p8 }
 0x5fc   : > { %5410 = shalt.err (!%p5407_p12)
}
 0x5fd   : > { %s5450_s22 = smov 256   ;;  %s5451_s23 = smov 16  }
 0x5fe   : > { %5272 = dma.vmem_to_hbm [thread:$0]  (%p5540_p5), %s9041_s14, 4096, %s9039_s21, %s9047_s13, %s5450_s22, %s5450_s22, %s5451_s23  }
 0x5ff PF: > { %p5278_p13 = scmp.ge.s32.totalorder %s5445_s12, 2  ;;  %s4658_s24 = sand.u32 1, %s5433_s30  }
 0x600   : > { %s4659_s25 = scalar_lea.sflag [#allocation5], %s4658_s24 }
 0x601   : > { %p5275_p0 = pnand %p5278_p13, %p5544_p6 }
 0x603   : > { %p5276_p1 = pneg %p5275_p0 }
 0x605   : > { %5428 = dma.done.wait (%p5276_p1), %s4659_s25, 4096  }
 0x606   : > { %5430 = vsyncadd (%p5276_p1), %s4659_s25, 4294963200  ;;  %p19_p2 = scmp.ge.s32.totalorder %s5527_s15, 4   ;;  %s9500_s30 = smov %s5437_s10 }
 0x607   : > { %s9501_s10 = smov %s5441_s11  ;;  %s9502_s11 = smov %s5538_s18 }
 0x608   : > { %s9503_s12 = smov %s5527_s15  ;;  %21 = sbr.rel (!%p19_p2) target bundleno = 3 (0x3), region = 91 }
 0x60d   :  { %4664 = vsyncpa [#allocation5], 1 }
 0x60e   :  { %4666 = vsyncpa [#allocation5 + $0x1], 1 }

</bundles_post_ra>
